<compile_context>
chip_gen: v7x
topology: tpu7x:2x2x1
jax: 0.10.0
libtpu: 0.0.40
codegen_flags: <defaults>
</compile_context>

<pallas_src>
import math

import numpy as np
import jax
import jax.numpy as jnp
from jax.experimental import pallas as pl
from jax.experimental.pallas import tpu as pltpu

# ----- model dimensions (small, consistent with the module) -----
B, N, E = 2, 8, 32          # batch, nodes, embedding_dim
H, D = 4, 8                 # num_attention_heads, head_size (E = H * D)
HD = H * D
FF = 64                     # intermediate_size
LN_EPS = 1e-5               # torch nn.LayerNorm default
NEG_SLOPE = 0.01            # torch nn.LeakyReLU default
MASK_NEG = -1e30            # finite stand-in for -inf (same softmax result, NaN-robust)

_PREC = jax.lax.Precision.HIGH          # kernel matmuls: bf16_3x, ~f32 accurate, 2x fewer MXU passes
_REF_PREC = jax.lax.Precision.HIGHEST   # reference only (not perf relevant)

# rows of the packed per-lane vector slab
_VG1, _VBE1, _VG2, _VBE2 = 0, 1, 2, 3
_VWEK, _VBEK, _VWEV, _VBEV = 4, 5, 6, 7
_VBPRJ, _VB2, _VB1 = 8, 9, 10
_NVEC = 11


def _erf(x):
    # Abramowitz & Stegun 7.1.26 polynomial approximation of erf
    # (max abs err ~1.5e-7; well inside the 1e-3 check vs torch's exact-erf GELU).
    a1, a2, a3, a4, a5 = 0.254829592, -0.284496736, 1.421413741, -1.453152027, 1.061405429
    p = 0.3275911
    ax = jnp.abs(x)
    t = 1.0 / (1.0 + p * ax)
    y = 1.0 - ((((a5 * t + a4) * t + a3) * t + a2) * t + a1) * t * jnp.exp(-ax * ax)
    return jnp.where(x < 0, -y, y)


def _layernorm(x, gamma, beta):
    mu = jnp.mean(x, axis=-1, keepdims=True)
    var = jnp.mean((x - mu) ** 2, axis=-1, keepdims=True)
    return (x - mu) * jax.lax.rsqrt(var + LN_EPS) * gamma + beta


def init_params(key):
    """Same parameterization / init as the PyTorch module (weights stored transposed)."""
    ks = jax.random.split(key, 8)
    sq = 1.0 / math.sqrt(D)
    wqkv_t = jax.random.uniform(ks[0], (E, 3 * HD), jnp.float32, -sq, sq)      # qkv (no bias)
    wekv = jax.random.uniform(ks[1], (1, 2 * HD), jnp.float32, -1.0, 1.0)      # nn.Linear(1, 2HD)
    bekv = jax.random.uniform(ks[2], (1, 2 * HD), jnp.float32, -1.0, 1.0)
    sp = 1.0 / math.sqrt(E)
    wprj_t = jax.random.uniform(ks[3], (HD, E), jnp.float32, -sp, sp)          # prj, bias zeroed
    bprj = jnp.zeros((1, E), jnp.float32)
    k1 = 1.0 / math.sqrt(E)
    w1_t = jax.random.uniform(ks[4], (E, FF), jnp.float32, -k1, k1)
    b1 = jax.random.uniform(ks[5], (1, FF), jnp.float32, -k1, k1)
    k2 = 1.0 / math.sqrt(FF)
    w2_t = jax.random.uniform(ks[6], (FF, E), jnp.float32, -k2, k2)
    b2 = jax.random.uniform(ks[7], (1, E), jnp.float32, -k2, k2)
    g1, be1 = jnp.ones((1, E), jnp.float32), jnp.zeros((1, E), jnp.float32)
    g2, be2 = jnp.ones((1, E), jnp.float32), jnp.zeros((1, E), jnp.float32)
    return [g1, be1, g2, be2, wqkv_t, wekv, bekv, wprj_t, bprj, w1_t, b1, w2_t, b2]


def pack_params(params, num_heads=H):
    """One-time host-side repack: fewer / denser kernel operands (zero per-call cost)."""
    g1, be1, g2, be2, wqkv_t, wekv, bekv, wprj_t, bprj, w1_t, b1, w2_t, b2 = params
    e_dim, hd3 = wqkv_t.shape
    hd = hd3 // 3
    d = hd // num_heads
    ff = w1_t.shape[1]

    # W_q | W_k | W_v stacked along the sublane axis; the 1/sqrt(head_size) attention
    # scale is folded into W_q (que is only ever used for the logits).
    wq = wqkv_t[:, :hd] * jnp.float32(1.0 / math.sqrt(d))
    wk = wqkv_t[:, hd:2 * hd]
    wv = wqkv_t[:, 2 * hd:]
    wqkv_stack = jnp.concatenate([wq, wk, wv], axis=0)                    # (3E, HD)

    # all (1, .) vectors in one slab, one row each, zero-padded to a common width
    width = max(e_dim, hd, ff)

    def row(vv):
        vv = jnp.ravel(vv).astype(jnp.float32)
        return jnp.pad(vv, (0, width - vv.shape[0]))

    vecs = jnp.stack([
        row(g1), row(be1), row(g2), row(be2),
        row(wekv[:, :hd]), row(bekv[:, :hd]),
        row(wekv[:, hd:]), row(bekv[:, hd:]),
        row(bprj), row(b2), row(b1),
    ], axis=0)                                                            # (_NVEC, width)

    # block-diagonal 0/1 head selectors (exact in any matmul precision)
    lane = np.arange(hd)
    head = lane // d
    sel = np.zeros((hd, num_heads), np.float32)
    sel[lane, head] = 1.0                      # per-head D-segment sum (logit reduction)
    selT = np.ascontiguousarray(sel.T)         # head scalar -> its D lanes

    return dict(wqkv=wqkv_stack,
                wprj=jnp.asarray(wprj_t, jnp.float32),
                w1=jnp.asarray(w1_t, jnp.float32),
                w2=jnp.asarray(w2_t, jnp.float32),
                vecs=vecs,
                sel=jnp.asarray(sel),
                selT=jnp.asarray(selT))


def edge_weighted_transformer_layer(x, e, packed, mask=None, *, batch_block=None):
    Bn, Nn, En = x.shape
    Mn = e.shape[-1]
    assert e.shape == (Bn, Nn, Mn)
    assert Mn == Nn, "masked_fill broadcast semantics of the module require M == N"

    wqkv, wprj, w1, w2, vecs, sel, selT = (
        packed["wqkv"], packed["wprj"], packed["w1"], packed["w2"],
        packed["vecs"], packed["sel"], packed["selT"])

    # Fold the whole batch into a single grid step by default (overhead / DMA-descriptor
    # bound at these sizes).  batch_block stays available for 2-TC experiments.
    bb = Bn if batch_block is None else batch_block
    assert Bn % bb == 0
    grid = (Bn // bb,)
    rows_blk = bb * Nn

    # Wrapper-side reshapes are free layout plumbing; the kernel only sees 2D slabs.
    x2 = x.reshape(Bn * Nn, En)
    e2 = e.reshape(Bn * Nn * Mn, 1)
    has_mask = mask is not None

    inputs = [x2, e2]
    in_specs = [
        pl.BlockSpec((rows_blk, En), lambda b: (b, 0)),
        pl.BlockSpec((rows_blk * Mn, 1), lambda b: (b, 0)),
    ]
    if has_mask:
        # torch: dots.masked_fill(mask.bool(), -inf); -1e30 gives an identical softmax
        # for any row with at least one unmasked entry and avoids NaN otherwise.
        mb2 = jnp.where(mask.reshape(Bn * Nn * Mn, 1).astype(bool),
                        jnp.float32(MASK_NEG), jnp.float32(0.0))
        inputs.append(mb2)
        in_specs.append(pl.BlockSpec((rows_blk * Mn, 1), lambda b: (b, 0)))

    param_arrays = [wqkv, wprj, w1, w2, vecs, sel, selT]
    inputs += param_arrays
    in_specs += [pl.BlockSpec(p.shape, lambda b: (0, 0)) for p in param_arrays]

    def build(prec):
        def kernel(*refs):
            if has_mask:
                (x_ref, e_ref, mb_ref, wqkv_ref, wprj_ref, w1_ref, w2_ref,
                 vec_ref, sel_ref, selT_ref, o_ref) = refs
            else:
                (x_ref, e_ref, wqkv_ref, wprj_ref, w1_ref, w2_ref,
                 vec_ref, sel_ref, selT_ref, o_ref) = refs
                mb_ref = None

            rows, em = x_ref.shape
            hd = wprj_ref.shape[0]
            h = sel_ref.shape[1]
            ff = w1_ref.shape[1]
            m = e_ref.shape[0] // rows
            rows_m = rows * m

            def mm(a, bmat):
                return jnp.dot(a, bmat, preferred_element_type=jnp.float32, precision=prec)

            xf = x_ref[...]                                               # (rows, E)

            # ---------- pre-norm 1 + edge-weighted MHSA (all heads jointly) ----------
            xn = _layernorm(xf, vec_ref[_VG1:_VG1 + 1, :em], vec_ref[_VBE1:_VBE1 + 1, :em])

            # q is pre-scaled by 1/sqrt(head_size) via the packed W_q slab
            q = mm(xn, wqkv_ref[0:em, :])
            k = mm(xn, wqkv_ref[em:2 * em, :])
            v = mm(xn, wqkv_ref[2 * em:3 * em, :])

            # edge K/V features: Linear(1 -> HD) + LeakyReLU on dense (rows*M, HD) slabs
            ef = e_ref[...]                                               # (rows*M, 1)
            ekm = ef * vec_ref[_VWEK:_VWEK + 1, :hd] + vec_ref[_VBEK:_VBEK + 1, :hd]
            ekm = jnp.where(ekm >= 0, ekm, NEG_SLOPE * ekm)
            evm = ef * vec_ref[_VWEV:_VWEV + 1, :hd] + vec_ref[_VBEV:_VBEV + 1, :hd]
            evm = jnp.where(evm >= 0, evm, NEG_SLOPE * evm)

            # logits: per-head D-reduction on the MXU with the 0/1 selector
            # (key/val of the *query* node, exactly as in the torch module)
            t = q[:, None, :] * (k[:, None, :] + ekm.reshape(rows, m, hd))     # (rows, M, HD)
            dots = mm(t.reshape(rows_m, hd), sel_ref[...]).reshape(rows, m, h)  # (rows, M, H)
            if has_mask:
                dots = dots + mb_ref[...].reshape(rows, m, 1)                   # one add, all heads

            # softmax over the neighbor axis M (shared across heads); EUP reciprocal
            dmax = jnp.max(dots, axis=1, keepdims=True)
            p = jnp.exp(dots - dmax)
            s = jnp.sum(p, axis=1, keepdims=True)
            inv = pl.reciprocal(s, approx=True)
            inv = inv * (2.0 - s * inv)           # one Newton step -> ~f32 accuracy
            attn = p * inv                                                     # (rows, M, H)

            # expand per-head weights back to HD lanes (MXU) and reduce over neighbors
            attn_hd = mm(attn.reshape(rows_m, h), selT_ref[...]).reshape(rows, m, hd)
            hat = jnp.sum(attn_hd * (v[:, None, :] + evm.reshape(rows, m, hd)), axis=1)

            # output projection + residual 1
            xr = xf + mm(hat, wprj_ref[...]) + vec_ref[_VBPRJ:_VBPRJ + 1, :em]

            # ---------- pre-norm 2 + MLP ----------
            xn2 = _layernorm(xr, vec_ref[_VG2:_VG2 + 1, :em], vec_ref[_VBE2:_VBE2 + 1, :em])
            h1 = mm(xn2, w1_ref[...]) + vec_ref[_VB1:_VB1 + 1, :ff]
            h1 = 0.5 * h1 * (1.0 + _erf(h1 * (1.0 / math.sqrt(2.0))))    # erf GELU (torch default)
            h2 = mm(h1, w2_ref[...]) + vec_ref[_VB2:_VB2 + 1, :em]
            o_ref[...] = xr + h2                                          # residual 2

        return pl.pallas_call(
            kernel,
            out_shape=jax.ShapeDtypeStruct((Bn * Nn, En), jnp.float32),
            grid_spec=pltpu.PrefetchScalarGridSpec(
                num_scalar_prefetch=0,
                grid=grid,
                in_specs=in_specs,
                out_specs=pl.BlockSpec((rows_blk, En), lambda b: (b, 0)),
            ),
            compiler_params=pltpu.CompilerParams(dimension_semantics=("parallel",)),
        )

    try:
        out2 = build(_PREC)(*inputs)
    except Exception:
        # Fallback for Mosaic builds that only accept DEFAULT/HIGHEST matmul precision.
        out2 = build(jax.lax.Precision.HIGHEST)(*inputs)

    return out2.reshape(Bn, Nn, En)


def _ref_forward(x, e, params, mbias=None):
    """Pure-JAX reference replicating the PyTorch forward (pre-norm path)."""
    g1, be1, g2, be2, wqkv_t, wekv, bekv, wprj_t, bprj, w1_t, b1, w2_t, b2 = params
    Bn, Nn, En = x.shape

    def ln(z, g, bta):
        mu = z.mean(-1, keepdims=True)
        var = ((z - mu) ** 2).mean(-1, keepdims=True)
        return (z - mu) / jnp.sqrt(var + LN_EPS) * g[0] + bta[0]

    xn = ln(x, g1, be1)
    qkv = jnp.matmul(xn, wqkv_t, precision=_REF_PREC)                     # (B, N, 3HD)
    q = qkv[..., :HD].reshape(Bn, Nn, H, D)
    k = qkv[..., HD:2 * HD].reshape(Bn, Nn, H, D)
    v = qkv[..., 2 * HD:].reshape(Bn, Nn, H, D)
    ekv = e[..., None] * wekv[0] + bekv[0]                                # (B, N, M, 2HD)
    ekv = jnp.where(ekv >= 0, ekv, NEG_SLOPE * ekv)
    ekm = ekv[..., :HD].reshape(Bn, Nn, Nn, H, D)
    evm = ekv[..., HD:].reshape(Bn, Nn, Nn, H, D)
    dots = jnp.einsum('bnhd,bnmhd->bhnm', q, k[:, :, None] + ekm, precision=_REF_PREC)
    if mbias is not None:
        dots = dots + mbias[:, None]
    dots = dots / math.sqrt(D)
    attn = jax.nn.softmax(dots, axis=-1)
    hat = jnp.einsum('bhnm,bnmhd->bnhd', attn, v[:, :, None] + evm,
                     precision=_REF_PREC).reshape(Bn, Nn, HD)
    x = x + jnp.matmul(hat, wprj_t, precision=_REF_PREC) + bprj[0]
    xn2 = ln(x, g2, be2)
    h1 = jnp.matmul(xn2, w1_t, precision=_REF_PREC) + b1[0]
    h1 = 0.5 * h1 * (1.0 + jax.lax.erf(h1 / math.sqrt(2.0)))              # torch-exact erf GELU
    return x + jnp.matmul(h1, w2_t, precision=_REF_PREC) + b2[0]


if __name__ == "__main__":
    key = jax.random.PRNGKey(0)
    kx, ke, kp = jax.random.split(key, 3)
    x = jax.random.normal(kx, (B, N, E), jnp.float32)
    e = jax.random.uniform(ke, (B, N, N), jnp.float32)   # scalar edge weights, M == N
    params = init_params(kp)
    packed = pack_params(params, num_heads=H)

    # unmasked path (no mask-bias operand compiled in at all)
    out = jax.block_until_ready(edge_weighted_transformer_layer(x, e, packed, mask=None))
    assert out.shape == (B, N, E)
    ref = _ref_forward(x, e, params, None)
    err = float(jnp.max(jnp.abs(out - ref)))
    assert jnp.allclose(out, ref, atol=1e-3, rtol=1e-3), f"unmasked max abs err {err}"

    # masked path (keep the diagonal unmasked so no row is fully masked)
    mask = (jax.random.uniform(jax.random.PRNGKey(1), (B, N, N)) > 0.7)
    mask = mask & (~jnp.eye(N, dtype=bool))[None]
    out_m = jax.block_until_ready(edge_weighted_transformer_layer(x, e, packed, mask=mask))
    mbias = jnp.where(mask, -jnp.inf, 0.0).astype(jnp.float32)
    ref_m = _ref_forward(x, e, params, mbias)
    err_m = float(jnp.max(jnp.abs(out_m - ref_m)))
    assert jnp.allclose(out_m, ref_m, atol=1e-3, rtol=1e-3), f"masked max abs err {err_m}"

    print("KERNEL_OK")
</pallas_src>

<mosaic_0001>
module attributes {stable_mosaic.version = 11 : i64} {
  func.func @kernel(%arg0: i32, %arg1: memref<16x32xf32, #tpu.memory_space<vmem>>, %arg2: memref<128x1xf32, #tpu.memory_space<vmem>>, %arg3: memref<96x32xf32, #tpu.memory_space<vmem>>, %arg4: memref<32x32xf32, #tpu.memory_space<vmem>>, %arg5: memref<32x64xf32, #tpu.memory_space<vmem>>, %arg6: memref<64x32xf32, #tpu.memory_space<vmem>>, %arg7: memref<11x64xf32, #tpu.memory_space<vmem>>, %arg8: memref<32x4xf32, #tpu.memory_space<vmem>>, %arg9: memref<4x32xf32, #tpu.memory_space<vmem>>, %arg10: memref<16x32xf32, #tpu.memory_space<vmem>>) attributes {dimension_semantics = [#tpu.dimension_semantics<parallel>], iteration_bounds = array<i64: 1>, scalar_prefetch = 0 : i64, scratch_operands = 0 : i64, tpu.core_type = #tpu.core_type<tc>, window_params = [{transform_indices = @transform_0, window_bounds = array<i64: 16, 32>}, {transform_indices = @transform_1, window_bounds = array<i64: 128, 1>}, {pipeline_mode = #tpu.pipeline_mode<synchronous>, transform_indices = @transform_2, window_bounds = array<i64: 96, 32>}, {pipeline_mode = #tpu.pipeline_mode<synchronous>, transform_indices = @transform_3, window_bounds = array<i64: 32, 32>}, {pipeline_mode = #tpu.pipeline_mode<synchronous>, transform_indices = @transform_4, window_bounds = array<i64: 32, 64>}, {pipeline_mode = #tpu.pipeline_mode<synchronous>, transform_indices = @transform_5, window_bounds = array<i64: 64, 32>}, {pipeline_mode = #tpu.pipeline_mode<synchronous>, transform_indices = @transform_6, window_bounds = array<i64: 11, 64>}, {pipeline_mode = #tpu.pipeline_mode<synchronous>, transform_indices = @transform_7, window_bounds = array<i64: 32, 4>}, {pipeline_mode = #tpu.pipeline_mode<synchronous>, transform_indices = @transform_8, window_bounds = array<i64: 4, 32>}, {transform_indices = @transform_9, window_bounds = array<i64: 16, 32>}]} {
    %c0 = arith.constant 0 : index
    %c0_0 = arith.constant 0 : index
    %0 = vector.load %arg1[%c0, %c0_0] : memref<16x32xf32, #tpu.memory_space<vmem>>, vector<16x32xf32>
    %c0_1 = arith.constant 0 : index
    %c0_2 = arith.constant 0 : index
    %1 = vector.load %arg7[%c0_1, %c0_2] : memref<11x64xf32, #tpu.memory_space<vmem>>, vector<1x32xf32>
    %c1 = arith.constant 1 : index
    %c0_3 = arith.constant 0 : index
    %2 = vector.load %arg7[%c1, %c0_3] : memref<11x64xf32, #tpu.memory_space<vmem>>, vector<1x32xf32>
    %cst = arith.constant dense<0.000000e+00> : vector<16xf32>
    %3 = vector.multi_reduction <add>, %0, %cst [1] : vector<16x32xf32> to vector<16xf32>
    %4 = vector.shape_cast %3 : vector<16xf32> to vector<16x1xf32>
    %cst_4 = arith.constant 3.200000e+01 : f32
    %5 = vector.broadcast %cst_4 : f32 to vector<16x1xf32>
    %6 = arith.divf %4, %5 : vector<16x1xf32>
    %7 = vector.broadcast %6 : vector<16x1xf32> to vector<16x32xf32>
    %8 = arith.subf %0, %7 : vector<16x32xf32>
    %9 = arith.mulf %8, %8 : vector<16x32xf32>
    %cst_5 = arith.constant dense<0.000000e+00> : vector<16xf32>
    %10 = vector.multi_reduction <add>, %9, %cst_5 [1] : vector<16x32xf32> to vector<16xf32>
    %11 = vector.shape_cast %10 : vector<16xf32> to vector<16x1xf32>
    %cst_6 = arith.constant 3.200000e+01 : f32
    %12 = vector.broadcast %cst_6 : f32 to vector<16x1xf32>
    %13 = arith.divf %11, %12 : vector<16x1xf32>
    %14 = vector.broadcast %6 : vector<16x1xf32> to vector<16x32xf32>
    %15 = arith.subf %0, %14 : vector<16x32xf32>
    %cst_7 = arith.constant 9.99999974E-6 : f32
    %16 = vector.broadcast %cst_7 : f32 to vector<16x1xf32>
    %17 = arith.addf %13, %16 : vector<16x1xf32>
    %18 = math.rsqrt %17 : vector<16x1xf32>
    %19 = vector.broadcast %18 : vector<16x1xf32> to vector<16x32xf32>
    %20 = arith.mulf %15, %19 : vector<16x32xf32>
    %21 = vector.broadcast %1 : vector<1x32xf32> to vector<16x32xf32>
    %22 = arith.mulf %20, %21 : vector<16x32xf32>
    %23 = vector.broadcast %2 : vector<1x32xf32> to vector<16x32xf32>
    %24 = arith.addf %22, %23 : vector<16x32xf32>
    %c0_8 = arith.constant 0 : index
    %c0_9 = arith.constant 0 : index
    %25 = vector.load %arg3[%c0_8, %c0_9] : memref<96x32xf32, #tpu.memory_space<vmem>>, vector<32x32xf32>
    %cst_10 = arith.constant dense<0.000000e+00> : vector<16x32xf32>
    %26 = tpu.matmul %24, %25, %cst_10 {dimension_numbers = #tpu.dot_dimension_numbers<[1], [0], [0], [1], [0, 0, 1, 1], [], []>, precision = #tpu.contract_precision<fp32>} : vector<16x32xf32>, vector<32x32xf32>, vector<16x32xf32> -> vector<16x32xf32>
    %c32 = arith.constant 32 : index
    %c0_11 = arith.constant 0 : index
    %27 = vector.load %arg3[%c32, %c0_11] : memref<96x32xf32, #tpu.memory_space<vmem>>, vector<32x32xf32>
    %cst_12 = arith.constant dense<0.000000e+00> : vector<16x32xf32>
    %28 = tpu.matmul %24, %27, %cst_12 {dimension_numbers = #tpu.dot_dimension_numbers<[1], [0], [0], [1], [0, 0, 1, 1], [], []>, precision = #tpu.contract_precision<fp32>} : vector<16x32xf32>, vector<32x32xf32>, vector<16x32xf32> -> vector<16x32xf32>
    %c64 = arith.constant 64 : index
    %c0_13 = arith.constant 0 : index
    %29 = vector.load %arg3[%c64, %c0_13] : memref<96x32xf32, #tpu.memory_space<vmem>>, vector<32x32xf32>
    %cst_14 = arith.constant dense<0.000000e+00> : vector<16x32xf32>
    %30 = tpu.matmul %24, %29, %cst_14 {dimension_numbers = #tpu.dot_dimension_numbers<[1], [0], [0], [1], [0, 0, 1, 1], [], []>, precision = #tpu.contract_precision<fp32>} : vector<16x32xf32>, vector<32x32xf32>, vector<16x32xf32> -> vector<16x32xf32>
    %c0_15 = arith.constant 0 : index
    %c0_16 = arith.constant 0 : index
    %31 = vector.load %arg2[%c0_15, %c0_16] : memref<128x1xf32, #tpu.memory_space<vmem>>, vector<128x1xf32>
    %c4 = arith.constant 4 : index
    %c0_17 = arith.constant 0 : index
    %32 = vector.load %arg7[%c4, %c0_17] : memref<11x64xf32, #tpu.memory_space<vmem>>, vector<1x32xf32>
    %33 = vector.broadcast %31 : vector<128x1xf32> to vector<128x32xf32>
    %34 = vector.broadcast %32 : vector<1x32xf32> to vector<128x32xf32>
    %35 = arith.mulf %33, %34 : vector<128x32xf32>
    %c5 = arith.constant 5 : index
    %c0_18 = arith.constant 0 : index
    %36 = vector.load %arg7[%c5, %c0_18] : memref<11x64xf32, #tpu.memory_space<vmem>>, vector<1x32xf32>
    %37 = vector.broadcast %36 : vector<1x32xf32> to vector<128x32xf32>
    %38 = arith.addf %35, %37 : vector<128x32xf32>
    %cst_19 = arith.constant 0.000000e+00 : f32
    %39 = vector.broadcast %cst_19 : f32 to vector<128x32xf32>
    %40 = arith.cmpf oge, %38, %39 : vector<128x32xf32>
    %cst_20 = arith.constant 0.00999999977 : f32
    %41 = vector.broadcast %cst_20 : f32 to vector<128x32xf32>
    %42 = arith.mulf %41, %38 : vector<128x32xf32>
    %43 = arith.select %40, %38, %42 : vector<128x32xi1>, vector<128x32xf32>
    %c6 = arith.constant 6 : index
    %c0_21 = arith.constant 0 : index
    %44 = vector.load %arg7[%c6, %c0_21] : memref<11x64xf32, #tpu.memory_space<vmem>>, vector<1x32xf32>
    %45 = vector.broadcast %31 : vector<128x1xf32> to vector<128x32xf32>
    %46 = vector.broadcast %44 : vector<1x32xf32> to vector<128x32xf32>
    %47 = arith.mulf %45, %46 : vector<128x32xf32>
    %c7 = arith.constant 7 : index
    %c0_22 = arith.constant 0 : index
    %48 = vector.load %arg7[%c7, %c0_22] : memref<11x64xf32, #tpu.memory_space<vmem>>, vector<1x32xf32>
    %49 = vector.broadcast %48 : vector<1x32xf32> to vector<128x32xf32>
    %50 = arith.addf %47, %49 : vector<128x32xf32>
    %cst_23 = arith.constant 0.000000e+00 : f32
    %51 = vector.broadcast %cst_23 : f32 to vector<128x32xf32>
    %52 = arith.cmpf oge, %50, %51 : vector<128x32xf32>
    %cst_24 = arith.constant 0.00999999977 : f32
    %53 = vector.broadcast %cst_24 : f32 to vector<128x32xf32>
    %54 = arith.mulf %53, %50 : vector<128x32xf32>
    %55 = arith.select %52, %50, %54 : vector<128x32xi1>, vector<128x32xf32>
    %56 = vector.shape_cast %26 : vector<16x32xf32> to vector<16x1x32xf32>
    %57 = vector.shape_cast %28 : vector<16x32xf32> to vector<16x1x32xf32>
    %58 = vector.shape_cast %43 : vector<128x32xf32> to vector<16x8x32xf32>
    %59 = vector.broadcast %57 : vector<16x1x32xf32> to vector<16x8x32xf32>
    %60 = arith.addf %59, %58 : vector<16x8x32xf32>
    %61 = vector.broadcast %56 : vector<16x1x32xf32> to vector<16x8x32xf32>
    %62 = arith.mulf %61, %60 : vector<16x8x32xf32>
    %63 = vector.shape_cast %62 : vector<16x8x32xf32> to vector<128x32xf32>
    %c0_25 = arith.constant 0 : index
    %c0_26 = arith.constant 0 : index
    %64 = vector.load %arg8[%c0_25, %c0_26] : memref<32x4xf32, #tpu.memory_space<vmem>>, vector<32x4xf32>
    %cst_27 = arith.constant dense<0.000000e+00> : vector<128x4xf32>
    %65 = tpu.matmul %63, %64, %cst_27 {dimension_numbers = #tpu.dot_dimension_numbers<[1], [0], [0], [1], [0, 0, 1, 1], [], []>, precision = #tpu.contract_precision<fp32>} : vector<128x32xf32>, vector<32x4xf32>, vector<128x4xf32> -> vector<128x4xf32>
    %66 = vector.shape_cast %65 : vector<128x4xf32> to vector<16x8x4xf32>
    %cst_28 = arith.constant dense<0xFF800000> : vector<16x4xf32>
    %67 = vector.multi_reduction <maximumf>, %66, %cst_28 [1] : vector<16x8x4xf32> to vector<16x4xf32>
    %68 = vector.shape_cast %67 : vector<16x4xf32> to vector<16x1x4xf32>
    %69 = vector.broadcast %68 : vector<16x1x4xf32> to vector<16x8x4xf32>
    %70 = arith.subf %66, %69 : vector<16x8x4xf32>
    %71 = math.exp %70 : vector<16x8x4xf32>
    %cst_29 = arith.constant dense<0.000000e+00> : vector<16x4xf32>
    %72 = vector.multi_reduction <add>, %71, %cst_29 [1] : vector<16x8x4xf32> to vector<16x4xf32>
    %73 = vector.shape_cast %72 : vector<16x4xf32> to vector<16x1x4xf32>
    %74 = tpu.reciprocal %73 {approx = true} : vector<16x1x4xf32> -> vector<16x1x4xf32>
    %75 = arith.mulf %73, %74 : vector<16x1x4xf32>
    %cst_30 = arith.constant 2.000000e+00 : f32
    %76 = vector.broadcast %cst_30 : f32 to vector<16x1x4xf32>
    %77 = arith.subf %76, %75 : vector<16x1x4xf32>
    %78 = arith.mulf %74, %77 : vector<16x1x4xf32>
    %79 = vector.broadcast %78 : vector<16x1x4xf32> to vector<16x8x4xf32>
    %80 = arith.mulf %71, %79 : vector<16x8x4xf32>
    %81 = vector.shape_cast %80 : vector<16x8x4xf32> to vector<128x4xf32>
    %c0_31 = arith.constant 0 : index
    %c0_32 = arith.constant 0 : index
    %82 = vector.load %arg9[%c0_31, %c0_32] : memref<4x32xf32, #tpu.memory_space<vmem>>, vector<4x32xf32>
    %cst_33 = arith.constant dense<0.000000e+00> : vector<128x32xf32>
    %83 = tpu.matmul %81, %82, %cst_33 {dimension_numbers = #tpu.dot_dimension_numbers<[1], [0], [0], [1], [0, 0, 1, 1], [], []>, precision = #tpu.contract_precision<fp32>} : vector<128x4xf32>, vector<4x32xf32>, vector<128x32xf32> -> vector<128x32xf32>
    %84 = vector.shape_cast %83 : vector<128x32xf32> to vector<16x8x32xf32>
    %85 = vector.shape_cast %30 : vector<16x32xf32> to vector<16x1x32xf32>
    %86 = vector.shape_cast %55 : vector<128x32xf32> to vector<16x8x32xf32>
    %87 = vector.broadcast %85 : vector<16x1x32xf32> to vector<16x8x32xf32>
    %88 = arith.addf %87, %86 : vector<16x8x32xf32>
    %89 = arith.mulf %84, %88 : vector<16x8x32xf32>
    %cst_34 = arith.constant dense<0.000000e+00> : vector<16x32xf32>
    %90 = vector.multi_reduction <add>, %89, %cst_34 [1] : vector<16x8x32xf32> to vector<16x32xf32>
    %c0_35 = arith.constant 0 : index
    %c0_36 = arith.constant 0 : index
    %91 = vector.load %arg4[%c0_35, %c0_36] : memref<32x32xf32, #tpu.memory_space<vmem>>, vector<32x32xf32>
    %cst_37 = arith.constant dense<0.000000e+00> : vector<16x32xf32>
    %92 = tpu.matmul %90, %91, %cst_37 {dimension_numbers = #tpu.dot_dimension_numbers<[1], [0], [0], [1], [0, 0, 1, 1], [], []>, precision = #tpu.contract_precision<fp32>} : vector<16x32xf32>, vector<32x32xf32>, vector<16x32xf32> -> vector<16x32xf32>
    %93 = arith.addf %0, %92 : vector<16x32xf32>
    %c8 = arith.constant 8 : index
    %c0_38 = arith.constant 0 : index
    %94 = vector.load %arg7[%c8, %c0_38] : memref<11x64xf32, #tpu.memory_space<vmem>>, vector<1x32xf32>
    %95 = vector.broadcast %94 : vector<1x32xf32> to vector<16x32xf32>
    %96 = arith.addf %93, %95 : vector<16x32xf32>
    %c2 = arith.constant 2 : index
    %c0_39 = arith.constant 0 : index
    %97 = vector.load %arg7[%c2, %c0_39] : memref<11x64xf32, #tpu.memory_space<vmem>>, vector<1x32xf32>
    %c3 = arith.constant 3 : index
    %c0_40 = arith.constant 0 : index
    %98 = vector.load %arg7[%c3, %c0_40] : memref<11x64xf32, #tpu.memory_space<vmem>>, vector<1x32xf32>
    %cst_41 = arith.constant dense<0.000000e+00> : vector<16xf32>
    %99 = vector.multi_reduction <add>, %96, %cst_41 [1] : vector<16x32xf32> to vector<16xf32>
    %100 = vector.shape_cast %99 : vector<16xf32> to vector<16x1xf32>
    %cst_42 = arith.constant 3.200000e+01 : f32
    %101 = vector.broadcast %cst_42 : f32 to vector<16x1xf32>
    %102 = arith.divf %100, %101 : vector<16x1xf32>
    %103 = vector.broadcast %102 : vector<16x1xf32> to vector<16x32xf32>
    %104 = arith.subf %96, %103 : vector<16x32xf32>
    %105 = arith.mulf %104, %104 : vector<16x32xf32>
    %cst_43 = arith.constant dense<0.000000e+00> : vector<16xf32>
    %106 = vector.multi_reduction <add>, %105, %cst_43 [1] : vector<16x32xf32> to vector<16xf32>
    %107 = vector.shape_cast %106 : vector<16xf32> to vector<16x1xf32>
    %cst_44 = arith.constant 3.200000e+01 : f32
    %108 = vector.broadcast %cst_44 : f32 to vector<16x1xf32>
    %109 = arith.divf %107, %108 : vector<16x1xf32>
    %110 = vector.broadcast %102 : vector<16x1xf32> to vector<16x32xf32>
    %111 = arith.subf %96, %110 : vector<16x32xf32>
    %cst_45 = arith.constant 9.99999974E-6 : f32
    %112 = vector.broadcast %cst_45 : f32 to vector<16x1xf32>
    %113 = arith.addf %109, %112 : vector<16x1xf32>
    %114 = math.rsqrt %113 : vector<16x1xf32>
    %115 = vector.broadcast %114 : vector<16x1xf32> to vector<16x32xf32>
    %116 = arith.mulf %111, %115 : vector<16x32xf32>
    %117 = vector.broadcast %97 : vector<1x32xf32> to vector<16x32xf32>
    %118 = arith.mulf %116, %117 : vector<16x32xf32>
    %119 = vector.broadcast %98 : vector<1x32xf32> to vector<16x32xf32>
    %120 = arith.addf %118, %119 : vector<16x32xf32>
    %c0_46 = arith.constant 0 : index
    %c0_47 = arith.constant 0 : index
    %121 = vector.load %arg5[%c0_46, %c0_47] : memref<32x64xf32, #tpu.memory_space<vmem>>, vector<32x64xf32>
    %cst_48 = arith.constant dense<0.000000e+00> : vector<16x64xf32>
    %122 = tpu.matmul %120, %121, %cst_48 {dimension_numbers = #tpu.dot_dimension_numbers<[1], [0], [0], [1], [0, 0, 1, 1], [], []>, precision = #tpu.contract_precision<fp32>} : vector<16x32xf32>, vector<32x64xf32>, vector<16x64xf32> -> vector<16x64xf32>
    %c10 = arith.constant 10 : index
    %c0_49 = arith.constant 0 : index
    %123 = vector.load %arg7[%c10, %c0_49] : memref<11x64xf32, #tpu.memory_space<vmem>>, vector<1x64xf32>
    %124 = vector.broadcast %123 : vector<1x64xf32> to vector<16x64xf32>
    %125 = arith.addf %122, %124 : vector<16x64xf32>
    %cst_50 = arith.constant 5.000000e-01 : f32
    %126 = vector.broadcast %cst_50 : f32 to vector<16x64xf32>
    %127 = arith.mulf %126, %125 : vector<16x64xf32>
    %cst_51 = arith.constant 0.707106769 : f32
    %128 = vector.broadcast %cst_51 : f32 to vector<16x64xf32>
    %129 = arith.mulf %125, %128 : vector<16x64xf32>
    %130 = math.absf %129 : vector<16x64xf32>
    %cst_52 = arith.constant 0.327591091 : f32
    %131 = vector.broadcast %cst_52 : f32 to vector<16x64xf32>
    %132 = arith.mulf %131, %130 : vector<16x64xf32>
    %cst_53 = arith.constant 1.000000e+00 : f32
    %133 = vector.broadcast %cst_53 : f32 to vector<16x64xf32>
    %134 = arith.addf %133, %132 : vector<16x64xf32>
    %cst_54 = arith.constant 1.000000e+00 : f32
    %135 = vector.broadcast %cst_54 : f32 to vector<16x64xf32>
    %136 = arith.divf %135, %134 : vector<16x64xf32>
    %cst_55 = arith.constant 1.06140542 : f32
    %137 = vector.broadcast %cst_55 : f32 to vector<16x64xf32>
    %138 = arith.mulf %137, %136 : vector<16x64xf32>
    %cst_56 = arith.constant -1.45315206 : f32
    %139 = vector.broadcast %cst_56 : f32 to vector<16x64xf32>
    %140 = arith.addf %138, %139 : vector<16x64xf32>
    %141 = arith.mulf %140, %136 : vector<16x64xf32>
    %cst_57 = arith.constant 1.42141378 : f32
    %142 = vector.broadcast %cst_57 : f32 to vector<16x64xf32>
    %143 = arith.addf %141, %142 : vector<16x64xf32>
    %144 = arith.mulf %143, %136 : vector<16x64xf32>
    %cst_58 = arith.constant -0.284496725 : f32
    %145 = vector.broadcast %cst_58 : f32 to vector<16x64xf32>
    %146 = arith.addf %144, %145 : vector<16x64xf32>
    %147 = arith.mulf %146, %136 : vector<16x64xf32>
    %cst_59 = arith.constant 0.254829586 : f32
    %148 = vector.broadcast %cst_59 : f32 to vector<16x64xf32>
    %149 = arith.addf %147, %148 : vector<16x64xf32>
    %150 = arith.mulf %149, %136 : vector<16x64xf32>
    %cst_60 = arith.constant 0.000000e+00 : f32
    %151 = vector.broadcast %cst_60 : f32 to vector<16x64xf32>
    %152 = arith.subf %151, %130 : vector<16x64xf32>
    %153 = arith.mulf %152, %130 : vector<16x64xf32>
    %154 = math.exp %153 : vector<16x64xf32>
    %155 = arith.mulf %150, %154 : vector<16x64xf32>
    %cst_61 = arith.constant 1.000000e+00 : f32
    %156 = vector.broadcast %cst_61 : f32 to vector<16x64xf32>
    %157 = arith.subf %156, %155 : vector<16x64xf32>
    %cst_62 = arith.constant 0.000000e+00 : f32
    %158 = vector.broadcast %cst_62 : f32 to vector<16x64xf32>
    %159 = arith.cmpf olt, %129, %158 : vector<16x64xf32>
    %cst_63 = arith.constant 0.000000e+00 : f32
    %160 = vector.broadcast %cst_63 : f32 to vector<16x64xf32>
    %161 = arith.subf %160, %157 : vector<16x64xf32>
    %162 = arith.select %159, %161, %157 : vector<16x64xi1>, vector<16x64xf32>
    %cst_64 = arith.constant 1.000000e+00 : f32
    %163 = vector.broadcast %cst_64 : f32 to vector<16x64xf32>
    %164 = arith.addf %163, %162 : vector<16x64xf32>
    %165 = arith.mulf %127, %164 : vector<16x64xf32>
    %c0_65 = arith.constant 0 : index
    %c0_66 = arith.constant 0 : index
    %166 = vector.load %arg6[%c0_65, %c0_66] : memref<64x32xf32, #tpu.memory_space<vmem>>, vector<64x32xf32>
    %cst_67 = arith.constant dense<0.000000e+00> : vector<16x32xf32>
    %167 = tpu.matmul %165, %166, %cst_67 {dimension_numbers = #tpu.dot_dimension_numbers<[1], [0], [0], [1], [0, 0, 1, 1], [], []>, precision = #tpu.contract_precision<fp32>} : vector<16x64xf32>, vector<64x32xf32>, vector<16x32xf32> -> vector<16x32xf32>
    %c9 = arith.constant 9 : index
    %c0_68 = arith.constant 0 : index
    %168 = vector.load %arg7[%c9, %c0_68] : memref<11x64xf32, #tpu.memory_space<vmem>>, vector<1x32xf32>
    %169 = vector.broadcast %168 : vector<1x32xf32> to vector<16x32xf32>
    %170 = arith.addf %167, %169 : vector<16x32xf32>
    %171 = arith.addf %96, %170 : vector<16x32xf32>
    %c0_69 = arith.constant 0 : index
    %c0_70 = arith.constant 0 : index
    %172 = vector.load %arg10[%c0_69, %c0_70] : memref<16x32xf32, #tpu.memory_space<vmem>>, vector<16x32xf32>
    tpu.vector_store %arg10[%c0_69, %c0_70], %171 {strides = array<i32>} : memref<16x32xf32, #tpu.memory_space<vmem>>, vector<16x32xf32>,
    return
  }
  func.func @transform_0(%arg0: i32) -> (i32, i32) {
    %c0_i32 = arith.constant 0 : i32
    %c0_i32_0 = arith.constant 0 : i32
    return %arg0, %c0_i32 : i32, i32
  }
  func.func @transform_1(%arg0: i32) -> (i32, i32) {
    %c0_i32 = arith.constant 0 : i32
    %c0_i32_0 = arith.constant 0 : i32
    return %arg0, %c0_i32 : i32, i32
  }
  func.func @transform_2(%arg0: i32) -> (i32, i32) {
    %c0_i32 = arith.constant 0 : i32
    %c0_i32_0 = arith.constant 0 : i32
    %c0_i32_1 = arith.constant 0 : i32
    return %c0_i32, %c0_i32_0 : i32, i32
  }
  func.func @transform_3(%arg0: i32) -> (i32, i32) {
    %c0_i32 = arith.constant 0 : i32
    %c0_i32_0 = arith.constant 0 : i32
    %c0_i32_1 = arith.constant 0 : i32
    return %c0_i32, %c0_i32_0 : i32, i32
  }
  func.func @transform_4(%arg0: i32) -> (i32, i32) {
    %c0_i32 = arith.constant 0 : i32
    %c0_i32_0 = arith.constant 0 : i32
    %c0_i32_1 = arith.constant 0 : i32
    return %c0_i32, %c0_i32_0 : i32, i32
  }
  func.func @transform_5(%arg0: i32) -> (i32, i32) {
    %c0_i32 = arith.constant 0 : i32
    %c0_i32_0 = arith.constant 0 : i32
    %c0_i32_1 = arith.constant 0 : i32
    return %c0_i32, %c0_i32_0 : i32, i32
  }
  func.func @transform_6(%arg0: i32) -> (i32, i32) {
    %c0_i32 = arith.constant 0 : i32
    %c0_i32_0 = arith.constant 0 : i32
    %c0_i32_1 = arith.constant 0 : i32
    return %c0_i32, %c0_i32_0 : i32, i32
  }
  func.func @transform_7(%arg0: i32) -> (i32, i32) {
    %c0_i32 = arith.constant 0 : i32
    %c0_i32_0 = arith.constant 0 : i32
    %c0_i32_1 = arith.constant 0 : i32
    return %c0_i32, %c0_i32_0 : i32, i32
  }
  func.func @transform_8(%arg0: i32) -> (i32, i32) {
    %c0_i32 = arith.constant 0 : i32
    %c0_i32_0 = arith.constant 0 : i32
    %c0_i32_1 = arith.constant 0 : i32
    return %c0_i32, %c0_i32_0 : i32, i32
  }
  func.func @transform_9(%arg0: i32) -> (i32, i32) {
    %c0_i32 = arith.constant 0 : i32
    %c0_i32_0 = arith.constant 0 : i32
    return %arg0, %c0_i32 : i32, i32
  }
}

</mosaic_0001>

<bundles_post_ra>
// kernel: tpu_custom_call.1
= control target key start
LH: loop header
LB: loop body
LE: loop exit
PB: predicated region body
PF: predicated region fallthrough
CT: control target
= control target key end

     0   :  { %vm37_vm0 = vcmask 261120   ;;  %s11116_s0 = inlined_call_operand.vmem [shape: f32[16,32], index: 0, kind: input, shape index: {}]   ;;  %s11117_s1 = inlined_call_operand.vmem [shape: f32[128,1], index: 1, kind: input, shape index: {}]   ;;  %s11118_s2 = inlined_call_operand.vmem [shape: f32[96,32], index: 2, kind: input, shape index: {}]   ;;  %s11119_s3 = inlined_call_operand.vmem [shape: f32[32,32], index: 3, kind: input, shape index: {}]   ;;  %s11120_s4 = inlined_call_operand.vmem [shape: f32[32,64], index: 4, kind: input, shape index: {}]   ;;  %s11121_s5 = inlined_call_operand.vmem [shape: f32[64,32], index: 5, kind: input, shape index: {}]   ;;  %s11122_s6 = inlined_call_operand.vmem [shape: f32[11,64], index: 6, kind: input, shape index: {}]   ;;  %s11123_s7 = inlined_call_operand.vmem [shape: f32[32,4], index: 7, kind: input, shape index: {}]   ;;  %s11124_s8 = inlined_call_operand.vmem [shape: f32[4,32], index: 8, kind: input, shape index: {}]   ;;  %s11125_s9 = inlined_call_operand.hbm [shape: f32[16,32], index: 9, kind: output, shape index: {}]  }
   0x1   :  { %v33_v0 = vld [vmem:[%s11116_s0] sm:$0xff]  ;;  %v34_v1 = vld [vmem:[%s11116_s0 + $0x8] sm:$0xff] }
   0x2   :  { %14 = vsyncpa [#allocation3], 0  ;;  %v38_v2 = vsel %vm37_vm0, %v33_v0, 0.0  ;;  %v41_v3 = vsel %vm37_vm0, %v34_v1, 0.0  ;;  %v77_v14 = vld [vmem:[%s11118_s2] sm:$0xff]  ;;  %v78_v15 = vld [vmem:[%s11118_s2 + $0x8] sm:$0xff] }
   0x3   :  { %39 = vadd.xlane.f32.xlu0 %v38_v2  ;;  %v88_v16 = vand.u32 4294901760, %v77_v14  ;;  %v91_v17 = vand.u32 4294901760, %v78_v15  ;;  %v615_v18 = vld [vmem:[%s11118_s2 + $0x20] sm:$0xff]  ;;  %v616_v19 = vld [vmem:[%s11118_s2 + $0x28] sm:$0xff]  ;;  %v79_v20 = vld [vmem:[%s11118_s2 + $0x10] sm:$0xff]  ;;  %s9183_s19 = smov [#allocation2]  }
   0x4   :  { %v620_v21 = vand.u32 4294901760, %v615_v18  ;;  %v623_v22 = vand.u32 4294901760, %v616_v19  ;;  %v80_v23 = vld [vmem:[%s11118_s2 + $0x18] sm:$0xff]  ;;  %v94_v24 = vand.u32 4294901760, %v79_v20  ;;  %v617_v25 = vld [vmem:[%s11118_s2 + $0x30] sm:$0xff]  ;;  %s7178_s20 = sshll.u32 %s9183_s19, 4  ;;  %s7179_s20 = int_to_ptr.vmem [resolvable:$true] %s7178_s20 }
   0x5   :  { %v618_v26 = vld [vmem:[%s11118_s2 + $0x38] sm:$0xff]  ;;  %v9278_v27 = vpack.c.bf16 %v91_v17, %v88_v16  ;;  %v97_v28 = vand.u32 4294901760, %v80_v23  ;;  %v626_v29 = vand.u32 4294901760, %v617_v25  ;;  %v178_v32 = vsub.f32 %v77_v14, %v88_v16  ;;  %s9157_s21 = scalar_lea.vmem %s7179_s20, 256  ;;  %p9162_p1 = scmp.lt.s32.totalorder %s7179_s20, %s7179_s20 }
   0x6   :  { %v629_v30 = vand.u32 4294901760, %v618_v26  ;;  %v9280_v31 = vpack.c.bf16 %v623_v22, %v620_v21  ;;  %v185_v33 = vsub.f32 %v78_v15, %v91_v17  ;;  %v710_v34 = vsub.f32 %v615_v18, %v620_v21  ;;  %v1692_v17 = vld [vmem:[%s11117_s1 + $0x68] sm:$0xff]  ;;  %v1693_v18 = vld [vmem:[%s11117_s1 + $0x70] sm:$0xff]  ;;  %v1679_v21 = vld [vmem:[%s11117_s1] sm:$0xff]  ;;  %p9158_p0 = scmp.ne.s32.totalorder %s7179_s20, %s9157_s21  ;;  %p9163_p2 = scmp.lt.s32.totalorder %s9157_s21, %s9157_s21 }
   0x7   :  { %42 = vadd.xlane.f32.xlu0 %v41_v3  ;;  %8455 = vmatprep.subr.bf16.mxu0 %v9278_v27  ;;  %v9283_v35 = vpack.c.bf16 %v97_v28, %v94_v24  ;;  %v717_v37 = vsub.f32 %v616_v19, %v623_v22  ;;  %v179_v38 = vand.u32 4294901760, %v178_v32  ;;  %v192_v45 = vsub.f32 %v79_v20, %v94_v24  ;;  %v1694_v19 = vld [vmem:[%s11117_s1 + $0x78] sm:$0xff]  ;;  %v1691_v20 = vld [vmem:[%s11117_s1 + $0x60] sm:$0xff] }
   0x8   :  { %v9285_v36 = vpack.c.bf16 %v629_v30, %v626_v29  ;;  %8503 = vmatprep.subr.bf16.mxu1 %v9280_v31  ;;  %8457 = vmatpush3.bf16.msra.mxu0 %v9278_v27  ;;  %v186_v39 = vand.u32 4294901760, %v185_v33  ;;  %v711_v40 = vand.u32 4294901760, %v710_v34  ;;  %v199_v47 = vsub.f32 %v80_v23, %v97_v28  ;;  %v1684_v23 = vld [vmem:[%s11117_s1 + $0x28] sm:$0xff]  ;;  %p9164_p3 = por %p9163_p2, %p9162_p1 }
   0x9   :  { %8505 = vmatpush3.bf16.msra.mxu1 %v9280_v31  ;;  %8459 = vmatprep.subr.bf16.mxu0 %v9283_v35  ;;  %v718_v41 = vand.u32 4294901760, %v717_v37  ;;  %v180_v42 = vsub.f32 %v178_v32, %v179_v38  ;;  %v724_v48 = vsub.f32 %v617_v25, %v626_v29  ;;  %v731_v49 = vsub.f32 %v618_v26, %v629_v30  ;;  %v1680_v26 = vld [vmem:[%s11117_s1 + $0x8] sm:$0xff]  ;;  %v1686_v29 = vld [vmem:[%s11117_s1 + $0x38] sm:$0xff] }
   0xa   :  { %8507 = vmatprep.subr.bf16.mxu1 %v9285_v36  ;;  %v187_v43 = vsub.f32 %v185_v33, %v186_v39  ;;  %v712_v44 = vsub.f32 %v710_v34, %v711_v40  ;;  %v193_v53 = vand.u32 4294901760, %v192_v45  ;;  %v200_v55 = vand.u32 4294901760, %v199_v47  ;;  %p9165_p4 = pnand %p9164_p3, %p9158_p0 }
   0xb   :  { %v719_v46 = vsub.f32 %v717_v37, %v718_v41  ;;  %v181_v50 = vand.u32 4294901760, %v180_v42  ;;  %v725_v56 = vand.u32 4294901760, %v724_v48  ;;  %v732_v57 = vand.u32 4294901760, %v731_v49 }
   0xc   :  { %8461 = vmatpush3.bf16.msra.mxu0 %v9283_v35  ;;  %v188_v51 = vand.u32 4294901760, %v187_v43  ;;  %v713_v52 = vand.u32 4294901760, %v712_v44  ;;  %v194_v59 = vsub.f32 %v192_v45, %v193_v53  ;;  %v201_v61 = vsub.f32 %v199_v47, %v200_v55  ;;  %v7190_v43 = vld [vmem:[%s11122_s6 + $0x1] ss:$0 sm:$0xff] }
   0xd   :  { %8509 = vmatpush3.bf16.msra.mxu1 %v9285_v36  ;;  %v720_v54 = vand.u32 4294901760, %v719_v46  ;;  %v726_v62 = vsub.f32 %v724_v48, %v725_v56  ;;  %v733_v63 = vsub.f32 %v731_v49, %v732_v57  ;;  %v9316_v14 = vpack.c.bf16 %v200_v55, %v193_v53  ;;  %v1685_v46 = vld [vmem:[%s11117_s1 + $0x30] sm:$0xff] }
   0xe   :  { %v9294_v58 = vpack.c.bf16 %v188_v51, %v181_v50  ;;  %v9318_v15 = vpack.c.bf16 %v732_v57, %v725_v56  ;;  %v9181_v16 = vmov 0   ;;  %v1689_v56 = vld [vmem:[%s11117_s1 + $0x50] sm:$0xff] }
   0xf   :  { %v9296_v60 = vpack.c.bf16 %v720_v54, %v713_v52  ;;  %v727_v2 = vand.u32 4294901760, %v726_v62  ;;  %v734_v3 = vand.u32 4294901760, %v733_v63  ;;  %9072 = vset.pattern.permute.xlu1 %v9181_v16  ;;  %9071 = vset.pattern.permute.xlu0 %v9181_v16 }
  0x10   :  { %8463 = vmatprep.subr.bf16.mxu0 %v9294_v58 }
  0x11   :  { %8511 = vmatprep.subr.bf16.mxu1 %v9296_v60 }
  0x1d   :  { %1758 = vperm.xlu0 %9071, %v1691_v20  }
  0x21   :  { %1723 = vperm.xlu0 %9071, %v1684_v23  }
  0x25   :  { %1733 = vperm.xlu0 %9071, %v1686_v29  }
  0x90   :  { %v40_v4 = vpop.xlane.xlu0 %39 }
  0x91   :  { %v45_v5 = vmul.f32 0.03125, %v40_v4 }
  0x93   :  { %v9244_v6 = vsub.f32 %v33_v0, %v45_v5  ;;  %v195_v0 = vand.u32 4294901760, %v194_v59  ;;  %v9302_v5 = vpack.c.bf16 %v734_v3, %v727_v2  ;;  %v1149_v3 = vld [vmem:[%s11118_s2 + $0x50] sm:$0xff] }
  0x94   :  { %v43_v7 = vpop.xlane.xlu0 %42 }
  0x95   :  { %v46_v8 = vmul.f32 0.03125, %v43_v7  ;;  %v49_v9 = vmul.f32 %v9244_v6, %v9244_v6  ;;  %v9304_v7 = vpack.c.bf16 %v185_v33, %v178_v32  ;;  %v1681_v33 = vld [vmem:[%s11117_s1 + $0x10] sm:$0xff] }
  0x97   :  { %v9248_v10 = vsub.f32 %v34_v1, %v46_v8  ;;  %v51_v11 = vsel %vm37_vm0, %v49_v9, 0.0  ;;  %v202_v1 = vand.u32 4294901760, %v201_v61  ;;  %v9306_v8 = vpack.c.bf16 %v717_v37, %v710_v34  ;;  %v1688_v34 = vld [vmem:[%s11117_s1 + $0x48] sm:$0xff]  ;;  %v1682_v37 = vld [vmem:[%s11117_s1 + $0x18] sm:$0xff] }
  0x98   :  { %52 = vadd.xlane.f32.xlu1 %v51_v11  ;;  %v9308_v9 = vpack.c.bf16 %v199_v47, %v192_v45  ;;  %v9310_v11 = vpack.c.bf16 %v731_v49, %v724_v48  ;;  %1743 = vperm.xlu0 %9071, %v1688_v34  }
  0x99   :  { %v50_v12 = vmul.f32 %v9248_v10, %v9248_v10  ;;  %v9300_v4 = vpack.c.bf16 %v202_v1, %v195_v0 }
  0x9b   :  { %v54_v13 = vsel %vm37_vm0, %v50_v12, 0.0  ;;  %v9312_v12 = vpack.c.bf16 %v186_v39, %v179_v38  ;;  %v1690_v38 = vld [vmem:[%s11117_s1 + $0x58] sm:$0xff] }
  0x9c   :  { %55 = vadd.xlane.f32.xlu1 %v54_v13  ;;  %v9314_v13 = vpack.c.bf16 %v718_v41, %v711_v40  ;;  %v7189_v40 = vld [vmem:[%s11122_s6] ss:$0 sm:$0xff]  ;;  %1753 = vperm.xlu0 %9071, %v1690_v38   ;;  %v2350_v38 = vld [vmem:[%s11123_s7 + $0x18] sm:$0xff] }
  0x9d   :  { %v1683_v41 = vld [vmem:[%s11117_s1 + $0x20] sm:$0xff] }
  0xad   :  { %1763 = vperm.xlu1 %9072, %v1692_v17  }
  0xb1   :  { %1768 = vperm.xlu1 %9072, %v1693_v18  }
  0xb5   :  { %1773 = vperm.xlu1 %9072, %v1694_v19  }
  0xb9   :  { %1698 = vperm.xlu1 %9072, %v1679_v21  }
  0xbd   :  { %1703 = vperm.xlu1 %9072, %v1680_v26  }
  0xc1   :  { %1708 = vperm.xlu1 %9072, %v1681_v33   ;;  %v2349_v33 = vld [vmem:[%s11123_s7 + $0x10] sm:$0xff] }
  0xc5   :  { %1713 = vperm.xlu1 %9072, %v1682_v37  }
  0xc9   :  { %1718 = vperm.xlu1 %9072, %v1683_v41  }
  0xcd   :  { %1728 = vperm.xlu1 %9072, %v1685_v46  }
 0x125   :  { %v53_v22 = vpop.xlane.xlu1 %52 }
 0x126   :  { %v57_v24 = vmul.f32 0.03125, %v53_v22 }
 0x128   :  { %v59_v25 = vadd.f32 1e-05, %v57_v24 }
 0x129   :  { %v56_v28 = vpop.xlane.xlu1 %55 }
 0x12a   :  { %9073 = vrsqrt.f32 %v59_v25  ;;  %v58_v30 = vmul.f32 0.03125, %v56_v28 }
 0x12c   :  { %v60_v32 = vadd.f32 1e-05, %v58_v30  ;;  %v2347_v30 = vld [vmem:[%s11123_s7] sm:$0xff] }
 0x12d   :  { %v2400_v34 = vand.u32 4294901760, %v2347_v30 }
 0x12e   :  { %9075 = vrsqrt.f32 %v60_v32  ;;  %v2348_v32 = vld [vmem:[%s11123_s7 + $0x8] sm:$0xff] }
 0x12f   :  { %v2403_v37 = vand.u32 4294901760, %v2348_v32 }
 0x131   :  { %v9505_v41 = vpack.c.bf16 %v2403_v37, %v2400_v34 }
 0x134   :  { %v9074_v39 = vpop.eup %9073 }
 0x135   :  { %v63_v42 = vmul.f32 %v9074_v39, %v9244_v6  ;;  %v1687_v6 = vld [vmem:[%s11117_s1 + $0x40] sm:$0xff]  ;;  %v2406_v39 = vand.u32 4294901760, %v2349_v33 }
 0x136   :  { %1738 = vperm.xlu1 %9072, %v1687_v6  }
 0x137   :  { %v69_v44 = vmul.f32 %v7189_v40, %v63_v42 }
 0x138   :  { %v9076_v45 = vpop.eup %9075 }
 0x139   :  { %v75_v47 = vadd.f32 %v7190_v43, %v69_v44  ;;  %v64_v48 = vmul.f32 %v9076_v45, %v9248_v10  ;;  %v9511_v44 = vsub.f32 %v2348_v32, %v2403_v37 }
 0x13a   :  { %1748 = vperm.xlu1 %9072, %v1689_v56  }
 0x13b   :  { %v70_v49 = vmul.f32 %v7189_v40, %v64_v48  ;;  %v82_v50 = vsel %vm37_vm0, %v75_v47, 0  ;;  %v2409_v40 = vand.u32 4294901760, %v2350_v38  ;;  %11176 = vst [vmem:[#allocation7_spill] sm:$0xff] %v9511_v44  ;;  %v11128_v46 = vand.u32 4294901760, %v9511_v44 }
 0x13c   :  { %v9371_v51 = vand.u32 4294901760, %v82_v50 }
 0x13d   :  { %v76_v52 = vadd.f32 %v7190_v43, %v70_v49  ;;  %v9507_v42 = vpack.c.bf16 %v2409_v40, %v2406_v39  ;;  %v9509_v43 = vsub.f32 %v2347_v30, %v2400_v34  ;;  %v2639_v48 = vsub.f32 %v9511_v44, %v11128_v46 }
 0x13e   :  { %v9377_v53 = vsub.f32 %v82_v50, %v9371_v51  ;;  %v9531_v6 = vsub.f32 %v2350_v38, %v2409_v40 }
 0x13f   :  { %v85_v54 = vsel %vm37_vm0, %v76_v52, 0  ;;  %11174 = vst [vmem:[#allocation5_spill] sm:$0xff] %v9507_v42  ;;  %11175 = vst [vmem:[#allocation6_spill] sm:$0xff] %v9509_v43  ;;  %v11129_v45 = vand.u32 4294901760, %v9509_v43  ;;  %v2640_v50 = vand.u32 4294901760, %v2639_v48 }
 0x140   :  { %v9381_v55 = vand.u32 4294901760, %v9377_v53  ;;  %v9383_v10 = vand.u32 4294901760, %v85_v54  ;;  %11178 = vst [vmem:[#allocation9_spill] sm:$0xff] %v9531_v6 }
 0x141   :  { %v2632_v47 = vsub.f32 %v9509_v43, %v11129_v45 }
 0x142   :  { %v159_v57 = vsub.f32 %v9377_v53, %v9381_v55  ;;  %v9391_v59 = vsub.f32 %v85_v54, %v9383_v10  ;;  %v11126_v54 = vand.u32 4294901760, %v9531_v6 }
 0x143   :  { %v2633_v49 = vand.u32 4294901760, %v2632_v47 }
 0x144   :  { %v9393_v61 = vand.u32 4294901760, %v159_v57  ;;  %v9396_v62 = vand.u32 4294901760, %v9391_v59 }
 0x145   :  { %v9533_v52 = vpack.c.bf16 %v2640_v50, %v2633_v49 }
 0x146   :  { %7670 = vmatprep.mubr.f32.mxu0 %v9393_v61  ;;  %7736 = vmatprep.mubr.f32.mxu1 %v9393_v61  ;;  %v169_v63 = vsub.f32 %v9391_v59, %v9396_v62 }
 0x148   :  { %v9402_v0 = vand.u32 4294901760, %v169_v63 }
 0x14a   :  { %7671 = vmatmul.mubr.f32.vlgmr.msra.gmra.mrb[0].mxu0 %v9402_v0  ;;  %7737 = vmatmul.mubr.f32.vlgmr.msra.gmra.mrb[0].mxu1 %v9402_v0 }
 0x14b   :  { %8465 = vmatpush3.bf16.msra.mxu0 %v9294_v58  ;;  %8513 = vmatpush3.bf16.msra.mxu1 %v9296_v60  ;;  %v1147_v58 = vld [vmem:[%s11118_s2 + $0x40] sm:$0xff]  ;;  %v1148_v60 = vld [vmem:[%s11118_s2 + $0x48] sm:$0xff] }
 0x14c   :  { %7681 = vmatprep.mubr.f32.mxu0 %v9371_v51  ;;  %7747 = vmatprep.mubr.f32.mxu1 %v9371_v51  ;;  %v1152_v1 = vand.u32 4294901760, %v1147_v58  ;;  %v1155_v2 = vand.u32 4294901760, %v1148_v60 }
 0x14d   :  { %8467 = vmatprep.subr.bf16.mxu0 %v9300_v4  ;;  %8515 = vmatprep.subr.bf16.mxu1 %v9302_v5 }
 0x14f   :  { %8469 = vmatpush3.bf16.msra.mxu0 %v9300_v4  ;;  %8517 = vmatpush3.bf16.msra.mxu1 %v9302_v5  ;;  %v1150_v4 = vld [vmem:[%s11118_s2 + $0x58] sm:$0xff]  ;;  %v1158_v5 = vand.u32 4294901760, %v1149_v3 }
 0x150   :  { %8471 = vmatprep.subr.bf16.mxu0 %v9304_v7  ;;  %8519 = vmatprep.subr.bf16.mxu1 %v9306_v8 }
 0x152   :  { %7682 = vmatmul.mubr.f32.vlgmr.msra.gmra.mrb[0].mxu0 %v9383_v10  ;;  %7748 = vmatmul.mubr.f32.vlgmr.msra.gmra.mrb[0].mxu1 %v9383_v10 }
 0x153   :  { %8473 = vmatpush3.bf16.msra.mxu0 %v9304_v7  ;;  %8521 = vmatpush3.bf16.msra.mxu1 %v9306_v8  ;;  %v1161_v7 = vand.u32 4294901760, %v1150_v4  ;;  %v9458_v8 = vsub.f32 %v1147_v58, %v1152_v1 }
 0x154   :  { %7692 = vmatprep.mubr.f32.mxu0 %v9377_v53  ;;  %7758 = vmatprep.mubr.f32.mxu1 %v9377_v53 }
 0x155   :  { %8475 = vmatprep.subr.bf16.mxu0 %v9308_v9  ;;  %8523 = vmatprep.subr.bf16.mxu1 %v9310_v11  ;;  %v1263_v16 = vsub.f32 %v1150_v4, %v1161_v7 }
 0x157   :  { %8477 = vmatpush3.bf16.msra.mxu0 %v9308_v9  ;;  %8525 = vmatpush3.bf16.msra.mxu1 %v9310_v11  ;;  %v1249_v9 = vsub.f32 %v1148_v60, %v1155_v2  ;;  %v1243_v11 = vand.u32 4294901760, %v9458_v8  ;;  %v1264_v19 = vand.u32 4294901760, %v1263_v16 }
 0x158   :  { %8479 = vmatprep.subr.bf16.mxu0 %v9278_v27  ;;  %8527 = vmatprep.subr.bf16.mxu1 %v9280_v31 }
 0x159   :  { %v1265_v22 = vsub.f32 %v1263_v16, %v1264_v19 }
 0x15a   :  { %7693 = vmatmul.mubr.f32.vlgmr.msra.gmra.mrb[0].mxu0 %v9391_v59  ;;  %7759 = vmatmul.mubr.f32.vlgmr.msra.gmra.mrb[0].mxu1 %v9391_v59 }
 0x15b   :  { %8481 = vmatpush3.bf16.msra.mxu0 %v9278_v27  ;;  %8529 = vmatpush3.bf16.msra.mxu1 %v9280_v31  ;;  %v1266_v25 = vand.u32 4294901760, %v1265_v22  ;;  %v9589_v22 = vld [vmem:[%s11122_s6 + $0x7] ss:$0 sm:$0xff] }
 0x15c   :  { %7703 = vmatprep.mubr.f32.mxu0 %v9381_v55  ;;  %7769 = vmatprep.mubr.f32.mxu1 %v9381_v55 }
 0x15d   :  { %8483 = vmatprep.subr.bf16.mxu0 %v9283_v35  ;;  %8531 = vmatprep.subr.bf16.mxu1 %v9285_v36 }
 0x15f   :  { %8485 = vmatpush3.bf16.msra.mxu0 %v9283_v35  ;;  %8533 = vmatpush3.bf16.msra.mxu1 %v9285_v36 }
 0x160   :  { %8487 = vmatprep.subr.bf16.mxu0 %v9312_v12  ;;  %8535 = vmatprep.subr.bf16.mxu1 %v9314_v13 }
 0x162   :  { %7704 = vmatmul.mubr.f32.vlgmr.msra.gmra.mrb[0].mxu0 %v9396_v62  ;;  %7770 = vmatmul.mubr.f32.vlgmr.msra.gmra.mrb[0].mxu1 %v9396_v62 }
 0x163   :  { %8489 = vmatpush3.bf16.msra.mxu0 %v9312_v12  ;;  %8537 = vmatpush3.bf16.msra.mxu1 %v9314_v13  ;;  %v1250_v12 = vand.u32 4294901760, %v1249_v9  ;;  %v1256_v13 = vsub.f32 %v1149_v3, %v1158_v5  ;;  %v9559_v3 = vld [vmem:[%s11122_s6 + $0x4] ss:$0 sm:$0xff] }
 0x164   :  { %7714 = vmatprep.mubr.f32.mxu0 %v9371_v51  ;;  %7780 = vmatprep.mubr.f32.mxu1 %v9371_v51 }
 0x165   :  { %8491 = vmatprep.subr.bf16.mxu0 %v9316_v14  ;;  %8539 = vmatprep.subr.bf16.mxu1 %v9318_v15  ;;  %v1251_v17 = vsub.f32 %v1249_v9, %v1250_v12  ;;  %v1257_v18 = vand.u32 4294901760, %v1256_v13  ;;  %v8570_v26 = vpack.c.bf16 %v1263_v16, %v1256_v13  ;;  %v8582_v28 = vpack.c.bf16 %v1250_v12, %v1243_v11 }
 0x167   :  { %8493 = vmatpush3.bf16.msra.mxu0 %v9316_v14  ;;  %8541 = vmatpush3.bf16.msra.mxu1 %v9318_v15  ;;  %v8550_v14 = vpack.c.bf16 %v1155_v2, %v1152_v1  ;;  %v1244_v15 = vsub.f32 %v9458_v8, %v1243_v11  ;;  %v1252_v20 = vand.u32 4294901760, %v1251_v17  ;;  %v1258_v21 = vsub.f32 %v1256_v13, %v1257_v18 }
 0x168   :  { %8495 = vmatprep.subr.bf16.mxu0 %v9278_v27  ;;  %8543 = vmatprep.subr.bf16.mxu1 %v9280_v31  ;;  %v8586_v29 = vpack.c.bf16 %v1264_v19, %v1257_v18 }
 0x169   :  { %v1259_v24 = vand.u32 4294901760, %v1258_v21 }
 0x16a   :  { %7715 = vmatmul.mubr.f32.vlgmr.msra.gmra.mrb[0].mxu0 %v9383_v10  ;;  %7781 = vmatmul.mubr.f32.vlgmr.msra.gmra.mrb[0].mxu1 %v9383_v10 }
 0x16b   :  { %8497 = vmatpush3.bf16.msra.mxu0 %v9278_v27  ;;  %8545 = vmatpush3.bf16.msra.mxu1 %v9280_v31  ;;  %v8554_v27 = vpack.c.bf16 %v1161_v7, %v1158_v5  ;;  %v1245_v31 = vand.u32 4294901760, %v1244_v15  ;;  %v1759_v5 = vpop.permute.xlu0 %1758 }
 0x16c   :  { %7725 = vmatprep.mubr.f32.mxu0 %v9371_v51  ;;  %7791 = vmatprep.mubr.f32.mxu1 %v9371_v51  ;;  %v1792_v13 = vmul.f32 %v9559_v3, %v1759_v5 }
 0x16d   :  { %8499 = vmatprep.subr.bf16.mxu0 %v9283_v35  ;;  %8547 = vmatprep.subr.bf16.mxu1 %v9285_v36  ;;  %v8558_v23 = vpack.c.bf16 %v1252_v20, %v1245_v31 }
 0x16f   :  { %8501 = vmatpush3.bf16.msra.mxu0 %v9283_v35  ;;  %8549 = vmatpush3.bf16.msra.mxu1 %v9285_v36  ;;  %v8562_v35 = vpack.c.bf16 %v1266_v25, %v1259_v24  ;;  %v8566_v36 = vpack.c.bf16 %v1249_v9, %v9458_v8  ;;  %v9567_v8 = vld [vmem:[%s11122_s6 + $0x5] ss:$0 sm:$0xff]  ;;  %v1724_v16 = vpop.permute.xlu0 %1723 }
 0x170   :  { %8551 = vmatprep.subr.bf16.mxu0 %v8550_v14  ;;  %8838 = vmatprep.subr.bf16.mxu1 %v9505_v41  ;;  %v1785_v21 = vmul.f32 %v9559_v3, %v1724_v16 }
 0x172   :  { %7726 = vmatmul.mubr.f32.vlgmr.msra.gmra.mrb[0].mxu0 %v9383_v10  ;;  %7792 = vmatmul.mubr.f32.vlgmr.msra.gmra.mrb[0].mxu1 %v9383_v10 }
 0x173   :  { %8553 = vmatpush3.bf16.msra.mxu0 %v8550_v14  ;;  %7802 = vmatprep.mubr.f32.mxu0 %v9393_v61  ;;  %v1764_v61 = vpop.permute.xlu1 %1763 }
 0x174   :  { %8555 = vmatprep.subr.bf16.mxu0 %v8554_v27  ;;  %8840 = vmatpush3.bf16.msra.mxu1 %v9505_v41  ;;  %v1793_v7 = vmul.f32 %v9559_v3, %v1764_v61 }
 0x175   :  { %8839 = vmatprep.subr.bf16.mxu1 %v9507_v42 }
 0x176   :  { %v1814_v15 = vadd.f32 %v9567_v8, %v1793_v7 }
 0x177   :  { %8557 = vmatpush3.bf16.msra.mxu0 %v8554_v27  ;;  %v1769_v63 = vpop.permute.xlu1 %1768 }
 0x178   :  { %8559 = vmatprep.subr.bf16.mxu0 %v8558_v23  ;;  %8841 = vmatpush3.bf16.msra.mxu1 %v9507_v42  ;;  %v1794_v9 = vmul.f32 %v9559_v3, %v1769_v63  ;;  %vm1830_vm1 = vcmp.ge.f32.partialorder %v1814_v15, 0.0  ;;  %v1846_v31 = vmul.f32 0.01, %v1814_v15 }
 0x179   :  { %8607 = vmatprep.subr.bf16.mxu1 %v9533_v52 }
 0x17a   :  { %7803 = vmatmul.mubr.f32.vlgmr.msra.gmra.mrb[2].mxu0 %v9402_v0  ;;  %v1815_v17 = vadd.f32 %v9567_v8, %v1794_v9  ;;  %v9606_v40 = vsel %vm1830_vm1, %v1814_v15, %v1846_v31 }
 0x17b   :  { %8561 = vmatpush3.bf16.msra.mxu0 %v8558_v23  ;;  %7813 = vmatprep.mubr.f32.mxu0 %v9371_v51  ;;  %v1774_v0 = vpop.permute.xlu1 %1773 }
 0x17c   :  { %8563 = vmatprep.subr.bf16.mxu0 %v8562_v35  ;;  %v1795_v11 = vmul.f32 %v9559_v3, %v1774_v0  ;;  %vm1831_vm2 = vcmp.ge.f32.partialorder %v1815_v17, 0.0  ;;  %v1847_v23 = vmul.f32 0.01, %v1815_v17 }
 0x17e   :  { %v1816_v18 = vadd.f32 %v9567_v8, %v1795_v11  ;;  %v9609_v47 = vsel %vm1831_vm2, %v1815_v17, %v1847_v23 }
 0x17f   :  { %8565 = vmatpush3.bf16.msra.mxu0 %v8562_v35  ;;  %v1699_v58 = vpop.permute.xlu1 %1698 }
 0x180   :  { %8567 = vmatprep.subr.bf16.mxu0 %v8566_v36  ;;  %v1780_v20 = vmul.f32 %v9559_v3, %v1699_v58  ;;  %vm1832_vm3 = vcmp.ge.f32.partialorder %v1816_v18, 0.0 }
 0x182   :  { %7814 = vmatmul.mubr.f32.vlgmr.msra.gmra.mrb[2].mxu0 %v9383_v10  ;;  %v1801_v38 = vadd.f32 %v9567_v8, %v1780_v20 }
 0x183   :  { %8569 = vmatpush3.bf16.msra.mxu0 %v8566_v36  ;;  %7824 = vmatprep.mubr.f32.mxu0 %v9377_v53  ;;  %v1704_v1 = vpop.permute.xlu1 %1703  ;;  %v1734_v36 = vpop.permute.xlu0 %1733 }
 0x184   :  { %8571 = vmatprep.subr.bf16.mxu0 %v8570_v26  ;;  %v1787_v30 = vmul.f32 %v9559_v3, %v1734_v36  ;;  %vm1817_vm5 = vcmp.ge.f32.partialorder %v1801_v38, 0.0  ;;  %v1833_v7 = vmul.f32 0.01, %v1801_v38 }
 0x186   :  { %v9647_v20 = vsel %vm1817_vm5, %v1801_v38, %v1833_v7 }
 0x187   :  { %8573 = vmatpush3.bf16.msra.mxu0 %v8570_v26  ;;  %v9554_v2 = vpop.permute.xlu1 %1708  ;;  %v1848_v26 = vmul.f32 0.01, %v1816_v18 }
 0x188   :  { %8575 = vmatprep.subr.bf16.mxu0 %v8550_v14 }
 0x189   :  { %v9617_v50 = vsel %vm1832_vm3, %v1816_v18, %v1848_v26 }
 0x18a   :  { %7825 = vmatmul.mubr.f32.vlgmr.msra.gmra.mrb[2].mxu0 %v9391_v59 }
 0x18b   :  { %8577 = vmatpush3.bf16.msra.mxu0 %v8550_v14  ;;  %7835 = vmatprep.mubr.f32.mxu0 %v9381_v55  ;;  %v9561_v4 = vpop.permute.xlu1 %1713 }
 0x18c   :  { %8579 = vmatprep.subr.bf16.mxu0 %v8554_v27 }
 0x18f   :  { %8581 = vmatpush3.bf16.msra.mxu0 %v8554_v27  ;;  %v9571_v12 = vpop.permute.xlu1 %1718 }
 0x190   :  { %8583 = vmatprep.subr.bf16.mxu0 %v8582_v28 }
 0x192   :  { %7836 = vmatmul.mubr.f32.vlgmr.msra.gmra.mrb[2].mxu0 %v9396_v62  ;;  %v9548_v62 = vpack.c.bf16 %v9511_v44, %v9509_v43 }
 0x193   :  { %8585 = vmatpush3.bf16.msra.mxu0 %v8582_v28  ;;  %7846 = vmatprep.mubr.f32.mxu0 %v9371_v51  ;;  %v9593_v35 = vpop.permute.xlu1 %1728  ;;  %v1781_v28 = vmul.f32 %v9559_v3, %v1704_v1 }
 0x194   :  { %8587 = vmatprep.subr.bf16.mxu0 %v8586_v29  ;;  %v1786_v31 = vmul.f32 %v9559_v3, %v9593_v35 }
 0x197   :  { %8589 = vmatpush3.bf16.msra.mxu0 %v8586_v29 }
 0x198   :  { %8591 = vmatprep.subr.bf16.mxu0 %v8550_v14 }
 0x19a   :  { %7847 = vmatmul.mubr.f32.vlgmr.msra.gmra.mrb[2].mxu0 %v9383_v10 }
 0x19b   :  { %8593 = vmatpush3.bf16.msra.mxu0 %v8550_v14  ;;  %7857 = vmatprep.mubr.f32.mxu0 %v9371_v51  ;;  %v9529_v51 = vsub.f32 %v2349_v33, %v2406_v39  ;;  %v9577_v14 = vld [vmem:[%s11122_s6 + $0x6] ss:$0 sm:$0xff]  ;;  %v1806_v39 = vadd.f32 %v9567_v8, %v1785_v21 }
 0x19c   :  { %8595 = vmatprep.subr.bf16.mxu0 %v8554_v27  ;;  %v1883_v19 = vmul.f32 %v9577_v14, %v1764_v61  ;;  %v1884_v24 = vmul.f32 %v9577_v14, %v1769_v63  ;;  %v1885_v25 = vmul.f32 %v9577_v14, %v1774_v0  ;;  %v1882_v29 = vmul.f32 %v9577_v14, %v1759_v5  ;;  %v1744_v5 = vpop.permute.xlu0 %1743 }
 0x19d   :  { %11177 = vst [vmem:[#allocation8_spill] sm:$0xff] %v9529_v51  ;;  %v11127_v53 = vand.u32 4294901760, %v9529_v51  ;;  %v9552_v60 = vpack.c.bf16 %v9531_v6, %v9529_v51  ;;  %v1870_v32 = vmul.f32 %v9577_v14, %v1699_v58  ;;  %v1875_v34 = vmul.f32 %v9577_v14, %v1724_v16 }
 0x19e   :  { %v9601_v37 = vadd.f32 %v9589_v22, %v1883_v19  ;;  %v9612_v48 = vadd.f32 %v9589_v22, %v1884_v24  ;;  %v9615_v49 = vadd.f32 %v9589_v22, %v1885_v25  ;;  %v1782_v61 = vmul.f32 %v9559_v3, %v9554_v2 }
 0x19f   :  { %8597 = vmatpush3.bf16.msra.mxu0 %v8554_v27  ;;  %v2646_v55 = vsub.f32 %v9529_v51, %v11127_v53  ;;  %v1813_v27 = vadd.f32 %v9567_v8, %v1792_v13  ;;  %v9632_v0 = vadd.f32 %v9589_v22, %v1875_v34  ;;  %v1871_v9 = vmul.f32 %v9577_v14, %v1704_v1 }
 0x1a0   :  { %8599 = vmatprep.subr.bf16.mxu0 %v9505_v41  ;;  %11179 = vst [vmem:[#allocation10_spill] sm:$0xff] %v9612_v48  ;;  %v1838_v11 = vmul.f32 0.01, %v1806_v39  ;;  %v1783_v13 = vmul.f32 %v9559_v3, %v9561_v4  ;;  %vm1822_vm6 = vcmp.ge.f32.partialorder %v1806_v39, 0.0  ;;  %v1877_v16 = vmul.f32 %v9577_v14, %v1734_v36 }
 0x1a1   :  { %v2647_v56 = vand.u32 4294901760, %v2646_v55  ;;  %v1845_v33 = vmul.f32 0.01, %v1813_v27  ;;  %vm1829_vm4 = vcmp.ge.f32.partialorder %v1813_v27, 0.0  ;;  %v1802_v55 = vadd.f32 %v9567_v8, %v1781_v28 }
 0x1a2   :  { %7858 = vmatmul.mubr.f32.vlgmr.msra.gmra.mrb[2].mxu0 %v9383_v10  ;;  %v2653_v10 = vsub.f32 %v9531_v6, %v11126_v54  ;;  %v1789_v15 = vmul.f32 %v9559_v3, %v1744_v5  ;;  %v1872_v18 = vmul.f32 %v9577_v14, %v9554_v2  ;;  %v1784_v19 = vmul.f32 %v9559_v3, %v9571_v12 }
 0x1a3   :  { %8601 = vmatpush3.bf16.msra.mxu0 %v9505_v41  ;;  %v9629_v63 = vsel %vm1829_vm4, %v1813_v27, %v1845_v33  ;;  %v1834_v17 = vmul.f32 0.01, %v1802_v55  ;;  %vm1818_vm7 = vcmp.ge.f32.partialorder %v1802_v55, 0.0  ;;  %v1803_v1 = vadd.f32 %v9567_v8, %v1782_v61 }
 0x1a4   :  { %8603 = vmatprep.subr.bf16.mxu0 %v9507_v42  ;;  %v2654_v57 = vand.u32 4294901760, %v2653_v10  ;;  %v9621_v10 = vadd.f32 %v9589_v22, %v1882_v29  ;;  %v9650_v21 = vadd.f32 %v9589_v22, %v1871_v9  ;;  %v9652_v23 = vsel %vm1822_vm6, %v1806_v39, %v1838_v11  ;;  %v9663_v29 = vpop.permute.xlu0 %1753 }
 0x1a5   :  { %v1804_v24 = vadd.f32 %v9567_v8, %v1783_v13  ;;  %v9657_v25 = vadd.f32 %v9589_v22, %v1877_v16  ;;  %v1810_v26 = vadd.f32 %v9567_v8, %v1789_v15  ;;  %v1879_v28 = vmul.f32 %v9577_v14, %v1744_v5  ;;  %11181 = vst [vmem:[#allocation12_spill] sm:$0xff] %v9663_v29 }
 0x1a6   :  { %v9544_v59 = vpack.c.bf16 %v2654_v57, %v2647_v56  ;;  %v1808_v56 = vadd.f32 %v9567_v8, %v1787_v30  ;;  %v9625_v57 = vadd.f32 %v9589_v22, %v1870_v32  ;;  %v9665_v30 = vsel %vm1818_vm7, %v1802_v55, %v1834_v17 }
 0x1a7   :  { %8605 = vmatpush3.bf16.msra.mxu0 %v9507_v42  ;;  %v9668_v32 = vadd.f32 %v9589_v22, %v1872_v18  ;;  %v1805_v33 = vadd.f32 %v9567_v8, %v1784_v19  ;;  %vm1819_vm9 = vcmp.ge.f32.partialorder %v1803_v1, 0.0  ;;  %v1835_v38 = vmul.f32 0.01, %v1803_v1 }
 0x1a8   :  { %v1840_v27 = vmul.f32 0.01, %v1808_v56  ;;  %vm1824_vm8 = vcmp.ge.f32.partialorder %v1808_v56, 0.0  ;;  %v1873_v39 = vmul.f32 %v9577_v14, %v9561_v4  ;;  %v1807_v61 = vadd.f32 %v9567_v8, %v1786_v31 }
 0x1a9   :  { %v1791_v7 = vmul.f32 %v9559_v3, %v9663_v29  ;;  %vm1820_vm10 = vcmp.ge.f32.partialorder %v1804_v24, 0.0  ;;  %v1836_v9 = vmul.f32 0.01, %v1804_v24  ;;  %vm1826_vm11 = vcmp.ge.f32.partialorder %v1810_v26, 0.0 }
 0x1aa   :  { %v9671_v34 = vsel %vm1824_vm8, %v1808_v56, %v1840_v27  ;;  %v1842_v56 = vmul.f32 0.01, %v1810_v26  ;;  %vm1821_vm12 = vcmp.ge.f32.partialorder %v1805_v33, 0.0  ;;  %v1837_v11 = vmul.f32 0.01, %v1805_v33 }
 0x1ab   :  { %v1874_v13 = vmul.f32 %v9577_v14, %v9571_v12  ;;  %v1876_v4 = vmul.f32 %v9577_v14, %v9593_v35  ;;  %vm1823_vm13 = vcmp.ge.f32.partialorder %v1807_v61, 0.0  ;;  %v1839_v16 = vmul.f32 0.01, %v1807_v61 }
 0x1ac   :  { %v9182_v17 = vmov 1966171168   ;;  %v1961_v27 = vlaneseq  ;;  %v1812_v31 = vadd.f32 %v9567_v8, %v1791_v7  ;;  %v1894_v12 = vadd.f32 %v9589_v22, %v1873_v39 }
 0x1ad   :  { %v1959_v18 = vunpack.c.l.s4 %v9182_v17  ;;  %v9693_v35 = vadd.f32 %v9589_v22, %v1879_v28  ;;  %v9696_v54 = vsel %vm1820_vm10, %v1804_v24, %v1836_v9  ;;  %v1924_v9 = vmul.f32 0.01, %v9650_v21 }
 0x1ae   :  { %v1962_v7 = vshrl.u32 %v1961_v27, 7  ;;  %vm1828_vm1 = vcmp.ge.f32.partialorder %v1812_v31, 0.0  ;;  %vm1908_vm2 = vcmp.ge.f32.partialorder %v9650_v21, 0.0  ;;  %vm1907_vm3 = vcmp.ge.f32.partialorder %v9625_v57, 0.0 }
 0x1af   :  { %v1960_v28 = vunpack.c.0.s8 %v1959_v18  ;;  %vm1910_vm4 = vcmp.ge.f32.partialorder %v1894_v12, 0.0  ;;  %vm1909_vm5 = vcmp.ge.f32.partialorder %v9668_v32, 0.0  ;;  %vm1912_vm7 = vcmp.ge.f32.partialorder %v9632_v0, 0.0 }
 0x1b0   :  { %vm1914_vm8 = vcmp.ge.f32.partialorder %v9657_v25, 0.0  ;;  %v9737_v18 = vsel %vm1908_vm2, %v9650_v21, %v1924_v9  ;;  %vm1916_vm10 = vcmp.ge.f32.partialorder %v9693_v35, 0.0  ;;  %vm3529_vm2 = vcmask 31744  }
 0x1b5   :  { %v1739_v58 = vpop.permute.xlu1 %1738 }
 0x1b6   :  { %v1788_v2 = vmul.f32 %v9559_v3, %v1739_v58  ;;  %v1878_v15 = vmul.f32 %v9577_v14, %v1739_v58  ;;  %v9699_v14 = vsel %vm1821_vm12, %v1805_v33, %v1837_v11  ;;  %v1895_v58 = vadd.f32 %v9589_v22, %v1874_v13 }
 0x1b7   :  { %v1844_v33 = vmul.f32 0.01, %v1812_v31  ;;  %v1928_v11 = vmul.f32 0.01, %v9632_v0  ;;  %v1930_v13 = vmul.f32 0.01, %v9657_v25 }
 0x1b8   :  { %v1809_v5 = vadd.f32 %v9567_v8, %v1788_v2  ;;  %v9689_v2 = vsel %vm1819_vm9, %v1803_v1, %v1835_v38  ;;  %v1897_v1 = vadd.f32 %v9589_v22, %v1876_v4  ;;  %v9710_v38 = vadd.f32 %v9589_v22, %v1878_v15 }
 0x1b9   :  { %v9659_v36 = vpop.permute.xlu1 %1748  ;;  %v1925_v22 = vmul.f32 0.01, %v9668_v32  ;;  %vm1911_vm6 = vcmp.ge.f32.partialorder %v1895_v58, 0.0  ;;  %v9729_v15 = vsub.s32 0, %v1962_v7  ;;  %v9732_v17 = vsel %vm1828_vm1, %v1812_v31, %v1844_v33 }
 0x1ba   :  { %11180 = vst [vmem:[#allocation11_spill] sm:$0xff] %v9659_v36  ;;  %v1790_v55 = vmul.f32 %v9559_v3, %v9659_v36  ;;  %v1841_v19 = vmul.f32 0.01, %v1809_v5  ;;  %vm1825_vm14 = vcmp.ge.f32.partialorder %v1809_v5, 0.0  ;;  %v1929_v4 = vmul.f32 0.01, %v1897_v1 }
 0x1bb   :  { %vm1913_vm9 = vcmp.ge.f32.partialorder %v1897_v1, 0.0  ;;  %v9750_v27 = vsel %vm1909_vm5, %v9668_v32, %v1925_v22  ;;  %v9767_v33 = vmul.f32 0.01, %v9710_v38  ;;  %vm1919_vm12 = vcmp.ge.f32.partialorder %v9621_v10, 0.0 }
 0x1bc   :  { %v1811_v3 = vadd.f32 %v9567_v8, %v1790_v55  ;;  %v9703_v55 = vsel %vm1826_vm11, %v1810_v26, %v1842_v56  ;;  %v9706_v8 = vsel %vm1823_vm13, %v1807_v61, %v1839_v16  ;;  %v9712_v39 = vsel %vm1825_vm14, %v1809_v5, %v1841_v19  ;;  %11183 = vst [vmem:[#allocation14_spill] sm:$0xff] %v9750_v27 }
 0x1bd   :  { %v1923_v26 = vmul.f32 0.01, %v9625_v57  ;;  %v1926_v61 = vmul.f32 0.01, %v1894_v12  ;;  %v1927_v5 = vmul.f32 0.01, %v1895_v58  ;;  %v9720_v56 = vsub.s32 %v1960_v28, %v1962_v7 }
 0x1be   :  { %v1843_v24 = vmul.f32 0.01, %v1811_v3  ;;  %vm1827_vm15 = vcmp.ge.f32.partialorder %v1811_v3, 0.0  ;;  %v9756_v28 = vmul.f32 0.01, %v9693_v35  ;;  %v9759_v7 = vsel %vm1912_vm7, %v9632_v0, %v1928_v11 }
 0x1bf   :  { %v9742_v19 = vsel %vm1907_vm3, %v9625_v57, %v1923_v26  ;;  %v9753_v31 = vsel %vm1911_vm6, %v1895_v58, %v1927_v5  ;;  %11184 = vst [vmem:[#allocation15_spill] sm:$0xff] %v9759_v7  ;;  %v9762_v57 = vsel %vm1914_vm8, %v9657_v25, %v1930_v13  ;;  %vm1915_vm11 = vcmp.ge.f32.partialorder %v9710_v38, 0.0 }
 0x1c0   :  { %v9725_v16 = vsel %vm1827_vm15, %v1811_v3, %v1843_v24  ;;  %v9745_v3 = vsel %vm1910_vm4, %v1894_v12, %v1926_v61  ;;  %11185 = vst [vmem:[#allocation16_spill] sm:$0xff] %v9762_v57  ;;  %v9764_v12 = vsel %vm1913_vm9, %v1897_v1, %v1929_v4  ;;  %vm1920_vm13 = vcmp.ge.f32.partialorder %v9601_v37, 0.0 }
 0x1c1   :  { %11182 = vst [vmem:[#allocation13_spill] sm:$0xff] %v9745_v3  ;;  %11186 = vst [vmem:[#allocation17_spill] sm:$0xff] %v9764_v12  ;;  %vm1922_vm15 = vcmp.ge.f32.partialorder %v9615_v49, 0.0  ;;  %vm3931_vm1 = vcmask 1043456   ;;  %vm5370_vm5 = vcmask 1041409   ;;  %vm5372_vm6 = vcmask 1042434  }
 0x1c2   :  { %vm5374_vm7 = vcmask 1043459   ;;  %vm5376_vm8 = vcmask 1044484   ;;  %vm5378_vm9 = vcmask 1045509  }
 0x245   :  { %v7727_v21 = vpop.f32.mrb[0].mxu0  ;;  %v7793_v24 = vpop.f32.mrb[0].mxu1 }
 0x246   :  { %v2006_v32 = vcombine.high %v7727_v21, %v7727_v21  ;;  %v2013_v58 = vrot.slane %v7727_v21, %v9720_v56  ;;  %v2106_v9 = vcombine.high %v7793_v24, %v7793_v24  ;;  %v2113_v26 = vrot.slane %v7793_v24, %v9720_v56  ;;  %v605_v61 = vpop.f32.mrb[1].mxu0  ;;  %v9771_v22 = vpop.f32.mrb[1].mxu1 }
 0x247   :  { %v1957_v5 = vcombine.high %v605_v61, %v605_v61  ;;  %v1964_v0 = vrot.slane %v605_v61, %v9720_v56  ;;  %v2057_v25 = vcombine.high %v9771_v22, %v9771_v22  ;;  %v9778_v1 = vrot.slane %v9771_v22, %v9720_v56 }
 0x248   :  { %v2020_v11 = vrot.slane %v2006_v32, %v9720_v56  ;;  %v2021_v13 = vcombine.high %v2013_v58, %v2013_v58  ;;  %v2029_v4 = vrot.slane %v2013_v58, %v9720_v56  ;;  %v2120_v21 = vrot.slane %v2106_v9, %v9720_v56 }
 0x249   :  { %v2121_v24 = vcombine.high %v2113_v26, %v2113_v26  ;;  %v2129_v53 = vrot.slane %v2113_v26, %v9720_v56  ;;  %v1971_v46 = vrot.slane %v1957_v5, %v9720_v56  ;;  %v1972_v61 = vcombine.high %v1964_v0, %v1964_v0 }
 0x24a   :  { %v2022_v45 = vcombine.high %v2020_v11, %v2020_v11  ;;  %v2036_v36 = vrot.slane %v2020_v11, %v9720_v56  ;;  %v2043_v29 = vrot.slane %v2021_v13, %v9720_v56  ;;  %v2051_v22 = vcombine.high %v2029_v4, %v2029_v4 }
 0x24b   :  { %v2286_v6 = vrot.slane %v2029_v4, %v9729_v15  ;;  %v2122_v32 = vcombine.high %v2120_v21, %v2120_v21  ;;  %v2136_v51 = vrot.slane %v2120_v21, %v9720_v56  ;;  %v2143_v58 = vrot.slane %v2121_v24, %v9720_v56 }
 0x24c   :  { %v2050_v9 = vrot.slane %v2022_v45, %v9720_v56  ;;  %v2052_v44 = vcombine.high %v2036_v36, %v2036_v36  ;;  %v2053_v26 = vcombine.high %v2043_v29, %v2043_v29  ;;  %v2290_v5 = vrot.slane %v2043_v29, %v9729_v15 }
 0x24d   :  { %v2294_v43 = vrot.slane %v2051_v22, %v9729_v15  ;;  %v2302_v11 = vrot.slane %v2036_v36, %v9729_v15  ;;  %v2150_v13 = vrot.slane %v2122_v32, %v9720_v56  ;;  %v2151_v42 = vcombine.high %v2129_v53, %v2129_v53 }
 0x24e   :  { %v2054_v12 = vcombine.high %v2050_v9, %v2050_v9  ;;  %v2298_v4 = vrot.slane %v2053_v26, %v9729_v15  ;;  %v2306_v21 = vrot.slane %v2050_v9, %v9729_v15  ;;  %v9798_v24 = vrot.slane %v2052_v44, %v9729_v15 }
 0x24f   :  { %v2152_v45 = vcombine.high %v2136_v51, %v2136_v51  ;;  %v2153_v57 = vcombine.high %v2143_v58, %v2143_v58  ;;  %v2154_v3 = vcombine.high %v2150_v13, %v2150_v13  ;;  %v2190_v29 = vrot.slane %v2129_v53, %v9729_v15 }
 0x250   :  { %v9802_v22 = vrot.slane %v2054_v12, %v9729_v15  ;;  %v2194_v36 = vrot.slane %v2143_v58, %v9729_v15  ;;  %v2198_v32 = vrot.slane %v2151_v42, %v9729_v15  ;;  %v2206_v48 = vrot.slane %v2136_v51, %v9729_v15 }
 0x251   :  { %v2202_v26 = vrot.slane %v2153_v57, %v9729_v15  ;;  %v2210_v9 = vrot.slane %v2150_v13, %v9729_v15  ;;  %v2214_v44 = vrot.slane %v2152_v45, %v9729_v15  ;;  %v2218_v27 = vrot.slane %v2154_v3, %v9729_v15 }
 0x252   :  { %v2243_v7 = vadd.f32 %v2190_v29, %v9712_v39  ;;  %v2244_v53 = vadd.f32 %v2194_v36, %v9703_v55  ;;  %v2245_v12 = vadd.f32 %v2198_v32, %v9725_v16  ;;  %v2247_v58 = vadd.f32 %v2206_v48, %v9629_v63 }
 0x253   :  { %v2248_v42 = vadd.f32 %v2210_v9, %v9606_v40  ;;  %v9817_v51 = vadd.f32 %v2214_v44, %v9609_v47  ;;  %v9820_v57 = vadd.f32 %v2218_v27, %v9617_v50  ;;  %v2246_v13 = vadd.f32 %v2202_v26, %v9732_v17 }
 0x254   :  { %v9823_v45 = vmul.f32 %v2286_v6, %v2243_v7  ;;  %v9825_v3 = vmul.f32 %v2290_v5, %v2244_v53  ;;  %v9827_v39 = vmul.f32 %v2294_v43, %v2245_v12  ;;  %v2343_v55 = vmul.f32 %v2302_v11, %v2247_v58 }
 0x255   :  { %v2344_v16 = vmul.f32 %v2306_v21, %v2248_v42  ;;  %v9829_v29 = vmul.f32 %v2298_v4, %v2246_v13  ;;  %v1973_v48 = vcombine.high %v1971_v46, %v1971_v46  ;;  %v1980_v40 = vrot.slane %v1964_v0, %v9720_v56 }
 0x256   :  { %v1987_v47 = vrot.slane %v1971_v46, %v9720_v56  ;;  %v1994_v50 = vrot.slane %v1972_v61, %v9720_v56  ;;  %v2071_v63 = vrot.slane %v2057_v25, %v9720_v56  ;;  %v2072_v6 = vcombine.high %v9778_v1, %v9778_v1 }
 0x257   :  { %v9838_v17 = vrot.slane %v1973_v48, %v9720_v56  ;;  %v2002_v43 = vcombine.high %v1980_v40, %v1980_v40  ;;  %v2254_v27 = vrot.slane %v1980_v40, %v9729_v15  ;;  %v2080_v7 = vrot.slane %v9778_v1, %v9720_v56 }
 0x258   :  { %v2003_v5 = vcombine.high %v1987_v47, %v1987_v47  ;;  %v2004_v0 = vcombine.high %v1994_v50, %v1994_v50  ;;  %v2258_v46 = vrot.slane %v1994_v50, %v9729_v15  ;;  %v2270_v61 = vrot.slane %v1987_v47, %v9729_v15 }
 0x259   :  { %v2005_v25 = vcombine.high %v9838_v17, %v9838_v17  ;;  %v2262_v11 = vrot.slane %v2002_v43, %v9729_v15  ;;  %v2274_v4 = vrot.slane %v9838_v17, %v9729_v15  ;;  %v2073_v21 = vcombine.high %v2071_v63, %v2071_v63 }
 0x25a   :  { %v2266_v36 = vrot.slane %v2004_v0, %v9729_v15  ;;  %v9852_v32 = vrot.slane %v2003_v5, %v9729_v15  ;;  %v2087_v1 = vrot.slane %v2071_v63, %v9720_v56  ;;  %v2094_v26 = vrot.slane %v2072_v6, %v9720_v56 }
 0x25b   :  { %v9857_v9 = vrot.slane %v2005_v25, %v9729_v15  ;;  %v2101_v44 = vrot.slane %v2073_v21, %v9720_v56  ;;  %v2102_v53 = vcombine.high %v2080_v7, %v2080_v7  ;;  %v2158_v12 = vrot.slane %v2080_v7, %v9729_v15 }
 0x25c   :  { %v2103_v58 = vcombine.high %v2087_v1, %v2087_v1  ;;  %v2104_v42 = vcombine.high %v2094_v26, %v2094_v26  ;;  %v2162_v13 = vrot.slane %v2094_v26, %v9729_v15  ;;  %v2174_v48 = vrot.slane %v2087_v1, %v9729_v15 }
 0x25d   :  { %v2105_v40 = vcombine.high %v2101_v44, %v2101_v44  ;;  %v2166_v47 = vrot.slane %v2102_v53, %v9729_v15  ;;  %v2178_v50 = vrot.slane %v2101_v44, %v9729_v15  ;;  %v2235_v63 = vadd.f32 %v2158_v12, %v9647_v20 }
 0x25e   :  { %v2170_v6 = vrot.slane %v2104_v42, %v9729_v15  ;;  %v2182_v43 = vrot.slane %v2103_v58, %v9729_v15  ;;  %v2236_v5 = vadd.f32 %v2162_v13, %v9665_v30  ;;  %v2239_v7 = vadd.f32 %v2174_v48, %v9699_v14 }
 0x25f   :  { %v2186_v0 = vrot.slane %v2105_v40, %v9729_v15  ;;  %v2237_v25 = vadd.f32 %v2166_v47, %v9689_v2  ;;  %v2240_v21 = vadd.f32 %v2178_v50, %v9652_v23  ;;  %v2331_v1 = vmul.f32 %v2254_v27, %v2235_v63 }
 0x260   :  { %v2238_v26 = vadd.f32 %v2170_v6, %v9696_v54  ;;  %v2241_v44 = vadd.f32 %v2182_v43, %v9706_v8  ;;  %v2332_v20 = vmul.f32 %v2258_v46, %v2236_v5  ;;  %v2335_v53 = vmul.f32 %v2270_v61, %v2239_v7 }
 0x261   :  { %v2242_v12 = vadd.f32 %v2186_v0, %v9671_v34  ;;  %v2333_v58 = vmul.f32 %v2262_v11, %v2237_v25  ;;  %v2352_v30 = vsel %vm37_vm0, %v2331_v1, 0  ;;  %v2388_v14 = vsel %vm37_vm0, %v2343_v55, 0 }
 0x262   :  { %v9878_v42 = vand.u32 4294901760, %v2352_v30  ;;  %v9880_v13 = vand.u32 4294901760, %v2388_v14  ;;  %v2355_v23 = vsel %vm37_vm0, %v2332_v20, 0  ;;  %v2391_v2 = vsel %vm37_vm0, %v2344_v16, 0 }
 0x263   :  { %v9884_v54 = vand.u32 4294901760, %v2355_v23  ;;  %v2358_v8 = vsel %vm37_vm0, %v2333_v58, 0  ;;  %v9887_v27 = vand.u32 4294901760, %v2391_v2  ;;  %v2345_v34 = vmul.f32 %v9798_v24, %v9817_v51 }
 0x264   :  { %11187 = vst [vmem:[#allocation18_spill] sm:$0xff] %v9878_v42  ;;  %v9892_v46 = vsub.f32 %v2352_v30, %v9878_v42  ;;  %v9895_v55 = vsub.f32 %v2388_v14, %v9880_v13  ;;  %v9897_v61 = vand.u32 4294901760, %v2358_v8  ;;  %v2334_v11 = vmul.f32 %v2266_v36, %v2238_v26 }
 0x265   :  { %11188 = vst [vmem:[#allocation19_spill] sm:$0xff] %v9884_v54  ;;  %v9900_v16 = vsub.f32 %v2355_v23, %v9884_v54  ;;  %v9903_v48 = vsub.f32 %v2391_v2, %v9887_v27  ;;  %v2394_v40 = vsel %vm37_vm0, %v2345_v34, 0  ;;  %v2364_v47 = vsel %vm37_vm0, %v2335_v53, 0 }
 0x266   :  { %11189 = vst [vmem:[#allocation20_spill] sm:$0xff] %v9897_v61  ;;  %v11153_v24 = vand.u32 4294901760, %v9892_v46  ;;  %v11142_v51 = vand.u32 4294901760, %v9895_v55  ;;  %v9910_v50 = vsub.f32 %v2358_v8, %v9897_v61  ;;  %v9912_v63 = vand.u32 4294901760, %v2394_v40 }
 0x267   :  { %v11151_v36 = vand.u32 4294901760, %v9900_v16  ;;  %v11140_v6 = vand.u32 4294901760, %v9903_v48  ;;  %v2361_v43 = vsel %vm37_vm0, %v2334_v11, 0  ;;  %v9917_v5 = vand.u32 4294901760, %v2364_v47 }
 0x268   :  { %v2471_v7 = vsub.f32 %v9892_v46, %v11153_v24  ;;  %v2591_v0 = vsub.f32 %v9895_v55, %v11142_v51  ;;  %v11146_v25 = vand.u32 4294901760, %v9910_v50  ;;  %v9927_v1 = vsub.f32 %v2394_v40, %v9912_v63 }
 0x269   :  { %11190 = vst [vmem:[#allocation21_spill] sm:$0xff] %v9917_v5  ;;  %v2481_v26 = vsub.f32 %v9900_v16, %v11151_v36  ;;  %v2601_v20 = vsub.f32 %v9903_v48, %v11140_v6  ;;  %v9935_v53 = vand.u32 4294901760, %v2361_v43  ;;  %v9938_v58 = vsub.f32 %v2364_v47, %v9917_v5 }
 0x26a   :  { %v2472_v30 = vand.u32 4294901760, %v2471_v7  ;;  %v2592_v14 = vand.u32 4294901760, %v2591_v0  ;;  %v2491_v23 = vsub.f32 %v9910_v50, %v11146_v25  ;;  %v11139_v2 = vand.u32 4294901760, %v9927_v1 }
 0x26b   :  { %11191 = vst [vmem:[#allocation22_spill] sm:$0xff] %v9935_v53  ;;  %v2482_v8 = vand.u32 4294901760, %v2481_v26  ;;  %v2602_v34 = vand.u32 4294901760, %v2601_v20  ;;  %v9945_v11 = vsub.f32 %v2361_v43, %v9935_v53  ;;  %v11144_v40 = vand.u32 4294901760, %v9938_v58 }
 0x26c   :  { %7868 = vmatprep.mubr.f32.mxu0 %v2472_v30  ;;  %7886 = vmatprep.mubr.f32.mxu1 %v2592_v14  ;;  %v2492_v47 = vand.u32 4294901760, %v2491_v23  ;;  %v2611_v7 = vsub.f32 %v9927_v1, %v11139_v2  ;;  %v2346_v0 = vmul.f32 %v9802_v22, %v9820_v57  ;;  %v2336_v26 = vmul.f32 %v2274_v4, %v2240_v21 }
 0x26d   :  { %7869 = vmatmul.mubr.f32.vlgmr.msra.gmra.mrb[4].mxu0 %v2482_v8  ;;  %7887 = vmatmul.mubr.f32.vlgmr.msra.gmra.mrb[2].mxu1 %v2602_v34  ;;  %v11145_v43 = vand.u32 4294901760, %v9945_v11  ;;  %v2511_v20 = vsub.f32 %v9938_v58, %v11144_v40  ;;  %v2337_v30 = vmul.f32 %v9852_v32, %v2241_v44  ;;  %v2338_v14 = vmul.f32 %v9857_v9, %v2242_v12 }
 0x26e   :  { %7871 = vmatprep.mubr.f32.mxu0 %v2492_v47  ;;  %8609 = vmatpush3.bf16.msra.mxu1 %v9533_v52  ;;  %v2612_v22 = vand.u32 4294901760, %v2611_v7  ;;  %v2397_v57 = vsel %vm37_vm0, %v2346_v0, 0  ;;  %v2367_v17 = vsel %vm37_vm0, %v2336_v26, 0  ;;  %v2376_v4 = vsel %vm37_vm0, %v9823_v45, 0 }
 0x26f   :  { %v2501_v21 = vsub.f32 %v9945_v11, %v11145_v43  ;;  %8611 = vmatprep.subr.bf16.mxu1 %v9544_v59  ;;  %v2512_v32 = vand.u32 4294901760, %v2511_v20  ;;  %v9973_v9 = vand.u32 4294901760, %v2397_v57  ;;  %v9975_v44 = vand.u32 4294901760, %v2367_v17 }
 0x270   :  { %7889 = vmatprep.mubr.f32.mxu1 %v2612_v22  ;;  %v2370_v52 = vsel %vm37_vm0, %v2337_v30, 0  ;;  %v2373_v12 = vsel %vm37_vm0, %v2338_v14, 0  ;;  %v9979_v23 = vand.u32 4294901760, %v2376_v4  ;;  %v2379_v45 = vsel %vm37_vm0, %v9825_v3, 0 }
 0x271   :  { %v2502_v8 = vand.u32 4294901760, %v2501_v21  ;;  %v9984_v34 = vsub.f32 %v2397_v57, %v9973_v9  ;;  %v9987_v47 = vsub.f32 %v2367_v17, %v9975_v44  ;;  %v9989_v7 = vand.u32 4294901760, %v2370_v52 }
 0x272   :  { %8613 = vmatpush3.bf16.msra.mxu1 %v9544_v59  ;;  %v9992_v0 = vand.u32 4294901760, %v2373_v12  ;;  %v9995_v26 = vsub.f32 %v2376_v4, %v9979_v23  ;;  %v9997_v20 = vand.u32 4294901760, %v2379_v45  ;;  %v2382_v3 = vsel %vm37_vm0, %v9827_v39, 0 }
 0x273   :  { %11192 = vst [vmem:[#allocation23_spill] sm:$0xff] %v9984_v34  ;;  %7872 = vmatmul.mubr.f32.gmra.mrb[6].mxu0 %v2502_v8  ;;  %v11141_v30 = vand.u32 4294901760, %v9984_v34  ;;  %v11143_v14 = vand.u32 4294901760, %v9987_v47  ;;  %8615 = vmatprep.subr.bf16.mxu1 %v9548_v62  ;;  %v10005_v22 = vsub.f32 %v2370_v52, %v9989_v7  ;;  %v10007_v59 = vand.u32 4294901760, %v2382_v3 }
 0x274   :  { %7874 = vmatprep.mubr.f32.mxu0 %v2512_v32  ;;  %v10010_v57 = vsub.f32 %v2373_v12, %v9992_v0  ;;  %v11148_v17 = vand.u32 4294901760, %v9995_v26  ;;  %v10014_v39 = vsub.f32 %v2379_v45, %v9997_v20  ;;  %v2385_v4 = vsel %vm37_vm0, %v9829_v29, 0 }
 0x275   :  { %v2621_v21 = vsub.f32 %v9984_v34, %v11141_v30  ;;  %v2521_v52 = vsub.f32 %v9987_v47, %v11143_v14  ;;  %v11149_v32 = vand.u32 4294901760, %v10005_v22  ;;  %v10026_v12 = vsub.f32 %v2382_v3, %v10007_v59  ;;  %v7859_v8 = vpop.f32.mrb[2].mxu0 }
 0x276   :  { %v11147_v45 = vand.u32 4294901760, %v10010_v57  ;;  %v11150_v2 = vand.u32 4294901760, %v10014_v39  ;;  %v10030_v6 = vand.u32 4294901760, %v2385_v4  ;;  %v1669_v29 = vpop.f32.mrb[3].mxu0  ;;  %v10036_v30 = vsel %vm1916_vm10, %v9693_v35, %v9756_v28 }
 0x277   :  { %v2622_v51 = vand.u32 4294901760, %v2621_v21  ;;  %v2522_v14 = vand.u32 4294901760, %v2521_v52  ;;  %v2531_v3 = vsub.f32 %v10005_v22, %v11149_v32  ;;  %v11152_v40 = vand.u32 4294901760, %v10026_v12 }
 0x278   :  { %v2541_v43 = vsub.f32 %v10010_v57, %v11147_v45  ;;  %v10046_v25 = vsub.f32 %v2385_v4, %v10030_v6  ;;  %v10052_v35 = vsel %vm1915_vm11, %v9710_v38, %v9767_v33  ;;  %v10055_v28 = vmul.f32 0.01, %v9601_v37 }
 0x279   :  { %7890 = vmatmul.mubr.f32.gmra.mrb[4].mxu1 %v2622_v51  ;;  %7875 = vmatmul.mubr.f32.gmra.mrb[8].mxu0 %v2522_v14  ;;  %v2532_v21 = vand.u32 4294901760, %v2531_v3  ;;  %v2551_v52 = vsub.f32 %v9995_v26, %v11148_v17  ;;  %v5077_v45 = vcombine.high %v7859_v8, %v7859_v8  ;;  %v5084_v4 = vrot.slane %v7859_v8, %v9720_v56 }
 0x27a   :  { %7900 = vmatprep.mubr.f32.mxu1 %v9878_v42  ;;  %v2561_v38 = vsub.f32 %v10014_v39, %v11150_v2  ;;  %v2571_v33 = vsub.f32 %v10026_v12, %v11152_v40  ;;  %v11154_v51 = vand.u32 4294901760, %v10046_v25  ;;  %v5028_v14 = vcombine.high %v1669_v29, %v1669_v29 }
 0x27b   :  { %7877 = vmatprep.mubr.f32.mxu0 %v2532_v21  ;;  %v2542_v3 = vand.u32 4294901760, %v2541_v43  ;;  %v10070_v17 = vrot.slane %v5077_v45, %v9720_v56  ;;  %v5092_v32 = vcombine.high %v5084_v4, %v5084_v4  ;;  %v10073_v8 = vrot.slane %v5084_v4, %v9720_v56 }
 0x27c   :  { %v2581_v2 = vsub.f32 %v10046_v25, %v11154_v51  ;;  %v5035_v36 = vrot.slane %v1669_v29, %v9720_v56  ;;  %v5042_v40 = vrot.slane %v5028_v14, %v9720_v56  ;;  %v10081_v24 = vmul.f32 0.01, %v9621_v10 }
 0x27d   :  { %7901 = vmatmul.mubr.f32.vlgmr.msra.gmra.mrb[6].mxu1 %v9884_v54  ;;  %7878 = vmatmul.mubr.f32.gmra.mrb[10].mxu0 %v2542_v3  ;;  %v2552_v43 = vand.u32 4294901760, %v2551_v52  ;;  %v5093_v45 = vcombine.high %v10070_v17, %v10070_v17  ;;  %v10088_v21 = vrot.slane %v10070_v17, %v9720_v56  ;;  %v5114_v4 = vrot.slane %v5092_v32, %v9720_v56 }
 0x27e   :  { %8617 = vmatpush3.bf16.msra.mxu1 %v9548_v62  ;;  %7903 = vmatprep.mubr.f32.mxu1 %v9897_v61  ;;  %v2562_v29 = vand.u32 4294901760, %v2561_v38  ;;  %v5122_v14 = vcombine.high %v10073_v8, %v10073_v8  ;;  %v5043_v52 = vcombine.high %v5035_v36, %v5035_v36  ;;  %v5044_v3 = vcombine.high %v5042_v40, %v5042_v40 }
 0x27f   :  { %7880 = vmatprep.mubr.f32.mxu0 %v2552_v43  ;;  %v2572_v51 = vand.u32 4294901760, %v2571_v33  ;;  %v5051_v54 = vrot.slane %v5035_v36, %v9720_v56  ;;  %v5058_v17 = vrot.slane %v5042_v40, %v9720_v56  ;;  %8619 = vmatprep.subr.bf16.mxu1 %v9552_v60  ;;  %v5165_v32 = vrot.slane %v5114_v4, %v9729_v15 }
 0x280   :  { %v5065_v62 = vrot.slane %v5043_v52, %v9720_v56  ;;  %v5072_v38 = vrot.slane %v5044_v3, %v9720_v56  ;;  %v5161_v61 = vrot.slane %v10073_v8, %v9729_v15  ;;  %v5124_v42 = vcombine.high %v5114_v4, %v5114_v4 }
 0x281   :  { %7904 = vmatmul.mubr.f32.gmra.mrb[8].mxu1 %v9935_v53  ;;  %7881 = vmatmul.mubr.f32.gmra.mrb[12].mxu0 %v2562_v29  ;;  %v5073_v36 = vcombine.high %v5051_v54, %v5051_v54  ;;  %v5129_v40 = vrot.slane %v5051_v54, %v9729_v15  ;;  %v5145_v33 = vrot.slane %v5058_v17, %v9729_v15  ;;  %v1938_v43 = vmul.f32 0.01, %v9615_v49 }
 0x282   :  { %7906 = vmatprep.mubr.f32.mxu1 %v9917_v5  ;;  %7883 = vmatprep.mubr.f32.mxu0 %v2572_v51  ;;  %v2582_v52 = vand.u32 4294901760, %v2581_v2  ;;  %v5133_v3 = vrot.slane %v5065_v62, %v9729_v15  ;;  %v5075_v34 = vcombine.high %v5065_v62, %v5065_v62  ;;  %v5149_v8 = vrot.slane %v5072_v38, %v9729_v15  ;;  %v11194_v62 = vld [vmem:[#allocation15_spill] sm:$0xff] }
 0x283   :  { %8621 = vmatpush3.bf16.msra.mxu1 %v9552_v60  ;;  %v10114_v4 = vadd.f32 %v5129_v40, %v9742_v19  ;;  %v5137_v54 = vrot.slane %v5073_v36, %v9729_v15  ;;  %v10118_v29 = vadd.f32 %v5145_v33, %v9753_v31  ;;  %v5076_v53 = vcombine.high %v5072_v38, %v5072_v38  ;;  %v11195_v19 = vld [vmem:[#allocation14_spill] sm:$0xff] }
 0x284   :  { %8623 = vmatprep.subr.bf16.mxu1 %v9505_v41  ;;  %v10122_v2 = vadd.f32 %v5133_v3, %v9737_v18  ;;  %v5141_v51 = vrot.slane %v5075_v34, %v9729_v15  ;;  %v10126_v5 = vadd.f32 %v5149_v8, %v11194_v62  ;;  %v5074_v60 = vcombine.high %v5058_v17, %v5058_v17  ;;  %v11197_v40 = vld [vmem:[#allocation10_spill] sm:$0xff]  ;;  %v11198_v34 = vld [vmem:[#allocation13_spill] sm:$0xff]  ;;  %v11200_v8 = vld [vmem:[#allocation16_spill] sm:$0xff] }
 0x285   :  { %11193 = vst [vmem:[#allocation24_spill] sm:$0xff] %v10118_v29  ;;  %7907 = vmatmul.mubr.f32.gmra.mrb[10].mxu1 %v9975_v44  ;;  %7884 = vmatmul.mubr.f32.gmra.mrb[14].mxu0 %v2582_v52  ;;  %v10130_v36 = vadd.f32 %v5137_v54, %v11195_v19  ;;  %v5157_v31 = vrot.slane %v5076_v53, %v9729_v15  ;;  %v1937_v18 = vmul.f32 0.01, %v11197_v40  ;;  %vm1921_vm14 = vcmp.ge.f32.partialorder %v11197_v40, 0.0 }
 0x286   :  { %v10134_v38 = vadd.f32 %v5165_v32, %v10036_v30  ;;  %7909 = vmatprep.mubr.f32.mxu1 %v9989_v7  ;;  %v10139_v33 = vadd.f32 %v5141_v51, %v11198_v34  ;;  %v5153_v17 = vrot.slane %v5074_v60, %v9729_v15  ;;  %v10143_v3 = vadd.f32 %v5161_v61, %v10052_v35  ;;  %v11202_v51 = vld [vmem:[#allocation17_spill] sm:$0xff] }
 0x287   :  { %v10146_v52 = vrot.slane %v5124_v42, %v9729_v15  ;;  %v10149_v53 = vadd.f32 %v5157_v31, %v11200_v8  ;;  %v10152_v30 = vrot.slane %v5122_v14, %v9729_v15  ;;  %v5121_v32 = vrot.slane %v5093_v45, %v9720_v56  ;;  %v11215_v8 = vld [vmem:[#allocation8_spill] sm:$0xff] }
 0x288   :  { %11196 = vst [vmem:[#allocation15_spill] sm:$0xff] %v10134_v38  ;;  %11199 = vst [vmem:[#allocation14_spill] sm:$0xff] %v10143_v3  ;;  %v5177_v54 = vrot.slane %v10088_v21, %v9729_v15  ;;  %v10158_v62 = vadd.f32 %v5153_v17, %v11202_v51  ;;  %v1951_v42 = vsel %vm1919_vm12, %v9621_v10, %v10081_v24  ;;  %v11214_v17 = vand.u32 4294901760, %v9892_v46 }
 0x289   :  { %11201 = vst [vmem:[#allocation10_spill] sm:$0xff] %v10149_v53  ;;  %v5123_v61 = vcombine.high %v10088_v21, %v10088_v21  ;;  %7910 = vmatmul.mubr.f32.gmra.mrb[12].mxu1 %v9992_v0  ;;  %v5181_v56 = vrot.slane %v5121_v32, %v9729_v15  ;;  %v5125_v45 = vcombine.high %v5121_v32, %v5121_v32  ;;  %v11216_v32 = vand.u32 4294901760, %v11215_v8 }
 0x28a   :  { %11203 = vst [vmem:[#allocation13_spill] sm:$0xff] %v10158_v62  ;;  %v10169_v35 = vadd.f32 %v5177_v54, %v1951_v42  ;;  %7912 = vmatprep.mubr.f32.mxu1 %v9979_v23  ;;  %v1952_v10 = vsel %vm1920_vm13, %v9601_v37, %v10055_v28  ;;  %v1953_v60 = vsel %vm1921_vm14, %v11197_v40, %v1937_v18  ;;  %v11208_v37 = vld [vmem:[#allocation5_spill] sm:$0xff]  ;;  %v11211_v28 = vld [vmem:[#allocation7_spill] sm:$0xff]  ;;  %vm5380_vm10 = vcmask 1046534  }
 0x28b   :  { %v5185_v24 = vrot.slane %v5123_v61, %v9729_v15  ;;  %v10178_v14 = vadd.f32 %v5181_v56, %v1952_v10  ;;  %v5189_v21 = vrot.slane %v5125_v45, %v9729_v15  ;;  %v1954_v19 = vsel %vm1922_vm15, %v9615_v49, %v1938_v43  ;;  %v11209_v49 = vld [vmem:[#allocation6_spill] sm:$0xff]  ;;  %v11213_v18 = vld [vmem:[#allocation23_spill] sm:$0xff]  ;;  %v11217_v54 = vld [vmem:[#allocation9_spill] sm:$0xff] }
 0x28c   :  { %11204 = vst [vmem:[#allocation16_spill] sm:$0xff] %v10169_v35  ;;  %v11210_v15 = vand.u32 4294901760, %v11209_v49  ;;  %v11212_v43 = vand.u32 4294901760, %v11211_v28  ;;  %v11218_v51 = vand.u32 4294901760, %v11217_v54  ;;  %v11219_v61 = vand.u32 4294901760, %v9900_v16 }
 0x28d   :  { %11205 = vst [vmem:[#allocation17_spill] sm:$0xff] %v10178_v14  ;;  %v10183_v31 = vadd.f32 %v5185_v24, %v1953_v60  ;;  %7913 = vmatmul.mubr.f32.gmra.mrb[14].mxu1 %v9997_v20  ;;  %v10186_v34 = vadd.f32 %v5189_v21, %v1954_v19  ;;  %v11220_v56 = vand.u32 4294901760, %v9910_v50  ;;  %v11221_v45 = vand.u32 4294901760, %v9945_v11  ;;  %v11235_v60 = vld [vmem:[#allocation19_spill] sm:$0xff] }
 0x28e   :  { %7915 = vmatprep.mubr.f32.mxu1 %v10007_v59  ;;  %v8630_v40 = vpack.c.bf16 %v11212_v43, %v11210_v15  ;;  %v8634_v42 = vpack.c.bf16 %v11218_v51, %v11216_v32  ;;  %v11222_v10 = vand.u32 4294901760, %v9938_v58  ;;  %v11225_v24 = vand.u32 4294901760, %v10010_v57 }
 0x28f   :  { %11206 = vst [vmem:[#allocation25_spill] sm:$0xff] %v10183_v31  ;;  %11207 = vst [vmem:[#allocation26_spill] sm:$0xff] %v10186_v34  ;;  %v11229_v21 = vand.u32 4294901760, %v10046_v25  ;;  %vm5382_vm11 = vcmask 1047559   ;;  %vm6582_vm14 = vcmask 523264  }
 0x291   :  { %7916 = vmatmul.mubr.f32.gmra.mrb[16].mxu1 %v10030_v6 }
 0x292   :  { %7918 = vmatprep.mubr.f32.mxu1 %v9880_v13 }
 0x295   :  { %7919 = vmatmul.mubr.f32.gmra.mrb[2].mxu1 %v9887_v27 }
 0x296   :  { %7921 = vmatprep.mubr.f32.mxu1 %v9912_v63 }
 0x299   :  { %7922 = vmatmul.mubr.f32.gmra.mrb[4].mxu1 %v9973_v9 }
 0x29a   :  { %7932 = vmatprep.mubr.f32.mxu1 %v9892_v46  ;;  %v11223_v46 = vand.u32 4294901760, %v9987_v47 }
 0x29d   :  { %7933 = vmatmul.mubr.f32.vlgmr.msra.gmra.mrb[6].mxu1 %v9900_v16  ;;  %v11224_v16 = vand.u32 4294901760, %v10005_v22 }
 0x29e   :  { %8625 = vmatpush3.bf16.msra.mxu1 %v9505_v41  ;;  %7935 = vmatprep.mubr.f32.mxu1 %v9910_v50  ;;  %v11226_v50 = vand.u32 4294901760, %v9995_v26 }
 0x29f   :  { %8627 = vmatprep.subr.bf16.mxu1 %v11208_v37 }
 0x2a1   :  { %7936 = vmatmul.mubr.f32.gmra.mrb[8].mxu1 %v9945_v11  ;;  %v11227_v11 = vand.u32 4294901760, %v10014_v39 }
 0x2a2   :  { %7938 = vmatprep.mubr.f32.mxu1 %v9938_v58  ;;  %8629 = vmatpush3.bf16.msra.mxu1 %v11208_v37  ;;  %v11228_v58 = vand.u32 4294901760, %v10026_v12 }
 0x2a3   :  { %8631 = vmatprep.subr.bf16.mxu1 %v8630_v40 }
 0x2a5   :  { %7939 = vmatmul.mubr.f32.gmra.mrb[10].mxu1 %v9987_v47  ;;  %v11230_v47 = vand.u32 4294901760, %v9895_v55 }
 0x2a6   :  { %7941 = vmatprep.mubr.f32.mxu1 %v10005_v22  ;;  %v11231_v22 = vand.u32 4294901760, %v9903_v48 }
 0x2a9   :  { %7942 = vmatmul.mubr.f32.gmra.mrb[12].mxu1 %v10010_v57  ;;  %v11232_v57 = vand.u32 4294901760, %v9927_v1 }
 0x2aa   :  { %7944 = vmatprep.mubr.f32.mxu1 %v9995_v26  ;;  %v11233_v26 = vand.u32 4294901760, %v11213_v18 }
 0x2ad   :  { %7945 = vmatmul.mubr.f32.gmra.mrb[14].mxu1 %v10014_v39  ;;  %v11234_v39 = vld [vmem:[#allocation18_spill] sm:$0xff] }
 0x2ae   :  { %7947 = vmatprep.mubr.f32.mxu1 %v10026_v12 }
 0x2b1   :  { %7948 = vmatmul.mubr.f32.gmra.mrb[16].mxu1 %v10046_v25  ;;  %v11236_v25 = vld [vmem:[#allocation20_spill] sm:$0xff] }
 0x2b2   :  { %7950 = vmatprep.mubr.f32.mxu1 %v9895_v55  ;;  %v11237_v55 = vld [vmem:[#allocation22_spill] sm:$0xff] }
 0x2b5   :  { %7951 = vmatmul.mubr.f32.gmra.mrb[2].mxu1 %v9903_v48  ;;  %v11238_v48 = vld [vmem:[#allocation21_spill] sm:$0xff] }
 0x2b6   :  { %7953 = vmatprep.mubr.f32.mxu1 %v9927_v1 }
 0x2b9   :  { %7954 = vmatmul.mubr.f32.gmra.mrb[4].mxu1 %v11213_v18 }
 0x2ba   :  { %7964 = vmatprep.mubr.f32.mxu1 %v11214_v17 }
 0x2bd   :  { %7965 = vmatmul.mubr.f32.vlgmr.msra.gmra.mrb[6].mxu1 %v11219_v61 }
 0x2be   :  { %8633 = vmatpush3.bf16.msra.mxu1 %v8630_v40  ;;  %7967 = vmatprep.mubr.f32.mxu1 %v11220_v56 }
 0x2bf   :  { %8635 = vmatprep.subr.bf16.mxu1 %v8634_v42 }
 0x2c1   :  { %7968 = vmatmul.mubr.f32.gmra.mrb[8].mxu1 %v11221_v45 }
 0x2c2   :  { %7970 = vmatprep.mubr.f32.mxu1 %v11222_v10  ;;  %8637 = vmatpush3.bf16.msra.mxu1 %v8634_v42 }
 0x2c3   :  { %8639 = vmatprep.subr.bf16.mxu1 %v9505_v41 }
 0x2c5   :  { %7971 = vmatmul.mubr.f32.gmra.mrb[10].mxu1 %v11223_v46 }
 0x2c6   :  { %7973 = vmatprep.mubr.f32.mxu1 %v11224_v16 }
 0x2c9   :  { %7974 = vmatmul.mubr.f32.gmra.mrb[12].mxu1 %v11225_v24 }
 0x2ca   :  { %7976 = vmatprep.mubr.f32.mxu1 %v11226_v50 }
 0x2cd   :  { %7977 = vmatmul.mubr.f32.gmra.mrb[14].mxu1 %v11227_v11 }
 0x2ce   :  { %7979 = vmatprep.mubr.f32.mxu1 %v11228_v58 }
 0x2d1   :  { %7980 = vmatmul.mubr.f32.gmra.mrb[16].mxu1 %v11229_v21 }
 0x2d2   :  { %7982 = vmatprep.mubr.f32.mxu1 %v11230_v47 }
 0x2d5   :  { %7983 = vmatmul.mubr.f32.gmra.mrb[2].mxu1 %v11231_v22 }
 0x2d6   :  { %7985 = vmatprep.mubr.f32.mxu1 %v11232_v57 }
 0x2d9   :  { %7986 = vmatmul.mubr.f32.gmra.mrb[4].mxu1 %v11233_v26 }
 0x2da   :  { %7996 = vmatprep.mubr.f32.mxu1 %v11234_v39 }
 0x2dd   :  { %7997 = vmatmul.mubr.f32.vlgmr.msra.gmra.mrb[6].mxu1 %v11235_v60 }
 0x2de   :  { %8641 = vmatpush3.bf16.msra.mxu1 %v9505_v41  ;;  %7999 = vmatprep.mubr.f32.mxu1 %v11236_v25 }
 0x2df   :  { %8643 = vmatprep.subr.bf16.mxu1 %v11208_v37 }
 0x2e1   :  { %8000 = vmatmul.mubr.f32.gmra.mrb[8].mxu1 %v11237_v55 }
 0x2e2   :  { %8002 = vmatprep.mubr.f32.mxu1 %v11238_v48  ;;  %8645 = vmatpush3.bf16.msra.mxu1 %v11208_v37 }
 0x2e5   :  { %8003 = vmatmul.mubr.f32.gmra.mrb[10].mxu1 %v9975_v44 }
 0x2e6   :  { %8005 = vmatprep.mubr.f32.mxu1 %v9989_v7 }
 0x2e9   :  { %8006 = vmatmul.mubr.f32.gmra.mrb[12].mxu1 %v9992_v0 }
 0x2ea   :  { %8008 = vmatprep.mubr.f32.mxu1 %v9979_v23 }
 0x2ed   :  { %8009 = vmatmul.mubr.f32.gmra.mrb[14].mxu1 %v9997_v20 }
 0x2ee   :  { %8011 = vmatprep.mubr.f32.mxu1 %v10007_v59 }
 0x2f1   :  { %8012 = vmatmul.mubr.f32.gmra.mrb[16].mxu1 %v10030_v6 }
 0x2f2   :  { %8014 = vmatprep.mubr.f32.mxu1 %v9880_v13 }
 0x2f5   :  { %8015 = vmatmul.mubr.f32.gmra.mrb[2].mxu1 %v9887_v27 }
 0x2f6   :  { %8017 = vmatprep.mubr.f32.mxu1 %v9912_v63 }
 0x2f9   :  { %8018 = vmatmul.mubr.f32.gmra.mrb[4].mxu1 %v9973_v9 }
 0x2fa   :  { %8028 = vmatprep.mubr.f32.mxu1 %v11234_v39 }
 0x2fd   :  { %8029 = vmatmul.mubr.f32.vlgmr.msra.gmra.mrb[6].mxu1 %v11235_v60 }
 0x2fe   :  { %8031 = vmatprep.mubr.f32.mxu1 %v11236_v25 }
 0x301   :  { %8032 = vmatmul.mubr.f32.gmra.mrb[8].mxu1 %v11237_v55 }
 0x302   :  { %8034 = vmatprep.mubr.f32.mxu1 %v11238_v48 }
 0x305   :  { %8035 = vmatmul.mubr.f32.gmra.mrb[10].mxu1 %v9975_v44 }
 0x306   :  { %8037 = vmatprep.mubr.f32.mxu1 %v9989_v7 }
 0x309   :  { %8038 = vmatmul.mubr.f32.gmra.mrb[12].mxu1 %v9992_v0 }
 0x30a   :  { %8040 = vmatprep.mubr.f32.mxu1 %v9979_v23 }
 0x30d   :  { %8041 = vmatmul.mubr.f32.gmra.mrb[14].mxu1 %v9997_v20 }
 0x30e   :  { %8043 = vmatprep.mubr.f32.mxu1 %v10007_v59 }
 0x311   :  { %8044 = vmatmul.mubr.f32.gmra.mrb[16].mxu1 %v10030_v6 }
 0x312   :  { %8046 = vmatprep.mubr.f32.mxu1 %v9880_v13 }
 0x315   :  { %8047 = vmatmul.mubr.f32.gmra.mrb[2].mxu1 %v9887_v27  ;;  %v3882_v27 = vld [vmem:[%s11124_s8] sm:$0xf] }
 0x316   :  { %8049 = vmatprep.mubr.f32.mxu1 %v9912_v63  ;;  %v3933_v63 = vsel %vm3931_vm1, %v3882_v27, 0 }
 0x319   :  { %8050 = vmatmul.mubr.f32.gmra.mrb[4].mxu1 %v9973_v9  ;;  %v10300_v9 = vand.u32 4294901760, %v3933_v63 }
 0x31b   :  { %8052 = vmatprep.subr.mxu0 %v10300_v9  ;;  %v10304_v37 = vsub.f32 %v3933_v63, %v10300_v9 }
 0x31c   :  { %8053 = vmatpush3.msra.mxu0 %v10300_v9 }
 0x31d   :  { %v10308_v49 = vand.u32 4294901760, %v10304_v37 }
 0x31f   :  { %v4165_v15 = vsub.f32 %v10304_v37, %v10308_v49 }
 0x321   :  { %v10312_v28 = vand.u32 4294901760, %v4165_v15 }
 0x323   :  { %8078 = vmatprep.subr.mxu0 %v10312_v28 }
 0x340   :  { %v7870_v41 = vpop.f32.mrb[4].mxu0 }
 0x341   :  { %v2474_v1 = vpop.f32.mrb[5].mxu0 }
 0x346   :  { %v7873_v44 = vpop.f32.mrb[6].mxu0 }
 0x347   :  { %v2494_v7 = vpop.f32.mrb[7].mxu0 }
 0x34c   :  { %v7876_v0 = vpop.f32.mrb[8].mxu0 }
 0x34d   :  { %v2514_v23 = vpop.f32.mrb[9].mxu0 }
 0x350   :  { %v7879_v12 = vpop.f32.mrb[10].mxu0 }
 0x351   :  { %v2534_v20 = vpop.f32.mrb[11].mxu0 }
 0x354   :  { %v10289_v19 = vpop.f32.mrb[12].mxu0 }
 0x355   :  { %v10291_v59 = vpop.f32.mrb[13].mxu0 }
 0x358   :  { %v10293_v6 = vpop.f32.mrb[14].mxu0 }
 0x359   :  { %v10295_v13 = vpop.f32.mrb[15].mxu0 }
 0x3d0   :  { %v8030_v43 = vpop.f32.mrb[6].mxu1 }
 0x3d1   :  { %v8842_v40 = vadd.f32 %v8030_v43, %v7870_v41  ;;  %v3435_v18 = vpop.f32.mrb[7].mxu1 }
 0x3d2   :  { %v8843_v17 = vadd.f32 %v3435_v18, %v2474_v1 }
 0x3d3   :  { %v3537_v8 = vsel %vm3529_vm2, %v8842_v40, -inf }
 0x3d4   :  { %v3538_v32 = vrot.slane %v3537_v8, 4  ;;  %v3530_v54 = vsel %vm3529_vm2, %v8843_v17, -inf  ;;  %v8033_v51 = vpop.f32.mrb[8].mxu1 }
 0x3d5   :  { %v3531_v42 = vrot.slane %v3530_v54, 4  ;;  %v10317_v61 = vadd.f32 %v8033_v51, %v7873_v44  ;;  %v3447_v56 = vpop.f32.mrb[9].mxu1 }
 0x3d6   :  { %v3539_v45 = vmax.f32 %v3537_v8, %v3538_v32  ;;  %v10319_v10 = vadd.f32 %v3447_v56, %v2494_v7 }
 0x3d7   :  { %v3532_v46 = vmax.f32 %v3530_v54, %v3531_v42  ;;  %v3551_v16 = vsel %vm3529_vm2, %v10317_v61, -inf }
 0x3d8   :  { %v3540_v24 = vrot.slane %v3539_v45, 2  ;;  %v3552_v50 = vrot.slane %v3551_v16, 4  ;;  %v3544_v11 = vsel %vm3529_vm2, %v10319_v10, -inf  ;;  %v8036_v58 = vpop.f32.mrb[10].mxu1 }
 0x3d9   :  { %v3533_v21 = vrot.slane %v3532_v46, 2  ;;  %v3545_v47 = vrot.slane %v3544_v11, 4  ;;  %v10325_v22 = vadd.f32 %v8036_v58, %v7876_v0  ;;  %v3459_v57 = vpop.f32.mrb[11].mxu1 }
 0x3da   :  { %v3541_v26 = vmax.f32 %v3539_v45, %v3540_v24  ;;  %v3553_v39 = vmax.f32 %v3551_v16, %v3552_v50  ;;  %v10327_v60 = vadd.f32 %v3459_v57, %v2514_v23 }
 0x3db   :  { %v3534_v25 = vmax.f32 %v3532_v46, %v3533_v21  ;;  %v3546_v55 = vmax.f32 %v3544_v11, %v3545_v47  ;;  %v3565_v48 = vsel %vm3529_vm2, %v10325_v22, -inf }
 0x3dc   :  { %v3542_v41 = vrot.slane %v3541_v26, 1  ;;  %v3554_v1 = vrot.slane %v3553_v39, 2  ;;  %v3566_v44 = vrot.slane %v3565_v48, 4  ;;  %v3558_v7 = vsel %vm3529_vm2, %v10327_v60, -inf  ;;  %v8039_v27 = vpop.f32.mrb[12].mxu1 }
 0x3dd   :  { %v3535_v63 = vrot.slane %v3534_v25, 1  ;;  %v3547_v0 = vrot.slane %v3546_v55, 2  ;;  %v3559_v15 = vrot.slane %v3558_v7, 4  ;;  %v10333_v43 = vadd.f32 %v8039_v27, %v7879_v12  ;;  %v3471_v18 = vpop.f32.mrb[13].mxu1 }
 0x3de   :  { %v3543_v23 = vmax.f32 %v3541_v26, %v3542_v41  ;;  %v3555_v8 = vmax.f32 %v3553_v39, %v3554_v1  ;;  %v3567_v32 = vmax.f32 %v3565_v48, %v3566_v44  ;;  %v10335_v54 = vadd.f32 %v3471_v18, %v2534_v20 }
 0x3df   :  { %v3536_v51 = vmax.f32 %v3534_v25, %v3535_v63  ;;  %v3548_v42 = vmax.f32 %v3546_v55, %v3547_v0  ;;  %v3560_v56 = vmax.f32 %v3558_v7, %v3559_v15  ;;  %v3579_v45 = vsel %vm3529_vm2, %v10333_v43, -inf }
 0x3e0   :  { %v3643_v46 = vsub.f32 %v8842_v40, %v3543_v23  ;;  %v3556_v16 = vrot.slane %v3555_v8, 1  ;;  %v3568_v24 = vrot.slane %v3567_v32, 2  ;;  %v3580_v50 = vrot.slane %v3579_v45, 4  ;;  %v8042_v11 = vpop.f32.mrb[14].mxu1 }
 0x3e1   :  { %v3642_v58 = vsub.f32 %v8843_v17, %v3536_v51  ;;  %v3549_v12 = vrot.slane %v3548_v42, 1  ;;  %v3561_v21 = vrot.slane %v3560_v56, 2  ;;  %v3572_v47 = vsel %vm3529_vm2, %v10335_v54, -inf  ;;  %v3483_v57 = vpop.f32.mrb[15].mxu1 }
 0x3e2   :  { %v3660_v20 = vmul.f32 1.442695, %v3643_v46  ;;  %v3557_v26 = vmax.f32 %v3555_v8, %v3556_v16  ;;  %v3569_v39 = vmax.f32 %v3567_v32, %v3568_v24  ;;  %v3581_v25 = vmax.f32 %v3579_v45, %v3580_v50 }
 0x3e3   :  { %v3658_v55 = vmul.f32 1.442695, %v3642_v58  ;;  %v3550_v48 = vmax.f32 %v3548_v42, %v3549_v12  ;;  %v3562_v41 = vmax.f32 %v3560_v56, %v3561_v21  ;;  %v3573_v1 = vrot.slane %v3572_v47, 4 }
 0x3e4   :  { %9077 = vpow2.f32 %v3660_v20  ;;  %v3645_v40 = vsub.f32 %v10317_v61, %v3557_v26  ;;  %v3570_v44 = vrot.slane %v3569_v39, 1  ;;  %v3582_v7 = vrot.slane %v3581_v25, 2  ;;  %v8045_v17 = vpop.f32.mrb[16].mxu1 }
 0x3e5   :  { %9079 = vpow2.f32 %v3658_v55  ;;  %v3644_v27 = vsub.f32 %v10319_v10, %v3550_v48  ;;  %v3563_v63 = vrot.slane %v3562_v41, 1  ;;  %v3574_v0 = vmax.f32 %v3572_v47, %v3573_v1  ;;  %v3495_v15 = vpop.f32.mrb[17].mxu1 }
 0x3e6   :  { %v3664_v18 = vmul.f32 1.442695, %v3645_v40  ;;  %v3571_v23 = vmax.f32 %v3569_v39, %v3570_v44  ;;  %v3583_v8 = vmax.f32 %v3581_v25, %v3582_v7  ;;  %v10344_v32 = vadd.f32 %v8042_v11, %v10289_v19 }
 0x3e7   :  { %v3662_v51 = vmul.f32 1.442695, %v3644_v27  ;;  %v3564_v42 = vmax.f32 %v3562_v41, %v3563_v63  ;;  %v3575_v56 = vrot.slane %v3574_v0, 2  ;;  %v10347_v61 = vadd.f32 %v3483_v57, %v10291_v59 }
 0x3e8   :  { %9081 = vpow2.f32 %v3664_v18  ;;  %v3647_v45 = vsub.f32 %v10325_v22, %v3571_v23  ;;  %v3584_v46 = vrot.slane %v3583_v8, 1  ;;  %v3593_v10 = vsel %vm3529_vm2, %v10344_v32, -inf  ;;  %v10352_v16 = vpop.f32.mrb[2].mxu1 }
 0x3e9   :  { %9083 = vpow2.f32 %v3662_v51  ;;  %v3646_v24 = vsub.f32 %v10327_v60, %v3564_v42  ;;  %v3576_v19 = vmax.f32 %v3574_v0, %v3575_v56  ;;  %v3594_v50 = vrot.slane %v3593_v10, 4  ;;  %v10355_v11 = vpop.f32.mrb[3].mxu1 }
 0x3ea   :  { %v3668_v58 = vmul.f32 1.442695, %v3647_v45  ;;  %v3585_v12 = vmax.f32 %v3583_v8, %v3584_v46  ;;  %v3586_v59 = vsel %vm3529_vm2, %v10347_v61, -inf  ;;  %v10360_v22 = vadd.f32 %v8045_v17, %v10293_v6 }
 0x3eb   :  { %v3666_v21 = vmul.f32 1.442695, %v3646_v24  ;;  %v3577_v47 = vrot.slane %v3576_v19, 1  ;;  %v3595_v57 = vmax.f32 %v3593_v10, %v3594_v50  ;;  %v3587_v20 = vrot.slane %v3586_v59, 4 }
 0x3ec   :  { %9085 = vpow2.f32 %v3668_v58  ;;  %v3649_v26 = vsub.f32 %v10333_v43, %v3585_v12  ;;  %v3607_v60 = vsel %vm3529_vm2, %v10360_v22, -inf  ;;  %v10366_v39 = vadd.f32 %v3495_v15, %v10295_v13  ;;  %v10368_v25 = vpop.f32.mrb[4].mxu1 }
 0x3ed   :  { %9087 = vpow2.f32 %v3666_v21  ;;  %v3578_v55 = vmax.f32 %v3576_v19, %v3577_v47  ;;  %v3596_v48 = vrot.slane %v3595_v57, 2  ;;  %v3588_v6 = vmax.f32 %v3586_v59, %v3587_v20  ;;  %v10370_v41 = vpop.f32.mrb[5].mxu1 }
 0x3ee   :  { %v10372_v1 = vpop.eup %9077  ;;  %v3672_v40 = vmul.f32 1.442695, %v3649_v26  ;;  %v3608_v44 = vrot.slane %v3607_v60, 4  ;;  %v3600_v43 = vsel %vm3529_vm2, %v10366_v39, -inf }
 0x3ef   :  { %v10376_v7 = vpop.eup %9079  ;;  %v3697_v13 = vsel %vm3529_vm2, %v10372_v1, 0.0  ;;  %v3648_v17 = vsub.f32 %v10335_v54, %v3578_v55  ;;  %v3597_v27 = vmax.f32 %v3595_v57, %v3596_v48  ;;  %v3589_v63 = vrot.slane %v3588_v6, 2 }
 0x3f0   :  { %v3698_v0 = vrot.slane %v3697_v13, 4  ;;  %v3690_v15 = vsel %vm3529_vm2, %v10376_v7, 0.0  ;;  %9089 = vpow2.f32 %v3672_v40  ;;  %v3609_v18 = vmax.f32 %v3607_v60, %v3608_v44 }
 0x3f1   :  { %v3691_v23 = vrot.slane %v3690_v15, 4  ;;  %v3670_v8 = vmul.f32 1.442695, %v3648_v17  ;;  %v3598_v51 = vrot.slane %v3597_v27, 1  ;;  %v3590_v42 = vmax.f32 %v3588_v6, %v3589_v63 }
 0x3f2   :  { %v10383_v56 = vpop.eup %9081  ;;  %v3699_v45 = vadd.f32 %v3698_v0, %v3697_v13  ;;  %v3610_v46 = vrot.slane %v3609_v18, 2  ;;  %v3601_v10 = vrot.slane %v3600_v43, 4  ;;  %v3621_v54 = vsel %vm3529_vm2, %v10352_v16, -inf }
 0x3f3   :  { %v10387_v24 = vpop.eup %9083  ;;  %v3692_v19 = vadd.f32 %v3691_v23, %v3690_v15  ;;  %v3711_v50 = vsel %vm3529_vm2, %v10383_v56, 0.0  ;;  %9091 = vpow2.f32 %v3670_v8  ;;  %v3599_v58 = vmax.f32 %v3597_v27, %v3598_v51 }
 0x3f4   :  { %v3700_v12 = vrot.slane %v3699_v45, 2  ;;  %v3712_v59 = vrot.slane %v3711_v50, 4  ;;  %v3704_v21 = vsel %vm3529_vm2, %v10387_v24, 0.0  ;;  %v3591_v47 = vrot.slane %v3590_v42, 1 }
 0x3f5   :  { %v3693_v57 = vrot.slane %v3692_v19, 2  ;;  %v3705_v20 = vrot.slane %v3704_v21, 4  ;;  %v3651_v26 = vsub.f32 %v10344_v32, %v3599_v58  ;;  %v3622_v60 = vrot.slane %v3621_v54, 4 }
 0x3f6   :  { %v10394_v55 = vpop.eup %9085  ;;  %v3701_v48 = vadd.f32 %v3700_v12, %v3699_v45  ;;  %v3713_v6 = vadd.f32 %v3712_v59, %v3711_v50  ;;  %v3592_v40 = vmax.f32 %v3590_v42, %v3591_v47  ;;  %v3611_v44 = vmax.f32 %v3609_v18, %v3610_v46 }
 0x3f7   :  { %v10396_v13 = vpop.eup %9087  ;;  %v10398_v17 = vadd.f32 %v3693_v57, %v3692_v19  ;;  %v3706_v27 = vadd.f32 %v3705_v20, %v3704_v21  ;;  %v3725_v63 = vsel %vm3529_vm2, %v10394_v55, 0.0  ;;  %v3676_v0 = vmul.f32 1.442695, %v3651_v26 }
 0x3f8   :  { %v3702_v15 = vrot.slane %v3701_v48, 1  ;;  %v3714_v23 = vrot.slane %v3713_v6, 2  ;;  %v3726_v8 = vrot.slane %v3725_v63, 4  ;;  %v3718_v32 = vsel %vm3529_vm2, %v10396_v13, 0.0 }
 0x3f9   :  { %v3707_v51 = vrot.slane %v3706_v27, 2  ;;  %v3719_v45 = vrot.slane %v3718_v32, 4  ;;  %9093 = vpow2.f32 %v3676_v0  ;;  %v3602_v42 = vmax.f32 %v3600_v43, %v3601_v10 }
 0x3fa   :  { %v10404_v18 = vpop.eup %9089  ;;  %v3703_v46 = vadd.f32 %v3702_v15, %v3701_v48  ;;  %v10406_v19 = vadd.f32 %v3714_v23, %v3713_v6  ;;  %v3727_v50 = vadd.f32 %v3726_v8, %v3725_v63  ;;  %v3650_v58 = vsub.f32 %v10347_v61, %v3592_v40 }
 0x3fb   :  { %v10409_v12 = vadd.f32 %v3707_v51, %v3706_v27  ;;  %v3720_v59 = vadd.f32 %v3719_v45, %v3718_v32  ;;  %v3739_v21 = vsel %vm3529_vm2, %v10404_v18, 0.0  ;;  %v3612_v47 = vrot.slane %v3611_v44, 1 }
 0x3fc   :  { %9095 = vrcp.f32 %v3703_v46  ;;  %v3695_v57 = vrot.slane %v10398_v17, 1  ;;  %v3728_v20 = vrot.slane %v3727_v50, 2  ;;  %v3740_v43 = vrot.slane %v3739_v21, 4 }
 0x3fd   :  { %v10414_v10 = vpop.eup %9091  ;;  %v3721_v48 = vrot.slane %v3720_v59, 2  ;;  %v3674_v6 = vmul.f32 1.442695, %v3650_v58  ;;  %v3613_v63 = vmax.f32 %v3611_v44, %v3612_v47  ;;  %v3603_v0 = vrot.slane %v3602_v42, 2 }
 0x3fe   :  { %v10417_v61 = vadd.f32 %v3728_v20, %v3727_v50  ;;  %v3741_v40 = vadd.f32 %v3740_v43, %v3739_v21  ;;  %v3732_v27 = vsel %vm3529_vm2, %v10414_v10, 0.0  ;;  %v3709_v15 = vrot.slane %v10409_v12, 1 }
 0x3ff   :  { %v3733_v23 = vrot.slane %v3732_v27, 4  ;;  %9097 = vpow2.f32 %v3674_v6  ;;  %v3653_v8 = vsub.f32 %v10360_v22, %v3613_v63  ;;  %v10423_v32 = vadd.f32 %v3721_v48, %v3720_v59 }
 0x400   :  { %v3742_v51 = vrot.slane %v3741_v40, 2  ;;  %v3604_v45 = vmax.f32 %v3602_v42, %v3603_v0  ;;  %v3623_v26 = vmax.f32 %v3621_v54, %v3622_v60  ;;  %v3614_v21 = vsel %vm3529_vm2, %v10355_v11, -inf }
 0x401   :  { %v3734_v50 = vadd.f32 %v3733_v23, %v3732_v27  ;;  %v3680_v58 = vmul.f32 1.442695, %v3653_v8  ;;  %v3615_v31 = vrot.slane %v3614_v21, 4  ;;  %v3635_v42 = vsel %vm3529_vm2, %v10368_v25, -inf }
 0x402   :  { %v10428_v47 = vadd.f32 %v3742_v51, %v3741_v40  ;;  %v3605_v20 = vrot.slane %v3604_v45, 1  ;;  %v3624_v43 = vrot.slane %v3623_v26, 2  ;;  %v3628_v54 = vsel %vm3529_vm2, %v10370_v41, -inf }
 0x403   :  { %v10430_v6 = vpop.eup %9093  ;;  %v3735_v22 = vrot.slane %v3734_v50, 2  ;;  %9099 = vpow2.f32 %v3680_v58  ;;  %v3723_v60 = vrot.slane %v10423_v32, 1  ;;  %v3616_v0 = vmax.f32 %v3614_v21, %v3615_v31 }
 0x404   :  { %v3753_v59 = vsel %vm3529_vm2, %v10430_v6, 0.0  ;;  %v3606_v48 = vmax.f32 %v3604_v45, %v3605_v20  ;;  %v3625_v63 = vmax.f32 %v3623_v26, %v3624_v43  ;;  %v3744_v40 = vrot.slane %v10428_v47, 1 }
 0x405   :  { %v3754_v27 = vrot.slane %v3753_v59, 4  ;;  %v3636_v23 = vrot.slane %v3635_v42, 4  ;;  %v3629_v44 = vrot.slane %v3628_v54, 4  ;;  %v3696_v34 = vadd.f32 %v3695_v57, %v10398_v17 }
 0x406   :  { %v9096_v8 = vpop.eup %9095  ;;  %v3652_v51 = vsub.f32 %v10366_v39, %v3606_v48  ;;  %v3626_v58 = vrot.slane %v3625_v63, 1  ;;  %v3736_v14 = vadd.f32 %v3735_v22, %v3734_v50  ;;  %v3617_v38 = vrot.slane %v3616_v0, 2 }
 0x407   :  { %v3819_v35 = vmul.f32 %v9096_v8, %v3703_v46  ;;  %v3755_v3 = vadd.f32 %v3754_v27, %v3753_v59  ;;  %v3637_v45 = vmax.f32 %v3635_v42, %v3636_v23  ;;  %v3630_v26 = vmax.f32 %v3628_v54, %v3629_v44 }
 0x408   :  { %v3678_v62 = vmul.f32 1.442695, %v3652_v51  ;;  %v3627_v53 = vmax.f32 %v3625_v63, %v3626_v58  ;;  %v3618_v21 = vmax.f32 %v3616_v0, %v3617_v38  ;;  %9101 = vrcp.f32 %v3696_v34 }
 0x409   :  { %v10442_v20 = vpop.eup %9097  ;;  %v3835_v43 = vsub.f32 2.0, %v3819_v35  ;;  %v3756_v31 = vrot.slane %v3755_v3, 2  ;;  %v3638_v46 = vrot.slane %v3637_v45, 2  ;;  %v3737_v50 = vrot.slane %v3736_v14, 1 }
 0x40a   :  { %v3746_v39 = vsel %vm3529_vm2, %v10442_v20, 0.0  ;;  %9103 = vpow2.f32 %v3678_v62  ;;  %v3655_v17 = vsub.f32 %v10352_v16, %v3627_v53  ;;  %v3619_v59 = vrot.slane %v3618_v21, 1 }
 0x40b   :  { %v3851_v57 = vmul.f32 %v9096_v8, %v3835_v43  ;;  %v3747_v22 = vrot.slane %v3746_v39, 4  ;;  %v3639_v42 = vmax.f32 %v3637_v45, %v3638_v46  ;;  %v3631_v44 = vrot.slane %v3630_v26, 2 }
 0x40c   :  { %v3684_v48 = vmul.f32 1.442695, %v3655_v17  ;;  %v3710_v54 = vadd.f32 %v3709_v15, %v10409_v12  ;;  %v3757_v63 = vadd.f32 %v3756_v31, %v3755_v3  ;;  %v3620_v0 = vmax.f32 %v3618_v21, %v3619_v59 }
 0x40d   :  { %v10448_v35 = vpop.eup %9099  ;;  %v3867_v38 = vmul.f32 %v10372_v1, %v3851_v57  ;;  %v3748_v27 = vadd.f32 %v3747_v22, %v3746_v39  ;;  %v3640_v62 = vrot.slane %v3639_v42, 1  ;;  %v3632_v16 = vmax.f32 %v3630_v26, %v3631_v44 }
 0x40e   :  { %v3767_v53 = vsel %vm3529_vm2, %v10448_v35, 0.0  ;;  %9105 = vpow2.f32 %v3684_v48  ;;  %v3654_v58 = vsub.f32 %v10355_v11, %v3620_v0  ;;  %v11239_v31 = vrot.slane %v10406_v19, 1 }
 0x40f   :  { %v3887_v23 = vsel %vm3529_vm2, %v3867_v38, 0  ;;  %v3749_v8 = vrot.slane %v3748_v27, 2  ;;  %v3768_v51 = vrot.slane %v3767_v53, 4  ;;  %v3641_v15 = vmax.f32 %v3639_v42, %v3640_v62 }
 0x410   :  { %v10455_v12 = vand.u32 4294901760, %v3887_v23  ;;  %v3633_v45 = vrot.slane %v3632_v16, 1  ;;  %9107 = vrcp.f32 %v3710_v54  ;;  %v3682_v43 = vmul.f32 1.442695, %v3654_v58 }
 0x411   :  { %v3750_v3 = vadd.f32 %v3749_v8, %v3748_v27  ;;  %v3769_v1 = vadd.f32 %v3768_v51, %v3767_v53  ;;  %v3717_v21 = vadd.f32 %v11239_v31, %v10406_v19  ;;  %v3657_v26 = vsub.f32 %v10368_v25, %v3641_v15 }
 0x412   :  { %v3634_v39 = vmax.f32 %v3632_v16, %v3633_v45  ;;  %v10462_v17 = vsub.f32 %v3887_v23, %v10455_v12  ;;  %v10465_v11 = vadd.f32 %v3723_v60, %v10423_v32  ;;  %v9102_v46 = vpop.eup %9101  ;;  %9109 = vpow2.f32 %v3682_v43 }
 0x413   :  { %v3751_v57 = vrot.slane %v3750_v3, 1  ;;  %v3770_v22 = vrot.slane %v3769_v1, 2  ;;  %v11240_v59 = vrot.slane %v10417_v61, 1  ;;  %v3688_v19 = vmul.f32 1.442695, %v3657_v26 }
 0x414   :  { %v10472_v42 = vpop.eup %9103  ;;  %v3656_v25 = vsub.f32 %v10370_v41, %v3634_v39  ;;  %v3818_v44 = vmul.f32 %v9102_v46, %v3696_v34  ;;  %v11167_v38 = vand.u32 4294901760, %v10462_v17  ;;  %9111 = vrcp.f32 %v3717_v21 }
 0x415   :  { %v10470_v48 = vadd.f32 %v11240_v59, %v10417_v61  ;;  %v3771_v27 = vadd.f32 %v3770_v22, %v3769_v1  ;;  %v3760_v32 = vsel %vm3529_vm2, %v10472_v42, 0.0  ;;  %v10478_v60 = vadd.f32 %v3737_v50, %v3736_v14 }
 0x416   :  { %v3761_v0 = vrot.slane %v3760_v32, 4  ;;  %9113 = vpow2.f32 %v3688_v19  ;;  %v3686_v53 = vmul.f32 1.442695, %v3656_v25  ;;  %v3834_v61 = vsub.f32 2.0, %v3818_v44 }
 0x417   :  { %v3758_v62 = vrot.slane %v3757_v63, 1  ;;  %v3772_v16 = vrot.slane %v3771_v27, 1  ;;  %9115 = vrcp.f32 %v10465_v11  ;;  %v10486_v8 = vsub.f32 %v10462_v17, %v11167_v38 }
 0x418   :  { %v10481_v23 = vpop.eup %9105  ;;  %v3762_v34 = vadd.f32 %v3761_v0, %v3760_v32  ;;  %9117 = vpow2.f32 %v3686_v53  ;;  %v3850_v41 = vmul.f32 %v9102_v46, %v3834_v61  ;;  %v10494_v50 = vadd.f32 %v3744_v40, %v10428_v47 }
 0x419   :  { %v3781_v14 = vsel %vm3529_vm2, %v10481_v23, 0.0  ;;  %9119 = vrcp.f32 %v10470_v48  ;;  %v10496_v51 = vadd.f32 %v3751_v57, %v3750_v3  ;;  %v10500_v31 = vadd.f32 %v3758_v62, %v3757_v63 }
 0x41a   :  { %v9108_v58 = vpop.eup %9107  ;;  %v3763_v15 = vrot.slane %v3762_v34, 2  ;;  %v3782_v45 = vrot.slane %v3781_v14, 4  ;;  %v3866_v1 = vmul.f32 %v10376_v7, %v3850_v41  ;;  %9121 = vrcp.f32 %v10478_v60 }
 0x41b   :  { %v3820_v43 = vmul.f32 %v9108_v58, %v3710_v54  ;;  %v10503_v22 = vadd.f32 %v3772_v16, %v3771_v27  ;;  %v4015_v3 = vand.u32 4294901760, %v10486_v8  ;;  %9123 = vrcp.f32 %v10494_v50 }
 0x41c   :  { %v3764_v26 = vadd.f32 %v3763_v15, %v3762_v34  ;;  %v3783_v39 = vadd.f32 %v3782_v45, %v3781_v14  ;;  %v3884_v46 = vsel %vm3529_vm2, %v3866_v1, 0  ;;  %v10505_v47 = vpop.eup %9109  ;;  %9125 = vrcp.f32 %v10496_v51 }
 0x41d   :  { %v10507_v40 = vand.u32 4294901760, %v3884_v46  ;;  %v3836_v57 = vsub.f32 2.0, %v3820_v43  ;;  %v3774_v54 = vsel %vm3529_vm2, %v10505_v47, 0.0  ;;  %9127 = vrcp.f32 %v10500_v31 }
 0x41e   :  { %v3765_v7 = vrot.slane %v3764_v26, 1  ;;  %v3784_v59 = vrot.slane %v3783_v39, 2  ;;  %v9112_v63 = vpop.eup %9111  ;;  %v3775_v19 = vrot.slane %v3774_v54, 4  ;;  %9129 = vrcp.f32 %v10503_v22 }
 0x41f   :  { %v10515_v25 = vsub.f32 %v3884_v46, %v10507_v40  ;;  %v3852_v44 = vmul.f32 %v9108_v58, %v3836_v57  ;;  %v3821_v0 = vmul.f32 %v9112_v63, %v3717_v21 }
 0x420   :  { %v10518_v27 = vpop.eup %9113  ;;  %v10520_v32 = vadd.f32 %v3784_v59, %v3783_v39  ;;  %v10522_v53 = vadd.f32 %v3765_v7, %v3764_v26  ;;  %v3776_v62 = vadd.f32 %v3775_v19, %v3774_v54 }
 0x421   :  { %v9116_v61 = vpop.eup %9115  ;;  %v3795_v16 = vsel %vm3529_vm2, %v10518_v27, 0.0  ;;  %v11168_v34 = vand.u32 4294901760, %v10515_v25  ;;  %v3868_v41 = vmul.f32 %v10387_v24, %v3852_v44  ;;  %v3837_v15 = vsub.f32 2.0, %v3821_v0 }
 0x422   :  { %v10529_v8 = vpop.eup %9117  ;;  %v3796_v58 = vrot.slane %v3795_v16, 4  ;;  %v3822_v21 = vmul.f32 %v9116_v61, %v10465_v11  ;;  %v3777_v1 = vrot.slane %v3776_v62, 2  ;;  %9131 = vrcp.f32 %v10522_v53 }
 0x423   :  { %v9120_v45 = vpop.eup %9119  ;;  %v3788_v43 = vsel %vm3529_vm2, %v10529_v8, 0.0  ;;  %v4004_v26 = vsub.f32 %v10515_v25, %v11168_v34  ;;  %v3890_v39 = vsel %vm3529_vm2, %v3868_v41, 0  ;;  %v3853_v59 = vmul.f32 %v9112_v63, %v3837_v15 }
 0x424   :  { %v9122_v24 = vpop.eup %9121  ;;  %v3797_v46 = vadd.f32 %v3796_v58, %v3795_v16  ;;  %v3789_v57 = vrot.slane %v3788_v43, 4  ;;  %v10539_v7 = vand.u32 4294901760, %v3890_v39  ;;  %v10541_v54 = vadd.f32 %v3777_v1, %v3776_v62 }
 0x425   :  { %v4005_v11 = vand.u32 4294901760, %v4004_v26  ;;  %v3838_v19 = vsub.f32 2.0, %v3822_v21  ;;  %v3823_v44 = vmul.f32 %v9120_v45, %v10470_v48  ;;  %v3869_v34 = vmul.f32 %v10383_v56, %v3853_v59  ;;  %v9124_v41 = vpop.eup %9123 }
 0x426   :  { %v3798_v0 = vrot.slane %v3797_v46, 2  ;;  %v3790_v38 = vadd.f32 %v3789_v57, %v3788_v43  ;;  %v10545_v14 = vsub.f32 %v3890_v39, %v10539_v7  ;;  %v3779_v16 = vrot.slane %v10541_v54, 1  ;;  %v9126_v62 = vpop.eup %9125 }
 0x427   :  { %8054 = vmatprep.mubr.f32.mxu0 %v4005_v11  ;;  %v3854_v58 = vmul.f32 %v9116_v61, %v3838_v19  ;;  %v3839_v29 = vsub.f32 2.0, %v3823_v44  ;;  %v3824_v63 = vmul.f32 %v9122_v24, %v10478_v60  ;;  %v3893_v1 = vsel %vm3529_vm2, %v3869_v34, 0  ;;  %v9128_v43 = vpop.eup %9127 }
 0x428   :  { %v10550_v15 = vadd.f32 %v3798_v0, %v3797_v46  ;;  %v3791_v21 = vrot.slane %v3790_v38, 2  ;;  %8055 = vmatmul.mubr.f32.vlgmr.msra.gmra.mrb[16].mxu0 %v4015_v3  ;;  %v4023_v48 = vand.u32 4294901760, %v10545_v14  ;;  %v10555_v56 = vand.u32 4294901760, %v3893_v1  ;;  %v9130_v57 = vpop.eup %9129 }
 0x429   :  { %8079 = vmatpush3.msra.mxu0 %v10312_v28  ;;  %v3870_v26 = vmul.f32 %v10396_v13, %v3854_v58  ;;  %v3855_v61 = vmul.f32 %v9120_v45, %v3839_v29  ;;  %v3840_v39 = vsub.f32 2.0, %v3824_v63  ;;  %v3825_v34 = vmul.f32 %v9124_v41, %v10494_v50 }
 0x42a   :  { %v3800_v60 = vrot.slane %v10550_v15, 1  ;;  %v10559_v46 = vadd.f32 %v3791_v21, %v3790_v38  ;;  %v4024_v3 = vsub.f32 %v10545_v14, %v4023_v48  ;;  %8104 = vmatprep.subr.mxu0 %v10304_v37  ;;  %v10567_v28 = vsub.f32 %v3893_v1, %v10555_v56 }
 0x42b   :  { %v3896_v13 = vsel %vm3529_vm2, %v3870_v26, 0  ;;  %v3871_v29 = vmul.f32 %v10394_v55, %v3855_v61  ;;  %v3856_v45 = vmul.f32 %v9122_v24, %v3840_v39  ;;  %v3841_v19 = vsub.f32 2.0, %v3825_v34 }
 0x42c   :  { %v3793_v59 = vrot.slane %v10559_v46, 1  ;;  %v4025_v38 = vand.u32 4294901760, %v4024_v3  ;;  %v10572_v11 = vand.u32 4294901760, %v3896_v13  ;;  %v4033_v44 = vand.u32 4294901760, %v10567_v28 }
 0x42d   :  { %v3899_v50 = vsel %vm3529_vm2, %v3871_v29, 0  ;;  %v3872_v0 = vmul.f32 %v10414_v10, %v3856_v45  ;;  %v3826_v58 = vmul.f32 %v9126_v62, %v10496_v51  ;;  %v3857_v24 = vmul.f32 %v9124_v41, %v3841_v19 }
 0x42e   :  { %8057 = vmatprep.mubr.f32.mxu0 %v4025_v38  ;;  %v10579_v63 = vsub.f32 %v3896_v13, %v10572_v11  ;;  %v10581_v55 = vand.u32 4294901760, %v3899_v50  ;;  %v3827_v21 = vmul.f32 %v9128_v43, %v10500_v31  ;;  %v4034_v1 = vsub.f32 %v10567_v28, %v4033_v44 }
 0x42f   :  { %v3902_v26 = vsel %vm3529_vm2, %v3872_v0, 0  ;;  %v3842_v61 = vsub.f32 2.0, %v3826_v58  ;;  %v3873_v41 = vmul.f32 %v10404_v18, %v3857_v24  ;;  %v3829_v13 = vmul.f32 %v9130_v57, %v10503_v22 }
 0x430   :  { %v4043_v10 = vand.u32 4294901760, %v10579_v63  ;;  %v10591_v51 = vsub.f32 %v3899_v50, %v10581_v55  ;;  %v10593_v39 = vand.u32 4294901760, %v3902_v26  ;;  %v4035_v3 = vand.u32 4294901760, %v4034_v1 }
 0x431   :  { %v3858_v31 = vmul.f32 %v9126_v62, %v3842_v61  ;;  %v3843_v34 = vsub.f32 2.0, %v3827_v21  ;;  %v3905_v19 = vsel %vm3529_vm2, %v3873_v41, 0  ;;  %v3845_v0 = vsub.f32 2.0, %v3829_v13 }
 0x432   :  { %v4044_v29 = vsub.f32 %v10579_v63, %v4043_v10  ;;  %v4053_v45 = vand.u32 4294901760, %v10591_v51  ;;  %v10602_v38 = vsub.f32 %v3902_v26, %v10593_v39  ;;  %8058 = vmatmul.mubr.f32.gmra.mrb[18].mxu0 %v4035_v3  ;;  %v10605_v50 = vand.u32 4294901760, %v3905_v19 }
 0x433   :  { %v3874_v18 = vmul.f32 %v10442_v20, %v3858_v31  ;;  %v3859_v62 = vmul.f32 %v9128_v43, %v3843_v34  ;;  %v3780_v21 = vadd.f32 %v3779_v16, %v10541_v54  ;;  %v3861_v43 = vmul.f32 %v9130_v57, %v3845_v0 }
 0x434   :  { %v4045_v58 = vand.u32 4294901760, %v4044_v29  ;;  %v4054_v22 = vsub.f32 %v10591_v51, %v4053_v45  ;;  %v11172_v24 = vand.u32 4294901760, %v10602_v38  ;;  %v10616_v1 = vsub.f32 %v3905_v19, %v10605_v50 }
 0x435   :  { %v3908_v26 = vsel %vm3529_vm2, %v3874_v18, 0  ;;  %v3875_v20 = vmul.f32 %v10430_v6, %v3859_v62  ;;  %9133 = vrcp.f32 %v3780_v21  ;;  %v3877_v16 = vmul.f32 %v10448_v35, %v3861_v43  ;;  %v9132_v18 = vpop.eup %9131 }
 0x436   :  { %8060 = vmatprep.mubr.f32.mxu0 %v4045_v58  ;;  %v4055_v61 = vand.u32 4294901760, %v4054_v22  ;;  %v4064_v41 = vsub.f32 %v10602_v38, %v11172_v24  ;;  %v10623_v3 = vand.u32 4294901760, %v3908_v26  ;;  %v11171_v31 = vand.u32 4294901760, %v10616_v1 }
 0x437   :  { %v3911_v54 = vsel %vm3529_vm2, %v3875_v20, 0  ;;  %v11241_v34 = vrot.slane %v10520_v32, 1  ;;  %v3794_v19 = vadd.f32 %v3793_v59, %v10559_v46  ;;  %v3917_v35 = vsel %vm3529_vm2, %v3877_v16, 0 }
 0x438   :  { %8061 = vmatmul.mubr.f32.gmra.mrb[20].mxu0 %v4055_v61  ;;  %v4065_v57 = vand.u32 4294901760, %v4064_v41  ;;  %v10632_v13 = vsub.f32 %v3908_v26, %v10623_v3  ;;  %v10634_v29 = vand.u32 4294901760, %v3911_v54  ;;  %v4074_v62 = vsub.f32 %v10616_v1, %v11171_v31 }
 0x439   :  { %v3787_v6 = vadd.f32 %v11241_v34, %v10520_v32  ;;  %v3801_v32 = vadd.f32 %v3800_v60, %v10550_v15  ;;  %v3828_v46 = vmul.f32 %v9132_v18, %v10522_v53  ;;  %v10649_v22 = vand.u32 4294901760, %v3917_v35 }
 0x43a   :  { %8063 = vmatprep.mubr.f32.mxu0 %v4065_v57  ;;  %v11170_v0 = vand.u32 4294901760, %v10632_v13  ;;  %v10646_v58 = vsub.f32 %v3911_v54, %v10634_v29  ;;  %v4075_v59 = vand.u32 4294901760, %v4074_v62 }
 0x43b   :  { %9135 = vrcp.f32 %v3787_v6  ;;  %v3844_v43 = vsub.f32 2.0, %v3828_v46  ;;  %v10659_v53 = vsub.f32 %v3917_v35, %v10649_v22 }
 0x43c   :  { %9137 = vrcp.f32 %v3794_v19  ;;  %v4084_v26 = vsub.f32 %v10632_v13, %v11170_v0  ;;  %v11169_v20 = vand.u32 4294901760, %v10646_v58  ;;  %8064 = vmatmul.mubr.f32.gmra.mrb[22].mxu0 %v4075_v59 }
 0x43d   :  { %9139 = vrcp.f32 %v3801_v32  ;;  %v3860_v61 = vmul.f32 %v9132_v18, %v3844_v43  ;;  %v11173_v59 = vand.u32 4294901760, %v10659_v53 }
 0x43e   :  { %v4085_v15 = vand.u32 4294901760, %v4084_v26  ;;  %v4094_v60 = vsub.f32 %v10646_v58, %v11169_v20 }
 0x43f   :  { %v9134_v41 = vpop.eup %9133  ;;  %v3876_v16 = vmul.f32 %v10472_v42, %v3860_v61 }
 0x440   :  { %8066 = vmatprep.mubr.f32.mxu0 %v4085_v15  ;;  %v4095_v54 = vand.u32 4294901760, %v4094_v60  ;;  %v3830_v34 = vmul.f32 %v9134_v41, %v3780_v21  ;;  %v4114_v21 = vsub.f32 %v10659_v53, %v11173_v59 }
 0x441   :  { %v3914_v57 = vsel %vm3529_vm2, %v3876_v16, 0 }
 0x442   :  { %8067 = vmatmul.mubr.f32.gmra.mrb[24].mxu0 %v4095_v54  ;;  %v10663_v46 = vand.u32 4294901760, %v3914_v57  ;;  %v3846_v26 = vsub.f32 2.0, %v3830_v34  ;;  %v4115_v24 = vand.u32 4294901760, %v4114_v21 }
 0x444   :  { %v10667_v35 = vsub.f32 %v3914_v57, %v10663_v46  ;;  %v3862_v43 = vmul.f32 %v9134_v41, %v3846_v26 }
 0x445   :  { %v9136_v62 = vpop.eup %9135 }
 0x446   :  { %v3831_v20 = vmul.f32 %v9136_v62, %v3787_v6  ;;  %v9138_v18 = vpop.eup %9137  ;;  %v4103_v42 = vand.u32 4294901760, %v10667_v35  ;;  %v3878_v61 = vmul.f32 %v10505_v47, %v3862_v43 }
 0x447   :  { %v3832_v60 = vmul.f32 %v9138_v18, %v3794_v19  ;;  %v9140_v0 = vpop.eup %9139 }
 0x448   :  { %v3847_v15 = vsub.f32 2.0, %v3831_v20  ;;  %v3833_v34 = vmul.f32 %v9140_v0, %v3801_v32  ;;  %v4104_v6 = vsub.f32 %v10667_v35, %v4103_v42  ;;  %v3920_v41 = vsel %vm3529_vm2, %v3878_v61, 0 }
 0x449   :  { %v3848_v16 = vsub.f32 2.0, %v3832_v60  ;;  %v10678_v20 = vand.u32 4294901760, %v3920_v41 }
 0x44a   :  { %v3863_v54 = vmul.f32 %v9136_v62, %v3847_v15  ;;  %v3849_v26 = vsub.f32 2.0, %v3833_v34  ;;  %v4105_v31 = vand.u32 4294901760, %v4104_v6 }
 0x44b   :  { %v3864_v57 = vmul.f32 %v9138_v18, %v3848_v16  ;;  %v10682_v59 = vsub.f32 %v3920_v41, %v10678_v20 }
 0x44c   :  { %v3879_v19 = vmul.f32 %v10481_v23, %v3863_v54  ;;  %v3865_v62 = vmul.f32 %v9140_v0, %v3849_v26  ;;  %8069 = vmatprep.mubr.f32.mxu0 %v4105_v31 }
 0x44d   :  { %v3880_v32 = vmul.f32 %v10529_v8, %v3864_v57  ;;  %8070 = vmatmul.mubr.f32.gmra.mrb[26].mxu0 %v4115_v24  ;;  %v4123_v15 = vand.u32 4294901760, %v10682_v59 }
 0x44e   :  { %v3923_v47 = vsel %vm3529_vm2, %v3879_v19, 0  ;;  %v3881_v18 = vmul.f32 %v10518_v27, %v3865_v62 }
 0x44f   :  { %v10686_v43 = vand.u32 4294901760, %v3923_v47  ;;  %v3926_v23 = vsel %vm3529_vm2, %v3880_v32, 0  ;;  %v4124_v8 = vsub.f32 %v10682_v59, %v4123_v15  ;;  %v11243_v32 = vand.u32 4294901760, %v10462_v17 }
 0x450   :  { %v10694_v21 = vand.u32 4294901760, %v3926_v23  ;;  %v3929_v31 = vsel %vm3529_vm2, %v3881_v18, 0  ;;  %v9153_v18 = vld [vmem:[%s11122_s6 + $0x6] ss:$0 sm:$0xff] }
 0x451   :  { %v10692_v60 = vsub.f32 %v3923_v47, %v10686_v43  ;;  %v10704_v61 = vand.u32 4294901760, %v3929_v31  ;;  %v4125_v54 = vand.u32 4294901760, %v4124_v8  ;;  %v11250_v8 = vld [vmem:[#allocation11_spill] sm:$0xff] }
 0x452   :  { %v10702_v24 = vsub.f32 %v3926_v23, %v10694_v21 }
 0x453   :  { %v4133_v0 = vand.u32 4294901760, %v10692_v60  ;;  %v10711_v34 = vsub.f32 %v3929_v31, %v10704_v61  ;;  %8072 = vmatprep.mubr.f32.mxu0 %v4125_v54  ;;  %v1880_v31 = vmul.f32 %v9153_v18, %v11250_v8 }
 0x454   :  { %v4143_v16 = vand.u32 4294901760, %v10702_v24 }
 0x455   :  { %v4134_v27 = vsub.f32 %v10692_v60, %v4133_v0  ;;  %v4153_v19 = vand.u32 4294901760, %v10711_v34 }
 0x456   :  { %v4144_v41 = vsub.f32 %v10702_v24, %v4143_v16 }
 0x457   :  { %v4135_v6 = vand.u32 4294901760, %v4134_v27  ;;  %v4154_v26 = vsub.f32 %v10711_v34, %v4153_v19 }
 0x458   :  { %v4145_v57 = vand.u32 4294901760, %v4144_v41 }
 0x459   :  { %8073 = vmatmul.mubr.f32.gmra.mrb[28].mxu0 %v4135_v6  ;;  %v4155_v47 = vand.u32 4294901760, %v4154_v26 }
 0x45a   :  { %8075 = vmatprep.mubr.f32.mxu0 %v4145_v57 }
 0x45d   :  { %8076 = vmatmul.mubr.f32.gmra.mrb[30].mxu0 %v4155_v47 }
 0x45e   :  { %8080 = vmatprep.mubr.f32.mxu0 %v10507_v40 }
 0x461   :  { %8081 = vmatmul.mubr.f32.vlgmr.msra.gmra.mrb[16].mxu0 %v10455_v12 }
 0x462   :  { %8105 = vmatpush3.msra.mxu0 %v10304_v37  ;;  %8083 = vmatprep.mubr.f32.mxu0 %v10539_v7  ;;  %v11242_v37 = vand.u32 4294901760, %v10515_v25 }
 0x463   :  { %8130 = vmatprep.subr.mxu0 %v10300_v9 }
 0x465   :  { %8084 = vmatmul.mubr.f32.gmra.mrb[18].mxu0 %v10555_v56 }
 0x466   :  { %8086 = vmatprep.mubr.f32.mxu0 %v10572_v11 }
 0x469   :  { %8087 = vmatmul.mubr.f32.gmra.mrb[20].mxu0 %v10581_v55 }
 0x46a   :  { %8089 = vmatprep.mubr.f32.mxu0 %v10593_v39 }
 0x46d   :  { %8090 = vmatmul.mubr.f32.gmra.mrb[22].mxu0 %v10605_v50 }
 0x46e   :  { %8092 = vmatprep.mubr.f32.mxu0 %v10623_v3 }
 0x471   :  { %8093 = vmatmul.mubr.f32.gmra.mrb[24].mxu0 %v10634_v29 }
 0x472   :  { %8095 = vmatprep.mubr.f32.mxu0 %v10663_v46 }
 0x475   :  { %8096 = vmatmul.mubr.f32.gmra.mrb[26].mxu0 %v10649_v22 }
 0x476   :  { %8098 = vmatprep.mubr.f32.mxu0 %v10678_v20 }
 0x479   :  { %8099 = vmatmul.mubr.f32.gmra.mrb[28].mxu0 %v10686_v43 }
 0x47a   :  { %8101 = vmatprep.mubr.f32.mxu0 %v10694_v21 }
 0x47d   :  { %8102 = vmatmul.mubr.f32.gmra.mrb[30].mxu0 %v10704_v61 }
 0x47e   :  { %8106 = vmatprep.mubr.f32.mxu0 %v10515_v25  ;;  %v11244_v25 = vand.u32 4294901760, %v10602_v38 }
 0x481   :  { %8107 = vmatmul.mubr.f32.vlgmr.msra.gmra.mrb[16].mxu0 %v10462_v17  ;;  %v11245_v17 = vand.u32 4294901760, %v10616_v1 }
 0x482   :  { %8131 = vmatpush3.msra.mxu0 %v10300_v9  ;;  %8109 = vmatprep.mubr.f32.mxu0 %v10545_v14  ;;  %v11247_v14 = vand.u32 4294901760, %v10646_v58 }
 0x483   :  { %8156 = vmatprep.subr.mxu0 %v10308_v49 }
 0x485   :  { %8110 = vmatmul.mubr.f32.gmra.mrb[18].mxu0 %v10567_v28  ;;  %v5352_v28 = vld [vmem:[%s11119_s3 + $0x10] sm:$0xff] }
 0x486   :  { %8112 = vmatprep.mubr.f32.mxu0 %v10579_v63 }
 0x489   :  { %8113 = vmatmul.mubr.f32.gmra.mrb[20].mxu0 %v10591_v51 }
 0x48a   :  { %8115 = vmatprep.mubr.f32.mxu0 %v10602_v38 }
 0x48d   :  { %8116 = vmatmul.mubr.f32.gmra.mrb[22].mxu0 %v10616_v1 }
 0x48e   :  { %8118 = vmatprep.mubr.f32.mxu0 %v10632_v13 }
 0x491   :  { %8119 = vmatmul.mubr.f32.gmra.mrb[24].mxu0 %v10646_v58 }
 0x492   :  { %8121 = vmatprep.mubr.f32.mxu0 %v10667_v35 }
 0x495   :  { %8122 = vmatmul.mubr.f32.gmra.mrb[26].mxu0 %v10659_v53 }
 0x496   :  { %8124 = vmatprep.mubr.f32.mxu0 %v10682_v59 }
 0x499   :  { %8125 = vmatmul.mubr.f32.gmra.mrb[28].mxu0 %v10692_v60  ;;  %v11249_v60 = vld [vmem:[#allocation12_spill] sm:$0xff] }
 0x49a   :  { %8127 = vmatprep.mubr.f32.mxu0 %v10702_v24 }
 0x49d   :  { %8128 = vmatmul.mubr.f32.gmra.mrb[30].mxu0 %v10711_v34 }
 0x49e   :  { %8132 = vmatprep.mubr.f32.mxu0 %v11242_v37 }
 0x4a1   :  { %8133 = vmatmul.mubr.f32.vlgmr.msra.gmra.mrb[16].mxu0 %v11243_v32 }
 0x4a2   :  { %8157 = vmatpush3.msra.mxu0 %v10308_v49  ;;  %8135 = vmatprep.mubr.f32.mxu0 %v4023_v48  ;;  %v11246_v49 = vand.u32 4294901760, %v10632_v13  ;;  %v11248_v48 = vand.u32 4294901760, %v10659_v53 }
 0x4a3   :  { %8182 = vmatprep.subr.mxu0 %v10300_v9 }
 0x4a5   :  { %8136 = vmatmul.mubr.f32.gmra.mrb[18].mxu0 %v4033_v44  ;;  %v5402_v44 = vand.u32 4294901760, %v5352_v28 }
 0x4a6   :  { %8138 = vmatprep.mubr.f32.mxu0 %v4043_v10 }
 0x4a7   :  { %v5500_v13 = vsub.f32 %v5352_v28, %v5402_v44 }
 0x4a9   :  { %8139 = vmatmul.mubr.f32.gmra.mrb[20].mxu0 %v4053_v45 }
 0x4aa   :  { %8141 = vmatprep.mubr.f32.mxu0 %v11244_v25 }
 0x4ad   :  { %8142 = vmatmul.mubr.f32.gmra.mrb[22].mxu0 %v11245_v17 }
 0x4ae   :  { %8144 = vmatprep.mubr.f32.mxu0 %v11246_v49 }
 0x4b1   :  { %8145 = vmatmul.mubr.f32.gmra.mrb[24].mxu0 %v11247_v14 }
 0x4b2   :  { %8147 = vmatprep.mubr.f32.mxu0 %v4103_v42 }
 0x4b5   :  { %8148 = vmatmul.mubr.f32.gmra.mrb[26].mxu0 %v11248_v48 }
 0x4b6   :  { %8150 = vmatprep.mubr.f32.mxu0 %v4123_v15 }
 0x4b9   :  { %8151 = vmatmul.mubr.f32.gmra.mrb[28].mxu0 %v4133_v0  ;;  %v9154_v0 = vld [vmem:[%s11122_s6 + $0x7] ss:$0 sm:$0xff] }
 0x4ba   :  { %8153 = vmatprep.mubr.f32.mxu0 %v4143_v16 }
 0x4bd   :  { %8154 = vmatmul.mubr.f32.gmra.mrb[30].mxu0 %v4153_v19 }
 0x4be   :  { %8158 = vmatprep.mubr.f32.mxu0 %v10507_v40 }
 0x4c1   :  { %8159 = vmatmul.mubr.f32.vlgmr.msra.gmra.mrb[16].mxu0 %v10455_v12 }
 0x4c2   :  { %8183 = vmatpush3.msra.mxu0 %v10300_v9  ;;  %8161 = vmatprep.mubr.f32.mxu0 %v10539_v7  ;;  %v5350_v9 = vld [vmem:[%s11119_s3] sm:$0xff] }
 0x4c5   :  { %8162 = vmatmul.mubr.f32.gmra.mrb[18].mxu0 %v10555_v56 }
 0x4c6   :  { %8164 = vmatprep.mubr.f32.mxu0 %v10572_v11 }
 0x4c9   :  { %8165 = vmatmul.mubr.f32.gmra.mrb[20].mxu0 %v10581_v55 }
 0x4ca   :  { %8167 = vmatprep.mubr.f32.mxu0 %v10593_v39 }
 0x4cd   :  { %8168 = vmatmul.mubr.f32.gmra.mrb[22].mxu0 %v10605_v50 }
 0x4ce   :  { %8170 = vmatprep.mubr.f32.mxu0 %v10623_v3 }
 0x4d1   :  { %8171 = vmatmul.mubr.f32.gmra.mrb[24].mxu0 %v10634_v29 }
 0x4d2   :  { %8173 = vmatprep.mubr.f32.mxu0 %v10663_v46 }
 0x4d5   :  { %8174 = vmatmul.mubr.f32.gmra.mrb[26].mxu0 %v10649_v22 }
 0x4d6   :  { %8176 = vmatprep.mubr.f32.mxu0 %v10678_v20 }
 0x4d9   :  { %8177 = vmatmul.mubr.f32.gmra.mrb[28].mxu0 %v10686_v43 }
 0x4da   :  { %8179 = vmatprep.mubr.f32.mxu0 %v10694_v21 }
 0x4dd   :  { %8180 = vmatmul.mubr.f32.gmra.mrb[30].mxu0 %v10704_v61 }
 0x4de   :  { %8184 = vmatprep.mubr.f32.mxu0 %v10507_v40  ;;  %v5396_v40 = vand.u32 4294901760, %v5350_v9 }
 0x4e0   :  { %v5486_v10 = vsub.f32 %v5350_v9, %v5396_v40 }
 0x4e1   :  { %8185 = vmatmul.mubr.f32.vlgmr.msra.gmra.mrb[16].mxu0 %v10455_v12  ;;  %v5351_v12 = vld [vmem:[%s11119_s3 + $0x8] sm:$0xff] }
 0x4e2   :  { %8187 = vmatprep.mubr.f32.mxu0 %v10539_v7  ;;  %v5399_v7 = vand.u32 4294901760, %v5351_v12 }
 0x4e4   :  { %v5493_v51 = vsub.f32 %v5351_v12, %v5399_v7 }
 0x4e5   :  { %8188 = vmatmul.mubr.f32.gmra.mrb[18].mxu0 %v10555_v56  ;;  %v10825_v56 = vpack.c.bf16 %v5399_v7, %v5396_v40 }
 0x4e6   :  { %8190 = vmatprep.mubr.f32.mxu0 %v10572_v11  ;;  %v5353_v11 = vld [vmem:[%s11119_s3 + $0x18] sm:$0xff]  ;;  %v5494_v45 = vand.u32 4294901760, %v5493_v51  ;;  %v10844_v62 = vpack.c.bf16 %v5493_v51, %v5486_v10 }
 0x4e7   :  { %8647 = vmatprep.subr.bf16.mxu1 %v10825_v56  ;;  %v5405_v63 = vand.u32 4294901760, %v5353_v11 }
 0x4e8   :  { %8649 = vmatpush3.bf16.msra.mxu1 %v10825_v56 }
 0x4e9   :  { %8191 = vmatmul.mubr.f32.gmra.mrb[20].mxu0 %v10581_v55  ;;  %v10835_v55 = vpack.c.bf16 %v5405_v63, %v5402_v44 }
 0x4ea   :  { %8193 = vmatprep.mubr.f32.mxu0 %v10593_v39  ;;  %v5487_v39 = vand.u32 4294901760, %v5486_v10 }
 0x4eb   :  { %8651 = vmatprep.subr.bf16.mxu1 %v10835_v55 }
 0x4ec   :  { %8653 = vmatpush3.bf16.msra.mxu1 %v10835_v55  ;;  %v5488_v38 = vsub.f32 %v5486_v10, %v5487_v39  ;;  %v10848_v15 = vpack.c.bf16 %v5494_v45, %v5487_v39 }
 0x4ed   :  { %8194 = vmatmul.mubr.f32.gmra.mrb[22].mxu0 %v10605_v50  ;;  %v5495_v50 = vsub.f32 %v5493_v51, %v5494_v45 }
 0x4ee   :  { %8196 = vmatprep.mubr.f32.mxu0 %v10623_v3  ;;  %v5489_v1 = vand.u32 4294901760, %v5488_v38 }
 0x4ef   :  { %v5496_v3 = vand.u32 4294901760, %v5495_v50 }
 0x4f1   :  { %8197 = vmatmul.mubr.f32.gmra.mrb[24].mxu0 %v10634_v29  ;;  %v5507_v29 = vsub.f32 %v5353_v11, %v5405_v63  ;;  %v10839_v58 = vpack.c.bf16 %v5496_v3, %v5489_v1 }
 0x4f2   :  { %8199 = vmatprep.mubr.f32.mxu0 %v10663_v46 }
 0x4f3   :  { %v5508_v53 = vand.u32 4294901760, %v5507_v29  ;;  %8655 = vmatprep.subr.bf16.mxu1 %v10839_v58 }
 0x4f5   :  { %8200 = vmatmul.mubr.f32.gmra.mrb[26].mxu0 %v10649_v22  ;;  %v5501_v22 = vand.u32 4294901760, %v5500_v13  ;;  %v5509_v59 = vsub.f32 %v5507_v29, %v5508_v53 }
 0x4f6   :  { %8202 = vmatprep.mubr.f32.mxu0 %v10678_v20 }
 0x4f7   :  { %v5502_v46 = vsub.f32 %v5500_v13, %v5501_v22  ;;  %v5510_v42 = vand.u32 4294901760, %v5509_v59  ;;  %v10850_v23 = vpack.c.bf16 %v5508_v53, %v5501_v22 }
 0x4f9   :  { %8203 = vmatmul.mubr.f32.gmra.mrb[28].mxu0 %v10686_v43  ;;  %v5503_v35 = vand.u32 4294901760, %v5502_v46  ;;  %v10846_v43 = vpack.c.bf16 %v5507_v29, %v5500_v13  ;;  %v11252_v46 = vld [vmem:[#allocation10_spill] sm:$0xff] }
 0x4fa   :  { %8205 = vmatprep.mubr.f32.mxu0 %v10694_v21  ;;  %v1881_v21 = vmul.f32 %v9153_v18, %v11249_v60 }
 0x4fb   :  { %v10842_v20 = vpack.c.bf16 %v5510_v42, %v5503_v35 }
 0x4fc   :  { %v1902_v24 = vadd.f32 %v9154_v0, %v1881_v21  ;;  %v11253_v21 = vld [vmem:[#allocation13_spill] sm:$0xff] }
 0x4fd   :  { %8206 = vmatmul.mubr.f32.gmra.mrb[30].mxu0 %v10704_v61  ;;  %v1901_v61 = vadd.f32 %v9154_v0, %v1880_v31 }
 0x4fe   :  { %v1934_v6 = vmul.f32 0.01, %v1902_v24  ;;  %vm1918_vm3 = vcmp.ge.f32.partialorder %v1902_v24, 0.0 }
 0x4ff   :  { %v1933_v19 = vmul.f32 0.01, %v1901_v61  ;;  %vm1917_vm4 = vcmp.ge.f32.partialorder %v1901_v61, 0.0 }
 0x500   :  { %v1950_v49 = vsel %vm1918_vm3, %v1902_v24, %v1934_v6 }
 0x501   :  { %v10868_v48 = vadd.f32 %v10146_v52, %v1950_v49  ;;  %v1949_v9 = vsel %vm1917_vm4, %v1901_v61, %v1933_v19  ;;  %v11251_v52 = vld [vmem:[#allocation24_spill] sm:$0xff] }
 0x502   :  { %v10872_v11 = vadd.f32 %v10152_v30, %v1949_v9 }
 0x5b4   :  { %v8186_v54 = vpop.f32.mrb[16].mxu0 }
 0x5b5   :  { %v5223_v27 = vmul.f32 %v8186_v54, %v10122_v2  ;;  %v4932_v16 = vpop.f32.mrb[17].mxu0 }
 0x5b6   :  { %v5222_v34 = vmul.f32 %v10114_v4, %v4932_v16 }
 0x5b7   :  { %v5245_v41 = vsel %vm37_vm0, %v5223_v27, 0.0 }
 0x5b8   :  { %v5246_v57 = vrot.slane %v5245_v41, 4  ;;  %v5238_v26 = vsel %vm37_vm0, %v5222_v34, 0.0  ;;  %v8189_v47 = vpop.f32.mrb[18].mxu0 }
 0x5b9   :  { %v5239_v37 = vrot.slane %v5238_v26, 4  ;;  %v5225_v32 = vmul.f32 %v8189_v47, %v10139_v33  ;;  %v4944_v25 = vpop.f32.mrb[19].mxu0 }
 0x5ba   :  { %v5247_v17 = vadd.f32 %v5246_v57, %v5245_v41  ;;  %v5224_v2 = vmul.f32 %v10130_v36, %v4944_v25  ;;  %v11254_v25 = vld [vmem:[#allocation15_spill] sm:$0xff] }
 0x5bb   :  { %v5240_v14 = vadd.f32 %v5239_v37, %v5238_v26  ;;  %v5259_v4 = vsel %vm37_vm0, %v5225_v32, 0.0 }
 0x5bc   :  { %v5248_v12 = vrot.slane %v5247_v17, 2  ;;  %v5260_v40 = vrot.slane %v5259_v4, 4  ;;  %v5252_v7 = vsel %vm37_vm0, %v5224_v2, 0.0  ;;  %v8192_v28 = vpop.f32.mrb[20].mxu0 }
 0x5bd   :  { %v5241_v33 = vrot.slane %v5240_v14, 2  ;;  %v5253_v44 = vrot.slane %v5252_v7, 4  ;;  %v5227_v36 = vmul.f32 %v8192_v28, %v10126_v5  ;;  %v4956_v63 = vpop.f32.mrb[21].mxu0 }
 0x5be   :  { %v5249_v10 = vadd.f32 %v5248_v12, %v5247_v17  ;;  %v5261_v51 = vadd.f32 %v5260_v40, %v5259_v4  ;;  %v5226_v39 = vmul.f32 %v11251_v52, %v4956_v63  ;;  %v11255_v4 = vld [vmem:[#allocation14_spill] sm:$0xff] }
 0x5bf   :  { %v5242_v45 = vadd.f32 %v5241_v33, %v5240_v14  ;;  %v5254_v38 = vadd.f32 %v5253_v44, %v5252_v7  ;;  %v5273_v50 = vsel %vm37_vm0, %v5227_v36, 0.0 }
 0x5c0   :  { %v5250_v1 = vrot.slane %v5249_v10, 1  ;;  %v5262_v3 = vrot.slane %v5261_v51, 2  ;;  %v5274_v30 = vrot.slane %v5273_v50, 4  ;;  %v5266_v13 = vsel %vm37_vm0, %v5226_v39, 0.0  ;;  %v8195_v29 = vpop.f32.mrb[22].mxu0 }
 0x5c1   :  { %v5243_v22 = vrot.slane %v5242_v45, 1  ;;  %v5255_v53 = vrot.slane %v5254_v38, 2  ;;  %v5267_v5 = vrot.slane %v5266_v13, 4  ;;  %v5229_v59 = vmul.f32 %v8195_v29, %v11252_v46  ;;  %v4968_v35 = vpop.f32.mrb[23].mxu0 }
 0x5c2   :  { %v5251_v42 = vadd.f32 %v5250_v1, %v5249_v10  ;;  %v5263_v18 = vadd.f32 %v5262_v3, %v5261_v51  ;;  %v5275_v60 = vadd.f32 %v5274_v30, %v5273_v50  ;;  %v5228_v8 = vmul.f32 %v11253_v21, %v4968_v35 }
 0x5c3   :  { %v5244_v31 = vadd.f32 %v5243_v22, %v5242_v45  ;;  %v5256_v0 = vadd.f32 %v5255_v53, %v5254_v38  ;;  %v5268_v24 = vadd.f32 %v5267_v5, %v5266_v13  ;;  %v5287_v61 = vsel %vm37_vm0, %v5229_v59, 0.0 }
 0x5c4   :  { %v5264_v54 = vrot.slane %v5263_v18, 1  ;;  %v5276_v27 = vrot.slane %v5275_v60, 2  ;;  %v5288_v16 = vrot.slane %v5287_v61, 4  ;;  %v5280_v34 = vsel %vm37_vm0, %v5228_v8, 0.0  ;;  %v8198_v6 = vpop.f32.mrb[24].mxu0 }
 0x5c5   :  { %v5371_v41 = vsel %vm5370_vm5, %v5251_v42, %v5244_v31  ;;  %v5257_v19 = vrot.slane %v5256_v0, 1  ;;  %v5269_v57 = vrot.slane %v5268_v24, 2  ;;  %v5281_v26 = vrot.slane %v5280_v34, 4  ;;  %v4980_v47 = vpop.f32.mrb[25].mxu0 }
 0x5c6   :  { %v5277_v37 = vadd.f32 %v5276_v27, %v5275_v60  ;;  %v5289_v32 = vadd.f32 %v5288_v16, %v5287_v61  ;;  %v5231_v17 = vmul.f32 %v8198_v6, %v11254_v25  ;;  %v5230_v9 = vmul.f32 %v11255_v4, %v4980_v47  ;;  %v11256_v61 = vld [vmem:[#allocation17_spill] sm:$0xff]  ;;  %v11257_v27 = vld [vmem:[#allocation16_spill] sm:$0xff]  ;;  %v11258_v25 = vld [vmem:[#allocation26_spill] sm:$0xff] }
 0x5c7   :  { %v5258_v2 = vadd.f32 %v5257_v19, %v5256_v0  ;;  %v5270_v49 = vadd.f32 %v5269_v57, %v5268_v24  ;;  %v5282_v14 = vadd.f32 %v5281_v26, %v5280_v34  ;;  %v5265_v12 = vadd.f32 %v5264_v54, %v5263_v18 }
 0x5c8   :  { %v5278_v40 = vrot.slane %v5277_v37, 1  ;;  %v5290_v7 = vrot.slane %v5289_v32, 2  ;;  %v5301_v28 = vsel %vm37_vm0, %v5231_v17, 0.0  ;;  %v8201_v33 = vpop.f32.mrb[26].mxu0  ;;  %v5294_v45 = vsel %vm37_vm0, %v5230_v9, 0.0 }
 0x5c9   :  { %v5373_v44 = vsel %vm5372_vm6, %v5258_v2, %v5371_v41  ;;  %v5271_v36 = vrot.slane %v5270_v49, 1  ;;  %v5283_v63 = vrot.slane %v5282_v14, 2  ;;  %v5302_v10 = vrot.slane %v5301_v28, 4  ;;  %v4992_v51 = vpop.f32.mrb[27].mxu0 }
 0x5ca   :  { %v5375_v52 = vsel %vm5374_vm7, %v5265_v12, %v5373_v44  ;;  %v5291_v39 = vadd.f32 %v5290_v7, %v5289_v32  ;;  %v5295_v3 = vrot.slane %v5294_v45, 4  ;;  %v5279_v30 = vadd.f32 %v5278_v40, %v5277_v37  ;;  %v11259_v7 = vld [vmem:[#allocation25_spill] sm:$0xff] }
 0x5cb   :  { %v5272_v38 = vadd.f32 %v5271_v36, %v5270_v49  ;;  %v5284_v50 = vadd.f32 %v5283_v63, %v5282_v14  ;;  %v5303_v1 = vadd.f32 %v5302_v10, %v5301_v28  ;;  %v5233_v29 = vmul.f32 %v8201_v33, %v10868_v48 }
 0x5cc   :  { %v5292_v13 = vrot.slane %v5291_v39, 1  ;;  %v5232_v22 = vmul.f32 %v10872_v11, %v4992_v51  ;;  %v8204_v53 = vpop.f32.mrb[28].mxu0  ;;  %v5296_v35 = vadd.f32 %v5295_v3, %v5294_v45 }
 0x5cd   :  { %v5377_v5 = vsel %vm5376_vm8, %v5272_v38, %v5375_v52  ;;  %v5285_v46 = vrot.slane %v5284_v50, 1  ;;  %v5304_v59 = vrot.slane %v5303_v1, 2  ;;  %v5004_v42 = vpop.f32.mrb[29].mxu0  ;;  %v5315_v60 = vsel %vm37_vm0, %v5233_v29, 0.0 }
 0x5ce   :  { %v5379_v18 = vsel %vm5378_vm9, %v5279_v30, %v5377_v5  ;;  %v5308_v21 = vsel %vm37_vm0, %v5232_v22, 0.0  ;;  %v5297_v0 = vrot.slane %v5296_v35, 2  ;;  %v5316_v48 = vrot.slane %v5315_v60, 4 }
 0x5cf   :  { %v5286_v8 = vadd.f32 %v5285_v46, %v5284_v50  ;;  %v5305_v31 = vadd.f32 %v5304_v59, %v5303_v1  ;;  %v5293_v24 = vadd.f32 %v5292_v13, %v5291_v39  ;;  %v5309_v11 = vrot.slane %v5308_v21, 4 }
 0x5d0   :  { %v5235_v54 = vmul.f32 %v8204_v53, %v11256_v61  ;;  %v5234_v16 = vmul.f32 %v11257_v27, %v5004_v42  ;;  %v8207_v34 = vpop.f32.mrb[30].mxu0  ;;  %v5298_v19 = vadd.f32 %v5297_v0, %v5296_v35  ;;  %v5317_v57 = vadd.f32 %v5316_v48, %v5315_v60 }
 0x5d1   :  { %v5381_v6 = vsel %vm5380_vm10, %v5286_v8, %v5379_v18  ;;  %v5306_v41 = vrot.slane %v5305_v31, 1  ;;  %v5016_v26 = vpop.f32.mrb[31].mxu0  ;;  %v5310_v47 = vadd.f32 %v5309_v11, %v5308_v21  ;;  %v5237_v17 = vmul.f32 %v8207_v34, %v11258_v25 }
 0x5d2   :  { %v5329_v37 = vsel %vm37_vm0, %v5235_v54, 0.0  ;;  %v5322_v32 = vsel %vm37_vm0, %v5234_v16, 0.0  ;;  %v5299_v49 = vrot.slane %v5298_v19, 1  ;;  %v5318_v14 = vrot.slane %v5317_v57, 2 }
 0x5d3   :  { %v5307_v2 = vadd.f32 %v5306_v41, %v5305_v31  ;;  %v5330_v4 = vrot.slane %v5329_v37, 4  ;;  %v5311_v9 = vrot.slane %v5310_v47, 2  ;;  %v5323_v12 = vrot.slane %v5322_v32, 4 }
 0x5d4   :  { %v5343_v40 = vsel %vm37_vm0, %v5237_v17, 0.0  ;;  %v5236_v28 = vmul.f32 %v11259_v7, %v5016_v26  ;;  %v5300_v33 = vadd.f32 %v5299_v49, %v5298_v19  ;;  %v5319_v44 = vadd.f32 %v5318_v14, %v5317_v57 }
 0x5d5   :  { %v5331_v36 = vadd.f32 %v5330_v4, %v5329_v37  ;;  %v5344_v63 = vrot.slane %v5343_v40, 4  ;;  %v5312_v10 = vadd.f32 %v5311_v9, %v5310_v47  ;;  %v5324_v51 = vadd.f32 %v5323_v12, %v5322_v32 }
 0x5d6   :  { %v5336_v52 = vsel %vm37_vm0, %v5236_v28, 0.0  ;;  %v5383_v39 = vsel %vm5382_vm11, %v5293_v24, %v5381_v6  ;;  %v5384_v45 = vsel %vm5370_vm5, %v5307_v2, %v5300_v33  ;;  %v5320_v38 = vrot.slane %v5319_v44, 1 }
 0x5d7   :  { %v5332_v50 = vrot.slane %v5331_v36, 2  ;;  %v5345_v1 = vadd.f32 %v5344_v63, %v5343_v40  ;;  %v5313_v3 = vrot.slane %v5312_v10, 1  ;;  %v5325_v30 = vrot.slane %v5324_v51, 2 }
 0x5d8   :  { %v5337_v13 = vrot.slane %v5336_v52, 4  ;;  %v5391_v29 = vsel %vm37_vm0, %v5383_v39, 0  ;;  %v5321_v42 = vadd.f32 %v5320_v38, %v5319_v44  ;;  %v5972_v39 = vld [vmem:[%s11120_s4] sm:$0xff]  ;;  %v5974_v38 = vld [vmem:[%s11120_s4 + $0x10] sm:$0xff] }
 0x5d9   :  { %v5333_v22 = vadd.f32 %v5332_v50, %v5331_v36  ;;  %v5346_v53 = vrot.slane %v5345_v1, 2  ;;  %v5464_v5 = vand.u32 4294901760, %v5391_v29  ;;  %v5314_v46 = vadd.f32 %v5313_v3, %v5312_v10  ;;  %v5975_v3 = vld [vmem:[%s11120_s4 + $0x18] sm:$0xff] }
 0x5da   :  { %v5326_v59 = vadd.f32 %v5325_v30, %v5324_v51  ;;  %v5338_v35 = vadd.f32 %v5337_v13, %v5336_v52  ;;  %v5988_v50 = vand.u32 4294901760, %v5972_v39  ;;  %v5994_v30 = vand.u32 4294901760, %v5974_v38 }
 0x5db   :  { %v5334_v18 = vrot.slane %v5333_v22, 1  ;;  %v5347_v60 = vadd.f32 %v5346_v53, %v5345_v1  ;;  %v5465_v21 = vsub.f32 %v5391_v29, %v5464_v5  ;;  %v5385_v8 = vsel %vm5372_vm6, %v5314_v46, %v5384_v45  ;;  %v5973_v45 = vld [vmem:[%s11120_s4 + $0x8] sm:$0xff] }
 0x5dc   :  { %v5327_v31 = vrot.slane %v5326_v59, 1  ;;  %v5339_v0 = vrot.slane %v5338_v35, 2  ;;  %v5386_v48 = vsel %vm5374_vm7, %v5321_v42, %v5385_v8  ;;  %v5991_v1 = vand.u32 4294901760, %v5973_v45 }
 0x5dd   :  { %v5466_v24 = vand.u32 4294901760, %v5465_v21  ;;  %v5335_v54 = vadd.f32 %v5334_v18, %v5333_v22  ;;  %v5348_v27 = vrot.slane %v5347_v60, 1  ;;  %v5997_v13 = vand.u32 4294901760, %v5975_v3 }
 0x5de   :  { %v5328_v11 = vadd.f32 %v5327_v31, %v5326_v59  ;;  %v5340_v61 = vadd.f32 %v5339_v0, %v5338_v35  ;;  %v10966_v29 = vpack.c.bf16 %v5991_v1, %v5988_v50  ;;  %v6078_v53 = vsub.f32 %v5972_v39, %v5988_v50  ;;  %v6571_v50 = vld [vmem:[%s11121_s5 + $0x10] sm:$0xff] }
 0x5df   :  { %v5467_v16 = vsub.f32 %v5465_v21, %v5466_v24  ;;  %v5349_v26 = vadd.f32 %v5348_v27, %v5347_v60  ;;  %v10968_v22 = vpack.c.bf16 %v5997_v13, %v5994_v30  ;;  %v6092_v18 = vsub.f32 %v5974_v38, %v5994_v30 }
 0x5e0   :  { %v5387_v34 = vsel %vm5376_vm8, %v5328_v11, %v5386_v48  ;;  %v5341_v6 = vrot.slane %v5340_v61, 1  ;;  %8695 = vmatprep.subr.bf16.mxu0 %v10966_v29  ;;  %v6079_v46 = vand.u32 4294901760, %v6078_v53  ;;  %v6099_v60 = vsub.f32 %v5975_v3, %v5997_v13 }
 0x5e1   :  { %v5388_v41 = vsel %vm5378_vm9, %v5335_v54, %v5387_v34  ;;  %v5468_v19 = vand.u32 4294901760, %v5467_v16  ;;  %8697 = vmatpush3.bf16.msra.mxu0 %v10966_v29  ;;  %v6093_v31 = vand.u32 4294901760, %v6092_v18  ;;  %v6596_v3 = vand.u32 4294901760, %v6571_v50 }
 0x5e2   :  { %v5342_v57 = vadd.f32 %v5341_v6, %v5340_v61  ;;  %8699 = vmatprep.subr.bf16.mxu0 %v10968_v22  ;;  %v6080_v35 = vsub.f32 %v6078_v53, %v6079_v46  ;;  %v6100_v0 = vand.u32 4294901760, %v6099_v60  ;;  %v8714_v34 = vpack.c.bf16 %v6099_v60, %v6092_v18 }
 0x5e3   :  { %8216 = vmatprep.mubr.f32.mxu1 %v5468_v19 }
 0x5e4   :  { %v5389_v47 = vsel %vm5380_vm10, %v5342_v57, %v5388_v41  ;;  %v6101_v11 = vsub.f32 %v6099_v60, %v6100_v0  ;;  %v8730_v41 = vpack.c.bf16 %v6100_v0, %v6093_v31 }
 0x5e5   :  { %v5390_v37 = vsel %vm5382_vm11, %v5349_v26, %v5389_v47  ;;  %8701 = vmatpush3.bf16.msra.mxu0 %v10968_v22 }
 0x5e6   :  { %v5393_v32 = vsel %vm37_vm0, %v5390_v37, 0  ;;  %v6102_v54 = vand.u32 4294901760, %v6101_v11  ;;  %v6698_v11 = vsub.f32 %v6571_v50, %v6596_v3 }
 0x5e7   :  { %v5474_v25 = vand.u32 4294901760, %v5393_v32 }
 0x5e9   :  { %v5475_v17 = vsub.f32 %v5393_v32, %v5474_v25 }
 0x5eb   :  { %v5476_v2 = vand.u32 4294901760, %v5475_v17 }
 0x5ed   :  { %v5477_v49 = vsub.f32 %v5475_v17, %v5476_v2 }
 0x5ef   :  { %v5478_v14 = vand.u32 4294901760, %v5477_v49 }
 0x5f1   :  { %8217 = vmatmul.mubr.f32.vlgmr.msra.gmra.mrb[18].mxu1 %v5478_v14 }
 0x5f2   :  { %8657 = vmatpush3.bf16.msra.mxu1 %v10839_v58  ;;  %8227 = vmatprep.mubr.f32.mxu1 %v5464_v5 }
 0x5f3   :  { %8659 = vmatprep.subr.bf16.mxu1 %v10842_v20 }
 0x5f6   :  { %8661 = vmatpush3.bf16.msra.mxu1 %v10842_v20  ;;  %v7195_v20 = vld [vmem:[%s11122_s6 + $0x8] ss:$0 sm:$0xff] }
 0x5f7   :  { %8663 = vmatprep.subr.bf16.mxu1 %v10844_v62 }
 0x5f9   :  { %8228 = vmatmul.mubr.f32.vlgmr.msra.gmra.mrb[18].mxu1 %v5474_v25 }
 0x5fa   :  { %8665 = vmatpush3.bf16.msra.mxu1 %v10844_v62  ;;  %8238 = vmatprep.mubr.f32.mxu1 %v5465_v21  ;;  %v9155_v62 = vld [vmem:[%s11116_s0 + $0x8] sm:$0xff]  ;;  %v6081_v21 = vand.u32 4294901760, %v6080_v35  ;;  %v6576_v35 = vld [vmem:[%s11121_s5 + $0x38] sm:$0xff] }
 0x5fb   :  { %8667 = vmatprep.subr.bf16.mxu1 %v10846_v43 }
 0x5fe   :  { %8669 = vmatpush3.bf16.msra.mxu1 %v10846_v43 }
 0x5ff   :  { %8671 = vmatprep.subr.bf16.mxu1 %v10825_v56 }
 0x601   :  { %8239 = vmatmul.mubr.f32.vlgmr.msra.gmra.mrb[18].mxu1 %v5475_v17  ;;  %v7196_v17 = vld [vmem:[%s11122_s6 + $0x2] ss:$0 sm:$0xff] }
 0x602   :  { %8673 = vmatpush3.bf16.msra.mxu1 %v10825_v56  ;;  %8249 = vmatprep.mubr.f32.mxu1 %v5466_v24  ;;  %v6094_v24 = vsub.f32 %v6092_v18, %v6093_v31 }
 0x603   :  { %8675 = vmatprep.subr.bf16.mxu1 %v10835_v55 }
 0x604   :  { %v6095_v61 = vand.u32 4294901760, %v6094_v24 }
 0x606   :  { %8677 = vmatpush3.bf16.msra.mxu1 %v10835_v55  ;;  %v8706_v27 = vpack.c.bf16 %v6102_v54, %v6095_v61 }
 0x607   :  { %8679 = vmatprep.subr.bf16.mxu1 %v10848_v15 }
 0x609   :  { %8250 = vmatmul.mubr.f32.vlgmr.msra.gmra.mrb[18].mxu1 %v5476_v2 }
 0x60a   :  { %8681 = vmatpush3.bf16.msra.mxu1 %v10848_v15  ;;  %8260 = vmatprep.mubr.f32.mxu1 %v5464_v5 }
 0x60b   :  { %8683 = vmatprep.subr.bf16.mxu1 %v10850_v23 }
 0x60e   :  { %8685 = vmatpush3.bf16.msra.mxu1 %v10850_v23 }
 0x60f   :  { %8687 = vmatprep.subr.bf16.mxu1 %v10825_v56 }
 0x611   :  { %8261 = vmatmul.mubr.f32.vlgmr.msra.gmra.mrb[18].mxu1 %v5474_v25 }
 0x612   :  { %8689 = vmatpush3.bf16.msra.mxu1 %v10825_v56  ;;  %8271 = vmatprep.mubr.f32.mxu1 %v5464_v5  ;;  %v9156_v56 = vld [vmem:[%s11116_s0] sm:$0xff]  ;;  %v6085_v5 = vsub.f32 %v5973_v45, %v5991_v1  ;;  %v6572_v1 = vld [vmem:[%s11121_s5 + $0x18] sm:$0xff] }
 0x613   :  { %8691 = vmatprep.subr.bf16.mxu1 %v10835_v55  ;;  %v6599_v30 = vand.u32 4294901760, %v6572_v1 }
 0x614   :  { %v6086_v59 = vand.u32 4294901760, %v6085_v5  ;;  %v8710_v16 = vpack.c.bf16 %v6085_v5, %v6078_v53 }
 0x615   :  { %v11006_v13 = vpack.c.bf16 %v6599_v30, %v6596_v3  ;;  %v6705_v61 = vsub.f32 %v6572_v1, %v6599_v30 }
 0x616   :  { %8693 = vmatpush3.bf16.msra.mxu1 %v10835_v55  ;;  %v6087_v42 = vsub.f32 %v6085_v5, %v6086_v59  ;;  %v8726_v6 = vpack.c.bf16 %v6086_v59, %v6079_v46  ;;  %v6575_v59 = vld [vmem:[%s11121_s5 + $0x30] sm:$0xff] }
 0x617   :  { %v6608_v60 = vand.u32 4294901760, %v6575_v59 }
 0x618   :  { %v6088_v8 = vand.u32 4294901760, %v6087_v42 }
 0x619   :  { %8272 = vmatmul.mubr.f32.vlgmr.msra.gmra.mrb[18].mxu1 %v5474_v25 }
 0x61a   :  { %v8702_v48 = vpack.c.bf16 %v6088_v8, %v6081_v21  ;;  %v6611_v21 = vand.u32 4294901760, %v6576_v35 }
 0x61c   :  { %8703 = vmatprep.subr.bf16.mxu0 %v8702_v48  ;;  %v11026_v0 = vpack.c.bf16 %v6611_v21, %v6608_v60 }
 0x6ec   :  { %v8273_v58 = vpop.f32.mrb[18].mxu1 }
 0x6ed   :  { %v5924_v43 = vadd.f32 %v9155_v62, %v8273_v58  ;;  %v5913_v15 = vpop.f32.mrb[19].mxu1  ;;  %v7197_v58 = vld [vmem:[%s11122_s6 + $0x3] ss:$0 sm:$0xff] }
 0x6ee   :  { %v5923_v23 = vadd.f32 %v9156_v56, %v5913_v15 }
 0x6ef   :  { %v10942_v4 = vadd.f32 %v7195_v20, %v5924_v43 }
 0x6f0   :  { %v10944_v55 = vadd.f32 %v7195_v20, %v5923_v23 }
 0x6f1   :  { %v5937_v9 = vsel %vm37_vm0, %v10942_v4, 0.0 }
 0x6f2   :  { %5938 = vadd.xlane.f32.xlu0 %v5937_v9  ;;  %v5934_v12 = vsel %vm37_vm0, %v10944_v55, 0.0 }
 0x6f3   :  { %5935 = vadd.xlane.f32.xlu1 %v5934_v12 }
 0x77f   :  { %v5939_v40 = vpop.xlane.xlu0 %5938 }
 0x780   :  { %v5941_v7 = vmul.f32 0.03125, %v5939_v40  ;;  %v5936_v28 = vpop.xlane.xlu1 %5935 }
 0x781   :  { %v5940_v33 = vmul.f32 0.03125, %v5936_v28 }
 0x782   :  { %v5943_v44 = vsub.f32 %v10942_v4, %v5941_v7 }
 0x783   :  { %v5942_v36 = vsub.f32 %v10944_v55, %v5940_v33 }
 0x784   :  { %v5945_v63 = vmul.f32 %v5943_v44, %v5943_v44 }
 0x785   :  { %v5944_v10 = vmul.f32 %v5942_v36, %v5942_v36 }
 0x786   :  { %v5949_v51 = vsel %vm37_vm0, %v5945_v63, 0.0 }
 0x787   :  { %5950 = vadd.xlane.f32.xlu1 %v5949_v51  ;;  %v5946_v52 = vsel %vm37_vm0, %v5944_v10, 0.0  ;;  %v6569_v51 = vld [vmem:[%s11121_s5] sm:$0xff] }
 0x788   :  { %5947 = vadd.xlane.f32.xlu0 %v5946_v52  ;;  %v6570_v52 = vld [vmem:[%s11121_s5 + $0x8] sm:$0xff]  ;;  %v6590_v39 = vand.u32 4294901760, %v6569_v51 }
 0x789   :  { %v6593_v45 = vand.u32 4294901760, %v6570_v52 }
 0x78a   :  { %v6684_v42 = vsub.f32 %v6569_v51, %v6590_v39 }
 0x78b   :  { %v10996_v38 = vpack.c.bf16 %v6593_v45, %v6590_v39  ;;  %v6691_v18 = vsub.f32 %v6570_v52, %v6593_v45  ;;  %v7198_v39 = vld [vmem:[%s11122_s6 + $0xa] ss:$0 sm:$0xff] }
 0x78c   :  { %v6685_v8 = vand.u32 4294901760, %v6684_v42 }
 0x78d   :  { %8743 = vmatprep.subr.bf16.mxu1 %v10996_v38  ;;  %v6692_v31 = vand.u32 4294901760, %v6691_v18 }
 0x78e   :  { %8745 = vmatpush3.bf16.msra.mxu1 %v10996_v38 }
 0x78f   :  { %8747 = vmatprep.subr.bf16.mxu1 %v11006_v13  ;;  %v6693_v24 = vsub.f32 %v6691_v18, %v6692_v31 }
 0x792   :  { %8749 = vmatpush3.bf16.msra.mxu1 %v11006_v13 }
 0x814   :  { %v5951_v19 = vpop.xlane.xlu1 %5950 }
 0x815   :  { %v5953_v57 = vmul.f32 0.03125, %v5951_v19  ;;  %v5948_v26 = vpop.xlane.xlu0 %5947 }
 0x816   :  { %v5952_v47 = vmul.f32 0.03125, %v5948_v26 }
 0x817   :  { %v5955_v37 = vadd.f32 1e-05, %v5953_v57 }
 0x818   :  { %v5954_v32 = vadd.f32 1e-05, %v5952_v47 }
 0x819   :  { %9141 = vrsqrt.f32 %v5955_v37 }
 0x81a   :  { %9143 = vrsqrt.f32 %v5954_v32 }
 0x823   :  { %v9142_v25 = vpop.eup %9141 }
 0x824   :  { %v9144_v2 = vpop.eup %9143  ;;  %v5959_v49 = vmul.f32 %v9142_v25, %v5943_v44 }
 0x825   :  { %v5958_v14 = vmul.f32 %v9144_v2, %v5942_v36 }
 0x826   :  { %v5965_v20 = vmul.f32 %v7196_v17, %v5959_v49  ;;  %v6726_v49 = vsub.f32 %v6575_v59, %v6608_v60 }
 0x827   :  { %v5964_v62 = vmul.f32 %v7196_v17, %v5958_v14  ;;  %v6733_v14 = vsub.f32 %v6576_v35, %v6611_v21 }
 0x828   :  { %v5971_v43 = vadd.f32 %v7197_v58, %v5965_v20 }
 0x829   :  { %v5970_v15 = vadd.f32 %v7197_v58, %v5964_v62  ;;  %v6727_v62 = vand.u32 4294901760, %v6726_v49 }
 0x82a   :  { %v5985_v56 = vsel %vm37_vm0, %v5971_v43, 0  ;;  %v6734_v43 = vand.u32 4294901760, %v6733_v14 }
 0x82b   :  { %v5982_v23 = vsel %vm37_vm0, %v5970_v15, 0  ;;  %v6066_v9 = vand.u32 4294901760, %v5985_v56 }
 0x82c   :  { %v6056_v12 = vand.u32 4294901760, %v5982_v23  ;;  %v11053_v52 = vpack.c.bf16 %v6734_v43, %v6727_v62 }
 0x82d   :  { %v6067_v40 = vsub.f32 %v5985_v56, %v6066_v9  ;;  %v6728_v56 = vsub.f32 %v6726_v49, %v6727_v62 }
 0x82e   :  { %v6057_v7 = vsub.f32 %v5982_v23, %v6056_v12  ;;  %v6735_v23 = vsub.f32 %v6733_v14, %v6734_v43 }
 0x82f   :  { %v6068_v28 = vand.u32 4294901760, %v6067_v40 }
 0x830   :  { %v6058_v33 = vand.u32 4294901760, %v6057_v7 }
 0x831   :  { %v6069_v44 = vsub.f32 %v6067_v40, %v6068_v28 }
 0x832   :  { %v6059_v36 = vsub.f32 %v6057_v7, %v6058_v33 }
 0x833   :  { %v6070_v10 = vand.u32 4294901760, %v6069_v44 }
 0x834   :  { %v6060_v63 = vand.u32 4294901760, %v6059_v36  ;;  %v11045_v36 = vpack.c.bf16 %v6733_v14, %v6726_v49 }
 0x836   :  { %8282 = vmatprep.mubr.f32.mxu0 %v6060_v63  ;;  %v11047_v63 = vpack.c.bf16 %v6692_v31, %v6685_v8 }
 0x837   :  { %8283 = vmatmul.mubr.f32.vlgmr.msra.gmra.mrb[32].mxu0 %v6070_v10 }
 0x838   :  { %8705 = vmatpush3.bf16.msra.mxu0 %v8702_v48  ;;  %8293 = vmatprep.mubr.f32.mxu0 %v6056_v12  ;;  %v6686_v48 = vsub.f32 %v6684_v42, %v6685_v8 }
 0x839   :  { %8707 = vmatprep.subr.bf16.mxu0 %v8706_v27 }
 0x83a   :  { %v6687_v54 = vand.u32 4294901760, %v6686_v48 }
 0x83c   :  { %8709 = vmatpush3.bf16.msra.mxu0 %v8706_v27  ;;  %v6694_v27 = vand.u32 4294901760, %v6693_v24 }
 0x83d   :  { %8711 = vmatprep.subr.bf16.mxu0 %v8710_v16 }
 0x83f   :  { %8294 = vmatmul.mubr.f32.vlgmr.msra.gmra.mrb[32].mxu0 %v6066_v9 }
 0x840   :  { %8713 = vmatpush3.bf16.msra.mxu0 %v8710_v16  ;;  %8304 = vmatprep.mubr.f32.mxu0 %v6057_v7  ;;  %v6699_v16 = vand.u32 4294901760, %v6698_v11 }
 0x841   :  { %8715 = vmatprep.subr.bf16.mxu0 %v8714_v34 }
 0x844   :  { %8717 = vmatpush3.bf16.msra.mxu0 %v8714_v34  ;;  %v6706_v34 = vand.u32 4294901760, %v6705_v61 }
 0x845   :  { %8719 = vmatprep.subr.bf16.mxu0 %v10966_v29 }
 0x846   :  { %v6707_v19 = vsub.f32 %v6705_v61, %v6706_v34  ;;  %v11049_v10 = vpack.c.bf16 %v6706_v34, %v6699_v16 }
 0x847   :  { %8305 = vmatmul.mubr.f32.vlgmr.msra.gmra.mrb[32].mxu0 %v6067_v40  ;;  %v6736_v40 = vand.u32 4294901760, %v6735_v23 }
 0x848   :  { %8721 = vmatpush3.bf16.msra.mxu0 %v10966_v29  ;;  %8315 = vmatprep.mubr.f32.mxu0 %v6058_v33  ;;  %v6708_v37 = vand.u32 4294901760, %v6707_v19  ;;  %v11041_v33 = vpack.c.bf16 %v6705_v61, %v6698_v11 }
 0x849   :  { %8723 = vmatprep.subr.bf16.mxu0 %v10968_v22 }
 0x84c   :  { %8725 = vmatpush3.bf16.msra.mxu0 %v10968_v22 }
 0x84d   :  { %8727 = vmatprep.subr.bf16.mxu0 %v8726_v6 }
 0x84f   :  { %8316 = vmatmul.mubr.f32.vlgmr.msra.gmra.mrb[32].mxu0 %v6068_v28  ;;  %v11039_v28 = vpack.c.bf16 %v6691_v18, %v6684_v42 }
 0x850   :  { %8729 = vmatpush3.bf16.msra.mxu0 %v8726_v6  ;;  %8326 = vmatprep.mubr.f32.mxu0 %v6056_v12  ;;  %v11030_v6 = vpack.c.bf16 %v6694_v27, %v6687_v54 }
 0x851   :  { %8731 = vmatprep.subr.bf16.mxu0 %v8730_v41 }
 0x854   :  { %8733 = vmatpush3.bf16.msra.mxu0 %v8730_v41  ;;  %v6700_v41 = vsub.f32 %v6698_v11, %v6699_v16 }
 0x855   :  { %8735 = vmatprep.subr.bf16.mxu0 %v10966_v29 }
 0x856   :  { %v6701_v47 = vand.u32 4294901760, %v6700_v41 }
 0x857   :  { %8327 = vmatmul.mubr.f32.vlgmr.msra.gmra.mrb[32].mxu0 %v6066_v9 }
 0x858   :  { %8737 = vmatpush3.bf16.msra.mxu0 %v10966_v29  ;;  %8337 = vmatprep.mubr.f32.mxu0 %v6056_v12  ;;  %v6573_v29 = vld [vmem:[%s11121_s5 + $0x20] sm:$0xff]  ;;  %v11033_v17 = vpack.c.bf16 %v6708_v37, %v6701_v47  ;;  %v6729_v12 = vand.u32 4294901760, %v6728_v56 }
 0x859   :  { %8739 = vmatprep.subr.bf16.mxu0 %v10968_v22  ;;  %v6602_v53 = vand.u32 4294901760, %v6573_v29 }
 0x85a   :  { %v11037_v7 = vpack.c.bf16 %v6736_v40, %v6729_v12 }
 0x85b   :  { %v6712_v57 = vsub.f32 %v6573_v29, %v6602_v53 }
 0x85c   :  { %8741 = vmatpush3.bf16.msra.mxu0 %v10968_v22  ;;  %v6574_v22 = vld [vmem:[%s11121_s5 + $0x28] sm:$0xff] }
 0x85d   :  { %v6605_v5 = vand.u32 4294901760, %v6574_v22  ;;  %v6713_v32 = vand.u32 4294901760, %v6712_v57 }
 0x85f   :  { %8338 = vmatmul.mubr.f32.vlgmr.msra.gmra.mrb[32].mxu0 %v6066_v9  ;;  %v11016_v46 = vpack.c.bf16 %v6605_v5, %v6602_v53  ;;  %v6719_v26 = vsub.f32 %v6574_v22, %v6605_v5  ;;  %v6714_v2 = vsub.f32 %v6712_v57, %v6713_v32 }
 0x861   :  { %8751 = vmatprep.subr.bf16.mxu1 %v11016_v46  ;;  %v6720_v25 = vand.u32 4294901760, %v6719_v26  ;;  %v6715_v20 = vand.u32 4294901760, %v6714_v2  ;;  %v11043_v44 = vpack.c.bf16 %v6719_v26, %v6712_v57 }
 0x862   :  { %8753 = vmatpush3.bf16.msra.mxu1 %v11016_v46 }
 0x863   :  { %8755 = vmatprep.subr.bf16.mxu1 %v11026_v0  ;;  %v6721_v58 = vsub.f32 %v6719_v26, %v6720_v25  ;;  %v11051_v51 = vpack.c.bf16 %v6720_v25, %v6713_v32 }
 0x865   :  { %v6722_v15 = vand.u32 4294901760, %v6721_v58 }
 0x866   :  { %8757 = vmatpush3.bf16.msra.mxu1 %v11026_v0 }
 0x867   :  { %8759 = vmatprep.subr.bf16.mxu1 %v11030_v6  ;;  %v11035_v9 = vpack.c.bf16 %v6722_v15, %v6715_v20 }
 0x932   :  { %v8339_v45 = vpop.f32.mrb[32].mxu0 }
 0x933   :  { %v8854_v50 = vadd.f32 %v8339_v45, %v7198_v39  ;;  %v6505_v1 = vpop.f32.mrb[33].mxu0 }
 0x934   :  { %v8855_v3 = vadd.f32 %v7198_v39, %v6505_v1 }
 0x935   :  { %v6518_v30 = vmul.f32 0.70710677, %v8854_v50  ;;  %v6516_v1 = vmul.f32 0.5, %v8854_v50 }
 0x936   :  { %v6517_v29 = vmul.f32 0.70710677, %v8855_v3 }
 0x937   :  { %v6520_v22 = vand.u32 2147483647, %v6518_v30  ;;  %vm6560_vm12 = vcmp.lt.f32.partialorder %v6518_v30, 0.0 }
 0x938   :  { %v6519_v53 = vand.u32 2147483647, %v6517_v29  ;;  %vm6559_vm13 = vcmp.lt.f32.partialorder %v6517_v29, 0.0 }
 0x939   :  { %v6522_v5 = vmul.f32 0.3275911, %v6520_v22  ;;  %v6548_v18 = vsub.f32 0.0, %v6520_v22 }
 0x93a   :  { %v6521_v59 = vmul.f32 0.3275911, %v6519_v53  ;;  %v6547_v60 = vsub.f32 0.0, %v6519_v53 }
 0x93b   :  { %v6524_v35 = vadd.f32 1.0, %v6522_v5  ;;  %v6550_v8 = vmul.f32 %v6548_v18, %v6520_v22  ;;  %v6515_v5 = vmul.f32 0.5, %v8855_v3 }
 0x93c   :  { %v6523_v42 = vadd.f32 1.0, %v6521_v59  ;;  %v6549_v24 = vmul.f32 %v6547_v60, %v6519_v53 }
 0x93d   :  { %9145 = vrcp.f32 %v6524_v35  ;;  %v6553_v54 = vmul.f32 1.442695, %v6550_v8 }
 0x93e   :  { %9147 = vrcp.f32 %v6523_v42  ;;  %v6551_v34 = vmul.f32 1.442695, %v6549_v24 }
 0x93f   :  { %9149 = vpow2.f32 %v6553_v54 }
 0x940   :  { %9151 = vpow2.f32 %v6551_v34 }
 0x947   :  { %v9146_v21 = vpop.eup %9145 }
 0x948   :  { %v9148_v31 = vpop.eup %9147  ;;  %v6530_v48 = vmul.f32 1.0614054, %v9146_v21 }
 0x949   :  { %v6529_v11 = vmul.f32 1.0614054, %v9148_v31  ;;  %v9150_v20 = vpop.eup %9149 }
 0x94a   :  { %v6532_v61 = vadd.f32 -1.4531521, %v6530_v48  ;;  %v9152_v43 = vpop.eup %9151 }
 0x94b   :  { %v6531_v27 = vadd.f32 -1.4531521, %v6529_v11 }
 0x94c   :  { %v6534_v16 = vmul.f32 %v9146_v21, %v6532_v61 }
 0x94d   :  { %v6533_v41 = vmul.f32 %v9148_v31, %v6531_v27 }
 0x94e   :  { %v6536_v19 = vadd.f32 1.4214138, %v6534_v16 }
 0x94f   :  { %v6535_v57 = vadd.f32 1.4214138, %v6533_v41 }
 0x950   :  { %v6538_v26 = vmul.f32 %v9146_v21, %v6536_v19 }
 0x951   :  { %v6537_v47 = vmul.f32 %v9148_v31, %v6535_v57 }
 0x952   :  { %v6540_v37 = vadd.f32 -0.28449672, %v6538_v26 }
 0x953   :  { %v6539_v32 = vadd.f32 -0.28449672, %v6537_v47 }
 0x954   :  { %v6542_v25 = vmul.f32 %v9146_v21, %v6540_v37 }
 0x955   :  { %v6541_v2 = vmul.f32 %v9148_v31, %v6539_v32 }
 0x956   :  { %v6544_v49 = vadd.f32 0.2548296, %v6542_v25 }
 0x957   :  { %v6543_v14 = vadd.f32 0.2548296, %v6541_v2 }
 0x958   :  { %v6546_v58 = vmul.f32 %v9146_v21, %v6544_v49 }
 0x959   :  { %v6545_v62 = vmul.f32 %v9148_v31, %v6543_v14 }
 0x95a   :  { %v6556_v15 = vmul.f32 %v9150_v20, %v6546_v58 }
 0x95b   :  { %v6555_v56 = vmul.f32 %v9152_v43, %v6545_v62 }
 0x95c   :  { %v6558_v23 = vsub.f32 1.0, %v6556_v15 }
 0x95d   :  { %v6557_v12 = vsub.f32 1.0, %v6555_v56 }
 0x95e   :  { %v6562_v40 = vsub.f32 0.0, %v6558_v23 }
 0x95f   :  { %v6561_v39 = vsub.f32 0.0, %v6557_v12 }
 0x960   :  { %v6564_v45 = vsel %vm6560_vm12, %v6562_v40, %v6558_v23 }
 0x961   :  { %v6566_v22 = vadd.f32 1.0, %v6564_v45  ;;  %v6563_v53 = vsel %vm6559_vm13, %v6561_v39, %v6557_v12 }
 0x962   :  { %v6565_v59 = vadd.f32 1.0, %v6563_v53 }
 0x963   :  { %v6568_v35 = vmul.f32 %v6566_v22, %v6516_v1 }
 0x964   :  { %v6567_v42 = vmul.f32 %v6565_v59, %v6515_v5 }
 0x965   :  { %v6587_v18 = vsel %vm6582_vm14, %v6568_v35, 0 }
 0x966   :  { %v6672_v60 = vand.u32 4294901760, %v6587_v18  ;;  %v6584_v21 = vsel %vm6582_vm14, %v6567_v42, 0 }
 0x967   :  { %v6662_v8 = vand.u32 4294901760, %v6584_v21 }
 0x968   :  { %v6673_v31 = vsub.f32 %v6587_v18, %v6672_v60 }
 0x969   :  { %v6663_v48 = vsub.f32 %v6584_v21, %v6662_v8 }
 0x96a   :  { %v6674_v24 = vand.u32 4294901760, %v6673_v31 }
 0x96b   :  { %v6664_v11 = vand.u32 4294901760, %v6663_v48 }
 0x96c   :  { %v6675_v30 = vsub.f32 %v6673_v31, %v6674_v24 }
 0x96d   :  { %v6665_v61 = vsub.f32 %v6663_v48, %v6664_v11 }
 0x96e   :  { %v6676_v29 = vand.u32 4294901760, %v6675_v30 }
 0x96f   :  { %v6666_v54 = vand.u32 4294901760, %v6665_v61 }
 0x971   :  { %8356 = vmatprep.mubr.f32.mxu1 %v6666_v54 }
 0x972   :  { %8357 = vmatmul.mubr.f32.vlgmr.msra.gmra.mrb[20].mxu1 %v6676_v29 }
 0x973   :  { %8761 = vmatpush3.bf16.msra.mxu1 %v11030_v6  ;;  %8375 = vmatprep.mubr.f32.mxu1 %v6662_v8  ;;  %v7199_v6 = vld [vmem:[%s11122_s6 + $0x9] ss:$0 sm:$0xff] }
 0x974   :  { %8763 = vmatprep.subr.bf16.mxu1 %v11033_v17 }
 0x977   :  { %8765 = vmatpush3.bf16.msra.mxu1 %v11033_v17 }
 0x978   :  { %8767 = vmatprep.subr.bf16.mxu1 %v11035_v9 }
 0x97b   :  { %8769 = vmatpush3.bf16.msra.mxu1 %v11035_v9 }
 0x97c   :  { %8771 = vmatprep.subr.bf16.mxu1 %v11037_v7 }
 0x97f   :  { %8773 = vmatpush3.bf16.msra.mxu1 %v11037_v7 }
 0x980   :  { %8775 = vmatprep.subr.bf16.mxu1 %v11039_v28 }
 0x982   :  { %8376 = vmatmul.mubr.f32.vlgmr.msra.gmra.mrb[20].mxu1 %v6672_v60 }
 0x983   :  { %8777 = vmatpush3.bf16.msra.mxu1 %v11039_v28  ;;  %8394 = vmatprep.mubr.f32.mxu1 %v6663_v48 }
 0x984   :  { %8779 = vmatprep.subr.bf16.mxu1 %v11041_v33 }
 0x987   :  { %8781 = vmatpush3.bf16.msra.mxu1 %v11041_v33 }
 0x988   :  { %8783 = vmatprep.subr.bf16.mxu1 %v11043_v44 }
 0x98b   :  { %8785 = vmatpush3.bf16.msra.mxu1 %v11043_v44 }
 0x98c   :  { %8787 = vmatprep.subr.bf16.mxu1 %v11045_v36 }
 0x98f   :  { %8789 = vmatpush3.bf16.msra.mxu1 %v11045_v36 }
 0x990   :  { %8791 = vmatprep.subr.bf16.mxu1 %v10996_v38 }
 0x992   :  { %8395 = vmatmul.mubr.f32.vlgmr.msra.gmra.mrb[20].mxu1 %v6673_v31 }
 0x993   :  { %8793 = vmatpush3.bf16.msra.mxu1 %v10996_v38  ;;  %8413 = vmatprep.mubr.f32.mxu1 %v6664_v11 }
 0x994   :  { %8795 = vmatprep.subr.bf16.mxu1 %v11006_v13 }
 0x997   :  { %8797 = vmatpush3.bf16.msra.mxu1 %v11006_v13 }
 0x998   :  { %8799 = vmatprep.subr.bf16.mxu1 %v11016_v46 }
 0x99b   :  { %8801 = vmatpush3.bf16.msra.mxu1 %v11016_v46 }
 0x99c   :  { %8803 = vmatprep.subr.bf16.mxu1 %v11026_v0 }
 0x99f   :  { %8805 = vmatpush3.bf16.msra.mxu1 %v11026_v0 }
 0x9a0   :  { %8807 = vmatprep.subr.bf16.mxu1 %v11047_v63 }
 0x9a2   :  { %8414 = vmatmul.mubr.f32.vlgmr.msra.gmra.mrb[20].mxu1 %v6674_v24 }
 0x9a3   :  { %8809 = vmatpush3.bf16.msra.mxu1 %v11047_v63  ;;  %8432 = vmatprep.mubr.f32.mxu1 %v6662_v8 }
 0x9a4   :  { %8811 = vmatprep.subr.bf16.mxu1 %v11049_v10 }
 0x9a7   :  { %8813 = vmatpush3.bf16.msra.mxu1 %v11049_v10 }
 0x9a8   :  { %8815 = vmatprep.subr.bf16.mxu1 %v11051_v51 }
 0x9ab   :  { %8817 = vmatpush3.bf16.msra.mxu1 %v11051_v51 }
 0x9ac   :  { %8819 = vmatprep.subr.bf16.mxu1 %v11053_v52 }
 0x9af   :  { %8821 = vmatpush3.bf16.msra.mxu1 %v11053_v52 }
 0x9b0   :  { %8823 = vmatprep.subr.bf16.mxu1 %v10996_v38 }
 0x9b2   :  { %8433 = vmatmul.mubr.f32.vlgmr.msra.gmra.mrb[20].mxu1 %v6672_v60 }
 0x9b3   :  { %8825 = vmatpush3.bf16.msra.mxu1 %v10996_v38  ;;  %8451 = vmatprep.mubr.f32.mxu1 %v6662_v8 }
 0x9b4   :  { %8827 = vmatprep.subr.bf16.mxu1 %v11006_v13 }
 0x9b7   :  { %8829 = vmatpush3.bf16.msra.mxu1 %v11006_v13 }
 0x9b8   :  { %8831 = vmatprep.subr.bf16.mxu1 %v11016_v46 }
 0x9bb   :  { %8833 = vmatpush3.bf16.msra.mxu1 %v11016_v46 }
 0x9bc   :  { %8835 = vmatprep.subr.bf16.mxu1 %v11026_v0 }
 0x9bf   :  { %8837 = vmatpush3.bf16.msra.mxu1 %v11026_v0 }
 0x9c2   :  { %8452 = vmatmul.mubr.f32.vlgmr.msra.gmra.mrb[20].mxu1 %v6672_v60 }
 0xa95   :  { %v8453_v17 = vpop.f32.mrb[20].mxu1 }
 0xa96   :  { %v8856_v38 = vadd.f32 %v8453_v17, %v7199_v6  ;;  %v7159_v9 = vpop.f32.mrb[21].mxu1 }
 0xa97   :  { %v8857_v7 = vadd.f32 %v7199_v6, %v7159_v9 }
 0xa98   :  { %v7170_v13 = vadd.f32 %v8856_v38, %v10942_v4 }
 0xa99   :  { %v7169_v28 = vadd.f32 %v8857_v7, %v10944_v55 }
 0xa9a   :  { %7172 = vst.msk [vmem:[#allocation2 + $0x8] sm:$0xff] %vm37_vm0, %v7170_v13 }
 0xa9b   :  { %7171 = vst.msk [vmem:[#allocation2] sm:$0xff] %vm37_vm0, %v7169_v28 }
 0xa9c   :  { %9168 = shalt.err (!%p9165_p4)
}
 0xa9d   :  { %s9169_s1 = scalar_lea.hbm %s11125_s9, 256 }
 0xa9e   :  { %p9170_p5 = scmp.ne.s32.totalorder %s11125_s9, %s9169_s1  ;;  %p9173_p6 = scmp.lt.u32.totalorder %s9169_s1, %s11125_s9 }
 0xaa0   :  { %p9175_p7 = pnand %p9173_p6, %p9170_p5 }
 0xaa2   :  { %9178 = shalt.err (!%p9175_p7)
}
 0xaa3   :  { %s9184_s25 = smov 128   ;;  %s9185_s26 = smov 8  }
 0xaa4   :  { %7184 = dma.vmem_to_hbm [thread:$0]  %s7179_s20, 256, %s11125_s9, [#allocation3], %s9184_s25, %s9184_s25, %s9185_s26  }
 0xaa5   :  { %9179 = dma.done.wait [#allocation3], 256  }
 0xaa6   :  { %9180 = vsyncadd [#allocation3], 4294967040 }
 0xaa7   :  { %7188 = vsyncpa [#allocation3], 1 }

</bundles_post_ra>
